<compile_context>
chip_gen: v7x
topology: tpu7x:2x2x1
jax: 0.10.0
libtpu: 0.0.40
codegen_flags: <defaults>
</compile_context>

<pallas_src>
import functools
import math

import jax
import jax.numpy as jnp
from jax import lax
from jax.experimental import pallas as pl
from jax.experimental.pallas import tpu as pltpu

H1, H2, H3 = 64, 128, 32
INPUT_SIZE = 1
OUTPUT_SIZE = 1

HP = 128          # per-gate width padded to a full 128-lane vreg
G = 4 * HP        # gate slab width; slab order is (i | f | o | g), lane aligned
_GATE_PERM = (0, 1, 3, 2)   # padded slab k <- torch gate _GATE_PERM[k] (torch: i,f,g,o)


def _round_up(x, m):
    return ((x + m - 1) // m) * m


def _choose_bb(batch):
    """Batch block: as large as useful, but keep >=2 grid blocks when possible
    (v7x has 2 TensorCores); halves must be 8-sublane aligned for 2 chains."""
    b8 = _round_up(max(batch, 1), 8)
    bb = min(128, _round_up(-(-b8 // 2), 8))
    if bb >= 16:
        bb = _round_up(bb, 16)          # 2-chain halves stay multiples of 8
    return bb


# ----------------------------------------------------------------------------
# In-kernel helpers
# ----------------------------------------------------------------------------
def _sigmoid(x):
    # exp and reciprocal both live on the EUP slot (free relative to the VPU).
    return pl.reciprocal(1.0 + jnp.exp(-x), approx=True)


def _lstm_cell(gates, c_prev):
    """gates: [rows, 4*HP] in slab order (i|f|o|g). c_prev=None => zero state."""
    ifo = _sigmoid(gates[:, :3 * HP])           # one contiguous sigmoid
    i = ifo[:, 0 * HP:1 * HP]
    f = ifo[:, 1 * HP:2 * HP]
    o = ifo[:, 2 * HP:3 * HP]
    g = jnp.tanh(gates[:, 3 * HP:4 * HP])
    c_new = i * g if c_prev is None else f * c_prev + i * g
    h_new = o * jnp.tanh(c_new)
    return h_new, c_new


# ----------------------------------------------------------------------------
# Fused Pallas kernel
# ----------------------------------------------------------------------------
def fused_lstm_kernel(x_ref,
                      wih1_ref, whh1_ref, b1_ref,
                      wih2_ref, whh2_ref, b2_ref,
                      wih3_ref, whh3_ref, b3_ref,
                      wlin_ref, blin_ref,
                      out_ref,
                      gx_ref, hseq_ref,
                      *, seq_len, unroll, nchains):
    """One batch block (BB rows) of the whole 3-layer LSTM + linear head.

    x_ref   : [T, BB, 1]      time-major input slice (f32)
    wih*    : [D_pad, 4*HP]   lane-padded transposed input weights (bf16; l1 f32)
    whh*    : [HP, 4*HP]      lane-padded transposed recurrent weights (bf16)
    b*      : [1, 4*HP]       lane-padded b_ih + b_hh (f32)
    wlin    : [1, HP] f32,  blin: [1, 1] f32
    out_ref : [BB, 1]
    gx_ref  : [T, BB, 4*HP] f32 scratch (hoisted input projections)
    hseq_ref: [T, BB, HP]   f32 scratch (hidden sequence of the current layer)
    """
    T = seq_len
    B = out_ref.shape[0]
    C = B // nchains

    def rows(ci):
        return slice(None) if nchains == 1 else pl.ds(ci * C, C)

    def run_layer(whh_ref, store_seq):
        # --- peeled t=0: h0=c0=0 => gates are just the input projection ------
        carry = []
        for ci in range(nchains):
            h, c = _lstm_cell(gx_ref[0, rows(ci)], None)
            if store_seq:
                hseq_ref[0, rows(ci)] = h
            carry.append((h, c))

        whh = whh_ref[...]                      # load once, reuse across steps

        def step(t, carry):
            new = []
            for ci in range(nchains):           # independent chains interleave
                h, c = carry[ci]
                gates = gx_ref[t, rows(ci)] + jnp.dot(
                    h.astype(jnp.bfloat16), whh,
                    preferred_element_type=jnp.float32)
                h_new, c_new = _lstm_cell(gates, c)
                if store_seq:
                    hseq_ref[t, rows(ci)] = h_new
                new.append((h_new, c_new))
            return tuple(new)

        return lax.fori_loop(1, T, step, tuple(carry), unroll=unroll)

    # ---- layer 1: input_size == 1 -> input projection is a broadcast mul ----
    gx_ref[...] = (x_ref[...] * wih1_ref[...].reshape(1, 1, G)
                   + b1_ref[...].reshape(1, 1, G))
    run_layer(whh1_ref, store_seq=True)

    # ---- layer 2: one batched bf16 matmul for all timesteps, then recurrence
    h_flat = hseq_ref[...].reshape(T * B, HP).astype(jnp.bfloat16)
    gx_ref[...] = (jnp.dot(h_flat, wih2_ref[...],
                           preferred_element_type=jnp.float32)
                   + b2_ref[...]).reshape(T, B, G)
    run_layer(whh2_ref, store_seq=True)

    # ---- layer 3: only the last timestep is consumed -> no sequence store ---
    h_flat = hseq_ref[...].reshape(T * B, HP).astype(jnp.bfloat16)
    gx_ref[...] = (jnp.dot(h_flat, wih3_ref[...],
                           preferred_element_type=jnp.float32)
                   + b3_ref[...]).reshape(T, B, G)
    carry = run_layer(whh3_ref, store_seq=False)

    # Dropout(p=0.3) is identity at inference.
    # ---- final linear as VPU multiply + lane reduction (no N=1 MXU dot) -----
    for ci in range(nchains):
        h_last = carry[ci][0]
        out_ref[rows(ci)] = (jnp.sum(h_last * wlin_ref[...], axis=-1,
                                     keepdims=True) + blin_ref[...])


# ----------------------------------------------------------------------------
# Parameter construction (torch defaults), padded kernel layout + raw reference
# ----------------------------------------------------------------------------
def _pad_gate_cols(m, hidden):
    """[rows, 4*hidden] torch-order (i,f,g,o) -> [rows, G] slab-order (i,f,o,g)."""
    rows = m.shape[0]
    out = jnp.zeros((rows, G), jnp.float32)
    for slab, tg in enumerate(_GATE_PERM):
        out = out.at[:, slab * HP:slab * HP + hidden].set(
            m[:, tg * hidden:(tg + 1) * hidden])
    return out


def init_params(key):
    """Returns (kernel_params, ref_params). torch default init U(-1/sqrt(H), 1/sqrt(H))."""
    keys = jax.random.split(key, 4)
    dims = [(INPUT_SIZE, H1), (H1, H2), (H2, H3)]
    raw_lstm, pad_lstm = [], []
    for kk, (din, dh) in zip(keys[:3], dims):
        bound = 1.0 / jnp.sqrt(jnp.float32(dh))
        k1, k2, k3, k4 = jax.random.split(kk, 4)
        w_ih = jax.random.uniform(k1, (4 * dh, din), jnp.float32, -bound, bound)
        w_hh = jax.random.uniform(k2, (4 * dh, dh), jnp.float32, -bound, bound)
        b_ih = jax.random.uniform(k3, (4 * dh,), jnp.float32, -bound, bound)
        b_hh = jax.random.uniform(k4, (4 * dh,), jnp.float32, -bound, bound)
        raw_lstm.append((w_ih, w_hh, b_ih, b_hh))

        in_rows = din if din == INPUT_SIZE else HP
        wih_p = jnp.zeros((in_rows, G), jnp.float32).at[:din].set(
            _pad_gate_cols(w_ih.T, dh))
        whh_p = jnp.zeros((HP, G), jnp.float32).at[:dh].set(
            _pad_gate_cols(w_hh.T, dh))
        b_p = _pad_gate_cols((b_ih + b_hh).reshape(1, 4 * dh), dh)
        if din != INPUT_SIZE:                      # MXU operands stored bf16
            wih_p = wih_p.astype(jnp.bfloat16)
        whh_p = whh_p.astype(jnp.bfloat16)
        pad_lstm.append((wih_p, whh_p, b_p))

    bound = 1.0 / jnp.sqrt(jnp.float32(H3))
    kw, kb = jax.random.split(keys[3])
    w_lin = jax.random.uniform(kw, (OUTPUT_SIZE, H3), jnp.float32, -bound, bound)
    b_lin = jax.random.uniform(kb, (OUTPUT_SIZE,), jnp.float32, -bound, bound)
    w_lin_p = jnp.zeros((1, HP), jnp.float32).at[:, :H3].set(w_lin)

    kernel_params = {"lstm": pad_lstm, "w_lin": w_lin_p,
                     "b_lin": b_lin.reshape(1, OUTPUT_SIZE)}
    ref_params = {"lstm": raw_lstm, "w_lin": w_lin, "b_lin": b_lin}
    return kernel_params, ref_params


# ----------------------------------------------------------------------------
# Pure-JAX f32 reference (for correctness checking)
# ----------------------------------------------------------------------------
def _ref_lstm_layer(x, w_ih, w_hh, b_ih, b_hh):
    B = x.shape[0]
    hid = w_hh.shape[1]

    def step(carry, xt):
        h, c = carry
        gates = xt @ w_ih.T + h @ w_hh.T + b_ih + b_hh
        i, f, g, o = jnp.split(gates, 4, axis=-1)
        c = jax.nn.sigmoid(f) * c + jax.nn.sigmoid(i) * jnp.tanh(g)
        h = jax.nn.sigmoid(o) * jnp.tanh(c)
        return (h, c), h

    h0 = jnp.zeros((B, hid), jnp.float32)
    c0 = jnp.zeros((B, hid), jnp.float32)
    _, hs = lax.scan(step, (h0, c0), jnp.transpose(x, (1, 0, 2)))
    return jnp.transpose(hs, (1, 0, 2))


def reference_forward(x, ref_params):
    out = x.astype(jnp.float32)
    for (w_ih, w_hh, b_ih, b_hh) in ref_params["lstm"]:
        out = _ref_lstm_layer(out, w_ih, w_hh, b_ih, b_hh)
    h = out[:, -1, :]
    y = h @ ref_params["w_lin"].T + ref_params["b_lin"]
    return y.squeeze()


# ----------------------------------------------------------------------------
# Forward wrapper
# ----------------------------------------------------------------------------
def _vmem_limit_bytes(T, bb, weights):
    scratch = T * bb * G * 4 + T * bb * HP * 4
    wbytes = sum(math.prod(w.shape) * w.dtype.itemsize for w in weights)
    io = T * bb * INPUT_SIZE * 4 + bb * OUTPUT_SIZE * 4
    est = scratch + 2 * (wbytes + io)          # inputs/weights double-buffered
    if est <= 20 * 1024 * 1024:
        return None                            # default scoped limit is plenty
    return int(est * 1.25) + (4 << 20)


@jax.jit
def lstm_model_forward(x, params):
    """x: [B, T, input_size] (batch_first, like the PyTorch module)."""
    B, T, _ = x.shape
    bb = _choose_bb(B)
    nchains = 2 if bb >= 16 else 1
    b_pad = _round_up(B, bb)

    x_tm = jnp.transpose(x.astype(jnp.float32), (1, 0, 2))      # [T, B, 1]
    if b_pad != B:
        x_tm = jnp.pad(x_tm, ((0, 0), (0, b_pad - B), (0, 0)))  # zero rows

    (wih1, whh1, b1), (wih2, whh2, b2), (wih3, whh3, b3) = params["lstm"]
    weights = (wih1, whh1, b1, wih2, whh2, b2, wih3, whh3, b3,
               params["w_lin"], params["b_lin"])

    def full_spec(w):
        zeros = (0,) * w.ndim
        return pl.BlockSpec(w.shape, lambda b, z=zeros: z)

    out = pl.pallas_call(
        functools.partial(fused_lstm_kernel, seq_len=T,
                          unroll=(True if T <= 32 else 8), nchains=nchains),
        out_shape=jax.ShapeDtypeStruct((b_pad, OUTPUT_SIZE), jnp.float32),
        grid=(b_pad // bb,),
        in_specs=[pl.BlockSpec((T, bb, INPUT_SIZE), lambda b: (0, b, 0))]
                 + [full_spec(w) for w in weights],
        out_specs=pl.BlockSpec((bb, OUTPUT_SIZE), lambda b: (b, 0)),
        scratch_shapes=[pltpu.VMEM((T, bb, G), jnp.float32),    # gx scratch
                        pltpu.VMEM((T, bb, HP), jnp.float32)],  # hidden-seq scratch
        compiler_params=pltpu.CompilerParams(
            dimension_semantics=("parallel",),
            vmem_limit_bytes=_vmem_limit_bytes(T, bb, weights)),
    )(x_tm, *weights)

    return out[:B].squeeze()    # matches torch .squeeze() semantics


if __name__ == "__main__":
    key = jax.random.PRNGKey(0)
    pkey, xkey1, xkey2 = jax.random.split(key, 3)
    kernel_params, ref_params = init_params(pkey)

    # Small shapes consistent with the module (batch=2, seq=8, input_size=1).
    x = jax.random.normal(xkey1, (2, 8, INPUT_SIZE), dtype=jnp.float32)
    out = lstm_model_forward(x, kernel_params)
    jax.block_until_ready(out)
    assert out.shape == (2,), out.shape
    ref = reference_forward(x, ref_params)
    err = float(jnp.max(jnp.abs(out - ref)))
    assert err < 5e-2, f"max abs err {err}"

    # Larger batch exercises BB>=16, two carry chains and a multi-block grid.
    x2 = jax.random.normal(xkey2, (32, 12, INPUT_SIZE), dtype=jnp.float32)
    out2 = lstm_model_forward(x2, kernel_params)
    jax.block_until_ready(out2)
    assert out2.shape == (32,), out2.shape
    ref2 = reference_forward(x2, ref_params)
    err2 = float(jnp.max(jnp.abs(out2 - ref2)))
    assert err2 < 5e-2, f"max abs err {err2}"

    print("KERNEL_OK")
</pallas_src>

<mosaic_0001>
module attributes {stable_mosaic.version = 11 : i64} {
  func.func @fused_lstm_kernel(%arg0: i32, %arg1: memref<8x8x1xf32, #tpu.memory_space<vmem>>, %arg2: memref<1x512xf32, #tpu.memory_space<vmem>>, %arg3: memref<128x512xbf16, #tpu.memory_space<vmem>>, %arg4: memref<1x512xf32, #tpu.memory_space<vmem>>, %arg5: memref<128x512xbf16, #tpu.memory_space<vmem>>, %arg6: memref<128x512xbf16, #tpu.memory_space<vmem>>, %arg7: memref<1x512xf32, #tpu.memory_space<vmem>>, %arg8: memref<128x512xbf16, #tpu.memory_space<vmem>>, %arg9: memref<128x512xbf16, #tpu.memory_space<vmem>>, %arg10: memref<1x512xf32, #tpu.memory_space<vmem>>, %arg11: memref<1x128xf32, #tpu.memory_space<vmem>>, %arg12: memref<1x1xf32, #tpu.memory_space<vmem>>, %arg13: memref<8x1xf32, #tpu.memory_space<vmem>>, %arg14: memref<8x8x512xf32, #tpu.memory_space<vmem>>, %arg15: memref<8x8x128xf32, #tpu.memory_space<vmem>>) attributes {dimension_semantics = [#tpu.dimension_semantics<parallel>], iteration_bounds = array<i64: 1>, scalar_prefetch = 0 : i64, scratch_operands = 2 : i64, tpu.core_type = #tpu.core_type<tc>, window_params = [{transform_indices = @transform_0, window_bounds = array<i64: 8, 8, 1>}, {pipeline_mode = #tpu.pipeline_mode<synchronous>, transform_indices = @transform_1, window_bounds = array<i64: 1, 512>}, {pipeline_mode = #tpu.pipeline_mode<synchronous>, transform_indices = @transform_2, window_bounds = array<i64: 128, 512>}, {pipeline_mode = #tpu.pipeline_mode<synchronous>, transform_indices = @transform_3, window_bounds = array<i64: 1, 512>}, {pipeline_mode = #tpu.pipeline_mode<synchronous>, transform_indices = @transform_4, window_bounds = array<i64: 128, 512>}, {pipeline_mode = #tpu.pipeline_mode<synchronous>, transform_indices = @transform_5, window_bounds = array<i64: 128, 512>}, {pipeline_mode = #tpu.pipeline_mode<synchronous>, transform_indices = @transform_6, window_bounds = array<i64: 1, 512>}, {pipeline_mode = #tpu.pipeline_mode<synchronous>, transform_indices = @transform_7, window_bounds = array<i64: 128, 512>}, {pipeline_mode = #tpu.pipeline_mode<synchronous>, transform_indices = @transform_8, window_bounds = array<i64: 128, 512>}, {pipeline_mode = #tpu.pipeline_mode<synchronous>, transform_indices = @transform_9, window_bounds = array<i64: 1, 512>}, {pipeline_mode = #tpu.pipeline_mode<synchronous>, transform_indices = @transform_10, window_bounds = array<i64: 1, 128>}, {pipeline_mode = #tpu.pipeline_mode<synchronous>, transform_indices = @transform_11, window_bounds = array<i64: 1, 1>}, {transform_indices = @transform_12, window_bounds = array<i64: 8, 1>}]} {
    %c0 = arith.constant 0 : index
    %c0_0 = arith.constant 0 : index
    %c0_1 = arith.constant 0 : index
    %0 = vector.load %arg1[%c0, %c0_0, %c0_1] : memref<8x8x1xf32, #tpu.memory_space<vmem>>, vector<8x8x1xf32>
    %c0_2 = arith.constant 0 : index
    %c0_3 = arith.constant 0 : index
    %1 = vector.load %arg2[%c0_2, %c0_3] : memref<1x512xf32, #tpu.memory_space<vmem>>, vector<1x512xf32>
    %2 = vector.shape_cast %1 : vector<1x512xf32> to vector<1x1x512xf32>
    %3 = vector.broadcast %0 : vector<8x8x1xf32> to vector<8x8x512xf32>
    %4 = vector.broadcast %2 : vector<1x1x512xf32> to vector<8x8x512xf32>
    %5 = arith.mulf %3, %4 : vector<8x8x512xf32>
    %c0_4 = arith.constant 0 : index
    %c0_5 = arith.constant 0 : index
    %6 = vector.load %arg4[%c0_4, %c0_5] : memref<1x512xf32, #tpu.memory_space<vmem>>, vector<1x512xf32>
    %7 = vector.shape_cast %6 : vector<1x512xf32> to vector<1x1x512xf32>
    %8 = vector.broadcast %7 : vector<1x1x512xf32> to vector<8x8x512xf32>
    %9 = arith.addf %5, %8 : vector<8x8x512xf32>
    %c0_6 = arith.constant 0 : index
    %c0_7 = arith.constant 0 : index
    %c0_8 = arith.constant 0 : index
    %10 = vector.load %arg14[%c0_6, %c0_7, %c0_8] : memref<8x8x512xf32, #tpu.memory_space<vmem>>, vector<8x8x512xf32>
    tpu.vector_store %arg14[%c0_6, %c0_7, %c0_8], %9 {strides = array<i32>} : memref<8x8x512xf32, #tpu.memory_space<vmem>>, vector<8x8x512xf32>,
    %c0_9 = arith.constant 0 : index
    %c0_10 = arith.constant 0 : index
    %c0_11 = arith.constant 0 : index
    %11 = vector.load %arg14[%c0_9, %c0_10, %c0_11] : memref<8x8x512xf32, #tpu.memory_space<vmem>>, vector<1x8x512xf32>
    %12 = vector.shape_cast %11 : vector<1x8x512xf32> to vector<8x512xf32>
    %13 = vector.extract_strided_slice %12 {offsets = [0, 0], sizes = [8, 384], strides = [1, 1]} : vector<8x512xf32> to vector<8x384xf32>
    %cst = arith.constant 0.000000e+00 : f32
    %14 = vector.broadcast %cst : f32 to vector<8x384xf32>
    %15 = arith.subf %14, %13 : vector<8x384xf32>
    %16 = math.exp %15 : vector<8x384xf32>
    %cst_12 = arith.constant 1.000000e+00 : f32
    %17 = vector.broadcast %cst_12 : f32 to vector<8x384xf32>
    %18 = arith.addf %17, %16 : vector<8x384xf32>
    %19 = tpu.reciprocal %18 {approx = true} : vector<8x384xf32> -> vector<8x384xf32>
    %20 = vector.extract_strided_slice %19 {offsets = [0, 0], sizes = [8, 128], strides = [1, 1]} : vector<8x384xf32> to vector<8x128xf32>
    %21 = vector.extract_strided_slice %19 {offsets = [0, 256], sizes = [8, 128], strides = [1, 1]} : vector<8x384xf32> to vector<8x128xf32>
    %22 = vector.extract_strided_slice %12 {offsets = [0, 384], sizes = [8, 128], strides = [1, 1]} : vector<8x512xf32> to vector<8x128xf32>
    %23 = math.tanh %22 : vector<8x128xf32>
    %24 = arith.mulf %20, %23 : vector<8x128xf32>
    %25 = math.tanh %24 : vector<8x128xf32>
    %26 = arith.mulf %21, %25 : vector<8x128xf32>
    %c0_13 = arith.constant 0 : index
    %c0_14 = arith.constant 0 : index
    %c0_15 = arith.constant 0 : index
    %27 = vector.load %arg15[%c0_13, %c0_14, %c0_15] : memref<8x8x128xf32, #tpu.memory_space<vmem>>, vector<1x8x128xf32>
    %28 = vector.shape_cast %27 : vector<1x8x128xf32> to vector<8x128xf32>
    %29 = vector.shape_cast %26 : vector<8x128xf32> to vector<1x8x128xf32>
    tpu.vector_store %arg15[%c0_13, %c0_14, %c0_15], %29 {strides = array<i32>} : memref<8x8x128xf32, #tpu.memory_space<vmem>>, vector<1x8x128xf32>,
    %c0_16 = arith.constant 0 : index
    %c0_17 = arith.constant 0 : index
    %30 = vector.load %arg3[%c0_16, %c0_17] : memref<128x512xbf16, #tpu.memory_space<vmem>>, vector<128x512xbf16>
    %c1_i32 = arith.constant 1 : i32
    %31 = arith.index_cast %c1_i32 : i32 to index
    %c0_18 = arith.constant 0 : index
    %c0_19 = arith.constant 0 : index
    %32 = vector.load %arg14[%31, %c0_18, %c0_19] : memref<8x8x512xf32, #tpu.memory_space<vmem>>, vector<1x8x512xf32>
    %33 = vector.shape_cast %32 : vector<1x8x512xf32> to vector<8x512xf32>
    %34 = arith.truncf %26 : vector<8x128xf32> to vector<8x128xbf16>
    %cst_20 = arith.constant dense<0.000000e+00> : vector<8x512xf32>
    %35 = tpu.matmul %34, %30, %cst_20 {dimension_numbers = #tpu.dot_dimension_numbers<[1], [0], [0], [1], [0, 0, 1, 1], [], []>} : vector<8x128xbf16>, vector<128x512xbf16>, vector<8x512xf32> -> vector<8x512xf32>
    %36 = arith.addf %33, %35 : vector<8x512xf32>
    %37 = vector.extract_strided_slice %36 {offsets = [0, 0], sizes = [8, 384], strides = [1, 1]} : vector<8x512xf32> to vector<8x384xf32>
    %cst_21 = arith.constant 0.000000e+00 : f32
    %38 = vector.broadcast %cst_21 : f32 to vector<8x384xf32>
    %39 = arith.subf %38, %37 : vector<8x384xf32>
    %40 = math.exp %39 : vector<8x384xf32>
    %cst_22 = arith.constant 1.000000e+00 : f32
    %41 = vector.broadcast %cst_22 : f32 to vector<8x384xf32>
    %42 = arith.addf %41, %40 : vector<8x384xf32>
    %43 = tpu.reciprocal %42 {approx = true} : vector<8x384xf32> -> vector<8x384xf32>
    %44 = vector.extract_strided_slice %43 {offsets = [0, 0], sizes = [8, 128], strides = [1, 1]} : vector<8x384xf32> to vector<8x128xf32>
    %45 = vector.extract_strided_slice %43 {offsets = [0, 128], sizes = [8, 128], strides = [1, 1]} : vector<8x384xf32> to vector<8x128xf32>
    %46 = vector.extract_strided_slice %43 {offsets = [0, 256], sizes = [8, 128], strides = [1, 1]} : vector<8x384xf32> to vector<8x128xf32>
    %47 = vector.extract_strided_slice %36 {offsets = [0, 384], sizes = [8, 128], strides = [1, 1]} : vector<8x512xf32> to vector<8x128xf32>
    %48 = math.tanh %47 : vector<8x128xf32>
    %49 = arith.mulf %45, %24 : vector<8x128xf32>
    %50 = arith.mulf %44, %48 : vector<8x128xf32>
    %51 = arith.addf %49, %50 : vector<8x128xf32>
    %52 = math.tanh %51 : vector<8x128xf32>
    %53 = arith.mulf %46, %52 : vector<8x128xf32>
    %54 = arith.index_cast %c1_i32 : i32 to index
    %c0_23 = arith.constant 0 : index
    %c0_24 = arith.constant 0 : index
    %55 = vector.load %arg15[%54, %c0_23, %c0_24] : memref<8x8x128xf32, #tpu.memory_space<vmem>>, vector<1x8x128xf32>
    %56 = vector.shape_cast %55 : vector<1x8x128xf32> to vector<8x128xf32>
    %57 = vector.shape_cast %53 : vector<8x128xf32> to vector<1x8x128xf32>
    tpu.vector_store %arg15[%54, %c0_23, %c0_24], %57 {strides = array<i32>} : memref<8x8x128xf32, #tpu.memory_space<vmem>>, vector<1x8x128xf32>,
    %c2_i32 = arith.constant 2 : i32
    %58 = arith.index_cast %c2_i32 : i32 to index
    %c0_25 = arith.constant 0 : index
    %c0_26 = arith.constant 0 : index
    %59 = vector.load %arg14[%58, %c0_25, %c0_26] : memref<8x8x512xf32, #tpu.memory_space<vmem>>, vector<1x8x512xf32>
    %60 = vector.shape_cast %59 : vector<1x8x512xf32> to vector<8x512xf32>
    %61 = arith.truncf %53 : vector<8x128xf32> to vector<8x128xbf16>
    %cst_27 = arith.constant dense<0.000000e+00> : vector<8x512xf32>
    %62 = tpu.matmul %61, %30, %cst_27 {dimension_numbers = #tpu.dot_dimension_numbers<[1], [0], [0], [1], [0, 0, 1, 1], [], []>} : vector<8x128xbf16>, vector<128x512xbf16>, vector<8x512xf32> -> vector<8x512xf32>
    %63 = arith.addf %60, %62 : vector<8x512xf32>
    %64 = vector.extract_strided_slice %63 {offsets = [0, 0], sizes = [8, 384], strides = [1, 1]} : vector<8x512xf32> to vector<8x384xf32>
    %cst_28 = arith.constant 0.000000e+00 : f32
    %65 = vector.broadcast %cst_28 : f32 to vector<8x384xf32>
    %66 = arith.subf %65, %64 : vector<8x384xf32>
    %67 = math.exp %66 : vector<8x384xf32>
    %cst_29 = arith.constant 1.000000e+00 : f32
    %68 = vector.broadcast %cst_29 : f32 to vector<8x384xf32>
    %69 = arith.addf %68, %67 : vector<8x384xf32>
    %70 = tpu.reciprocal %69 {approx = true} : vector<8x384xf32> -> vector<8x384xf32>
    %71 = vector.extract_strided_slice %70 {offsets = [0, 0], sizes = [8, 128], strides = [1, 1]} : vector<8x384xf32> to vector<8x128xf32>
    %72 = vector.extract_strided_slice %70 {offsets = [0, 128], sizes = [8, 128], strides = [1, 1]} : vector<8x384xf32> to vector<8x128xf32>
    %73 = vector.extract_strided_slice %70 {offsets = [0, 256], sizes = [8, 128], strides = [1, 1]} : vector<8x384xf32> to vector<8x128xf32>
    %74 = vector.extract_strided_slice %63 {offsets = [0, 384], sizes = [8, 128], strides = [1, 1]} : vector<8x512xf32> to vector<8x128xf32>
    %75 = math.tanh %74 : vector<8x128xf32>
    %76 = arith.mulf %72, %51 : vector<8x128xf32>
    %77 = arith.mulf %71, %75 : vector<8x128xf32>
    %78 = arith.addf %76, %77 : vector<8x128xf32>
    %79 = math.tanh %78 : vector<8x128xf32>
    %80 = arith.mulf %73, %79 : vector<8x128xf32>
    %81 = arith.index_cast %c2_i32 : i32 to index
    %c0_30 = arith.constant 0 : index
    %c0_31 = arith.constant 0 : index
    %82 = vector.load %arg15[%81, %c0_30, %c0_31] : memref<8x8x128xf32, #tpu.memory_space<vmem>>, vector<1x8x128xf32>
    %83 = vector.shape_cast %82 : vector<1x8x128xf32> to vector<8x128xf32>
    %84 = vector.shape_cast %80 : vector<8x128xf32> to vector<1x8x128xf32>
    tpu.vector_store %arg15[%81, %c0_30, %c0_31], %84 {strides = array<i32>} : memref<8x8x128xf32, #tpu.memory_space<vmem>>, vector<1x8x128xf32>,
    %c3_i32 = arith.constant 3 : i32
    %85 = arith.index_cast %c3_i32 : i32 to index
    %c0_32 = arith.constant 0 : index
    %c0_33 = arith.constant 0 : index
    %86 = vector.load %arg14[%85, %c0_32, %c0_33] : memref<8x8x512xf32, #tpu.memory_space<vmem>>, vector<1x8x512xf32>
    %87 = vector.shape_cast %86 : vector<1x8x512xf32> to vector<8x512xf32>
    %88 = arith.truncf %80 : vector<8x128xf32> to vector<8x128xbf16>
    %cst_34 = arith.constant dense<0.000000e+00> : vector<8x512xf32>
    %89 = tpu.matmul %88, %30, %cst_34 {dimension_numbers = #tpu.dot_dimension_numbers<[1], [0], [0], [1], [0, 0, 1, 1], [], []>} : vector<8x128xbf16>, vector<128x512xbf16>, vector<8x512xf32> -> vector<8x512xf32>
    %90 = arith.addf %87, %89 : vector<8x512xf32>
    %91 = vector.extract_strided_slice %90 {offsets = [0, 0], sizes = [8, 384], strides = [1, 1]} : vector<8x512xf32> to vector<8x384xf32>
    %cst_35 = arith.constant 0.000000e+00 : f32
    %92 = vector.broadcast %cst_35 : f32 to vector<8x384xf32>
    %93 = arith.subf %92, %91 : vector<8x384xf32>
    %94 = math.exp %93 : vector<8x384xf32>
    %cst_36 = arith.constant 1.000000e+00 : f32
    %95 = vector.broadcast %cst_36 : f32 to vector<8x384xf32>
    %96 = arith.addf %95, %94 : vector<8x384xf32>
    %97 = tpu.reciprocal %96 {approx = true} : vector<8x384xf32> -> vector<8x384xf32>
    %98 = vector.extract_strided_slice %97 {offsets = [0, 0], sizes = [8, 128], strides = [1, 1]} : vector<8x384xf32> to vector<8x128xf32>
    %99 = vector.extract_strided_slice %97 {offsets = [0, 128], sizes = [8, 128], strides = [1, 1]} : vector<8x384xf32> to vector<8x128xf32>
    %100 = vector.extract_strided_slice %97 {offsets = [0, 256], sizes = [8, 128], strides = [1, 1]} : vector<8x384xf32> to vector<8x128xf32>
    %101 = vector.extract_strided_slice %90 {offsets = [0, 384], sizes = [8, 128], strides = [1, 1]} : vector<8x512xf32> to vector<8x128xf32>
    %102 = math.tanh %101 : vector<8x128xf32>
    %103 = arith.mulf %99, %78 : vector<8x128xf32>
    %104 = arith.mulf %98, %102 : vector<8x128xf32>
    %105 = arith.addf %103, %104 : vector<8x128xf32>
    %106 = math.tanh %105 : vector<8x128xf32>
    %107 = arith.mulf %100, %106 : vector<8x128xf32>
    %108 = arith.index_cast %c3_i32 : i32 to index
    %c0_37 = arith.constant 0 : index
    %c0_38 = arith.constant 0 : index
    %109 = vector.load %arg15[%108, %c0_37, %c0_38] : memref<8x8x128xf32, #tpu.memory_space<vmem>>, vector<1x8x128xf32>
    %110 = vector.shape_cast %109 : vector<1x8x128xf32> to vector<8x128xf32>
    %111 = vector.shape_cast %107 : vector<8x128xf32> to vector<1x8x128xf32>
    tpu.vector_store %arg15[%108, %c0_37, %c0_38], %111 {strides = array<i32>} : memref<8x8x128xf32, #tpu.memory_space<vmem>>, vector<1x8x128xf32>,
    %c4_i32 = arith.constant 4 : i32
    %112 = arith.index_cast %c4_i32 : i32 to index
    %c0_39 = arith.constant 0 : index
    %c0_40 = arith.constant 0 : index
    %113 = vector.load %arg14[%112, %c0_39, %c0_40] : memref<8x8x512xf32, #tpu.memory_space<vmem>>, vector<1x8x512xf32>
    %114 = vector.shape_cast %113 : vector<1x8x512xf32> to vector<8x512xf32>
    %115 = arith.truncf %107 : vector<8x128xf32> to vector<8x128xbf16>
    %cst_41 = arith.constant dense<0.000000e+00> : vector<8x512xf32>
    %116 = tpu.matmul %115, %30, %cst_41 {dimension_numbers = #tpu.dot_dimension_numbers<[1], [0], [0], [1], [0, 0, 1, 1], [], []>} : vector<8x128xbf16>, vector<128x512xbf16>, vector<8x512xf32> -> vector<8x512xf32>
    %117 = arith.addf %114, %116 : vector<8x512xf32>
    %118 = vector.extract_strided_slice %117 {offsets = [0, 0], sizes = [8, 384], strides = [1, 1]} : vector<8x512xf32> to vector<8x384xf32>
    %cst_42 = arith.constant 0.000000e+00 : f32
    %119 = vector.broadcast %cst_42 : f32 to vector<8x384xf32>
    %120 = arith.subf %119, %118 : vector<8x384xf32>
    %121 = math.exp %120 : vector<8x384xf32>
    %cst_43 = arith.constant 1.000000e+00 : f32
    %122 = vector.broadcast %cst_43 : f32 to vector<8x384xf32>
    %123 = arith.addf %122, %121 : vector<8x384xf32>
    %124 = tpu.reciprocal %123 {approx = true} : vector<8x384xf32> -> vector<8x384xf32>
    %125 = vector.extract_strided_slice %124 {offsets = [0, 0], sizes = [8, 128], strides = [1, 1]} : vector<8x384xf32> to vector<8x128xf32>
    %126 = vector.extract_strided_slice %124 {offsets = [0, 128], sizes = [8, 128], strides = [1, 1]} : vector<8x384xf32> to vector<8x128xf32>
    %127 = vector.extract_strided_slice %124 {offsets = [0, 256], sizes = [8, 128], strides = [1, 1]} : vector<8x384xf32> to vector<8x128xf32>
    %128 = vector.extract_strided_slice %117 {offsets = [0, 384], sizes = [8, 128], strides = [1, 1]} : vector<8x512xf32> to vector<8x128xf32>
    %129 = math.tanh %128 : vector<8x128xf32>
    %130 = arith.mulf %126, %105 : vector<8x128xf32>
    %131 = arith.mulf %125, %129 : vector<8x128xf32>
    %132 = arith.addf %130, %131 : vector<8x128xf32>
    %133 = math.tanh %132 : vector<8x128xf32>
    %134 = arith.mulf %127, %133 : vector<8x128xf32>
    %135 = arith.index_cast %c4_i32 : i32 to index
    %c0_44 = arith.constant 0 : index
    %c0_45 = arith.constant 0 : index
    %136 = vector.load %arg15[%135, %c0_44, %c0_45] : memref<8x8x128xf32, #tpu.memory_space<vmem>>, vector<1x8x128xf32>
    %137 = vector.shape_cast %136 : vector<1x8x128xf32> to vector<8x128xf32>
    %138 = vector.shape_cast %134 : vector<8x128xf32> to vector<1x8x128xf32>
    tpu.vector_store %arg15[%135, %c0_44, %c0_45], %138 {strides = array<i32>} : memref<8x8x128xf32, #tpu.memory_space<vmem>>, vector<1x8x128xf32>,
    %c5_i32 = arith.constant 5 : i32
    %139 = arith.index_cast %c5_i32 : i32 to index
    %c0_46 = arith.constant 0 : index
    %c0_47 = arith.constant 0 : index
    %140 = vector.load %arg14[%139, %c0_46, %c0_47] : memref<8x8x512xf32, #tpu.memory_space<vmem>>, vector<1x8x512xf32>
    %141 = vector.shape_cast %140 : vector<1x8x512xf32> to vector<8x512xf32>
    %142 = arith.truncf %134 : vector<8x128xf32> to vector<8x128xbf16>
    %cst_48 = arith.constant dense<0.000000e+00> : vector<8x512xf32>
    %143 = tpu.matmul %142, %30, %cst_48 {dimension_numbers = #tpu.dot_dimension_numbers<[1], [0], [0], [1], [0, 0, 1, 1], [], []>} : vector<8x128xbf16>, vector<128x512xbf16>, vector<8x512xf32> -> vector<8x512xf32>
    %144 = arith.addf %141, %143 : vector<8x512xf32>
    %145 = vector.extract_strided_slice %144 {offsets = [0, 0], sizes = [8, 384], strides = [1, 1]} : vector<8x512xf32> to vector<8x384xf32>
    %cst_49 = arith.constant 0.000000e+00 : f32
    %146 = vector.broadcast %cst_49 : f32 to vector<8x384xf32>
    %147 = arith.subf %146, %145 : vector<8x384xf32>
    %148 = math.exp %147 : vector<8x384xf32>
    %cst_50 = arith.constant 1.000000e+00 : f32
    %149 = vector.broadcast %cst_50 : f32 to vector<8x384xf32>
    %150 = arith.addf %149, %148 : vector<8x384xf32>
    %151 = tpu.reciprocal %150 {approx = true} : vector<8x384xf32> -> vector<8x384xf32>
    %152 = vector.extract_strided_slice %151 {offsets = [0, 0], sizes = [8, 128], strides = [1, 1]} : vector<8x384xf32> to vector<8x128xf32>
    %153 = vector.extract_strided_slice %151 {offsets = [0, 128], sizes = [8, 128], strides = [1, 1]} : vector<8x384xf32> to vector<8x128xf32>
    %154 = vector.extract_strided_slice %151 {offsets = [0, 256], sizes = [8, 128], strides = [1, 1]} : vector<8x384xf32> to vector<8x128xf32>
    %155 = vector.extract_strided_slice %144 {offsets = [0, 384], sizes = [8, 128], strides = [1, 1]} : vector<8x512xf32> to vector<8x128xf32>
    %156 = math.tanh %155 : vector<8x128xf32>
    %157 = arith.mulf %153, %132 : vector<8x128xf32>
    %158 = arith.mulf %152, %156 : vector<8x128xf32>
    %159 = arith.addf %157, %158 : vector<8x128xf32>
    %160 = math.tanh %159 : vector<8x128xf32>
    %161 = arith.mulf %154, %160 : vector<8x128xf32>
    %162 = arith.index_cast %c5_i32 : i32 to index
    %c0_51 = arith.constant 0 : index
    %c0_52 = arith.constant 0 : index
    %163 = vector.load %arg15[%162, %c0_51, %c0_52] : memref<8x8x128xf32, #tpu.memory_space<vmem>>, vector<1x8x128xf32>
    %164 = vector.shape_cast %163 : vector<1x8x128xf32> to vector<8x128xf32>
    %165 = vector.shape_cast %161 : vector<8x128xf32> to vector<1x8x128xf32>
    tpu.vector_store %arg15[%162, %c0_51, %c0_52], %165 {strides = array<i32>} : memref<8x8x128xf32, #tpu.memory_space<vmem>>, vector<1x8x128xf32>,
    %c6_i32 = arith.constant 6 : i32
    %166 = arith.index_cast %c6_i32 : i32 to index
    %c0_53 = arith.constant 0 : index
    %c0_54 = arith.constant 0 : index
    %167 = vector.load %arg14[%166, %c0_53, %c0_54] : memref<8x8x512xf32, #tpu.memory_space<vmem>>, vector<1x8x512xf32>
    %168 = vector.shape_cast %167 : vector<1x8x512xf32> to vector<8x512xf32>
    %169 = arith.truncf %161 : vector<8x128xf32> to vector<8x128xbf16>
    %cst_55 = arith.constant dense<0.000000e+00> : vector<8x512xf32>
    %170 = tpu.matmul %169, %30, %cst_55 {dimension_numbers = #tpu.dot_dimension_numbers<[1], [0], [0], [1], [0, 0, 1, 1], [], []>} : vector<8x128xbf16>, vector<128x512xbf16>, vector<8x512xf32> -> vector<8x512xf32>
    %171 = arith.addf %168, %170 : vector<8x512xf32>
    %172 = vector.extract_strided_slice %171 {offsets = [0, 0], sizes = [8, 384], strides = [1, 1]} : vector<8x512xf32> to vector<8x384xf32>
    %cst_56 = arith.constant 0.000000e+00 : f32
    %173 = vector.broadcast %cst_56 : f32 to vector<8x384xf32>
    %174 = arith.subf %173, %172 : vector<8x384xf32>
    %175 = math.exp %174 : vector<8x384xf32>
    %cst_57 = arith.constant 1.000000e+00 : f32
    %176 = vector.broadcast %cst_57 : f32 to vector<8x384xf32>
    %177 = arith.addf %176, %175 : vector<8x384xf32>
    %178 = tpu.reciprocal %177 {approx = true} : vector<8x384xf32> -> vector<8x384xf32>
    %179 = vector.extract_strided_slice %178 {offsets = [0, 0], sizes = [8, 128], strides = [1, 1]} : vector<8x384xf32> to vector<8x128xf32>
    %180 = vector.extract_strided_slice %178 {offsets = [0, 128], sizes = [8, 128], strides = [1, 1]} : vector<8x384xf32> to vector<8x128xf32>
    %181 = vector.extract_strided_slice %178 {offsets = [0, 256], sizes = [8, 128], strides = [1, 1]} : vector<8x384xf32> to vector<8x128xf32>
    %182 = vector.extract_strided_slice %171 {offsets = [0, 384], sizes = [8, 128], strides = [1, 1]} : vector<8x512xf32> to vector<8x128xf32>
    %183 = math.tanh %182 : vector<8x128xf32>
    %184 = arith.mulf %180, %159 : vector<8x128xf32>
    %185 = arith.mulf %179, %183 : vector<8x128xf32>
    %186 = arith.addf %184, %185 : vector<8x128xf32>
    %187 = math.tanh %186 : vector<8x128xf32>
    %188 = arith.mulf %181, %187 : vector<8x128xf32>
    %189 = arith.index_cast %c6_i32 : i32 to index
    %c0_58 = arith.constant 0 : index
    %c0_59 = arith.constant 0 : index
    %190 = vector.load %arg15[%189, %c0_58, %c0_59] : memref<8x8x128xf32, #tpu.memory_space<vmem>>, vector<1x8x128xf32>
    %191 = vector.shape_cast %190 : vector<1x8x128xf32> to vector<8x128xf32>
    %192 = vector.shape_cast %188 : vector<8x128xf32> to vector<1x8x128xf32>
    tpu.vector_store %arg15[%189, %c0_58, %c0_59], %192 {strides = array<i32>} : memref<8x8x128xf32, #tpu.memory_space<vmem>>, vector<1x8x128xf32>,
    %c7_i32 = arith.constant 7 : i32
    %193 = arith.index_cast %c7_i32 : i32 to index
    %c0_60 = arith.constant 0 : index
    %c0_61 = arith.constant 0 : index
    %194 = vector.load %arg14[%193, %c0_60, %c0_61] : memref<8x8x512xf32, #tpu.memory_space<vmem>>, vector<1x8x512xf32>
    %195 = vector.shape_cast %194 : vector<1x8x512xf32> to vector<8x512xf32>
    %196 = arith.truncf %188 : vector<8x128xf32> to vector<8x128xbf16>
    %cst_62 = arith.constant dense<0.000000e+00> : vector<8x512xf32>
    %197 = tpu.matmul %196, %30, %cst_62 {dimension_numbers = #tpu.dot_dimension_numbers<[1], [0], [0], [1], [0, 0, 1, 1], [], []>} : vector<8x128xbf16>, vector<128x512xbf16>, vector<8x512xf32> -> vector<8x512xf32>
    %198 = arith.addf %195, %197 : vector<8x512xf32>
    %199 = vector.extract_strided_slice %198 {offsets = [0, 0], sizes = [8, 384], strides = [1, 1]} : vector<8x512xf32> to vector<8x384xf32>
    %cst_63 = arith.constant 0.000000e+00 : f32
    %200 = vector.broadcast %cst_63 : f32 to vector<8x384xf32>
    %201 = arith.subf %200, %199 : vector<8x384xf32>
    %202 = math.exp %201 : vector<8x384xf32>
    %cst_64 = arith.constant 1.000000e+00 : f32
    %203 = vector.broadcast %cst_64 : f32 to vector<8x384xf32>
    %204 = arith.addf %203, %202 : vector<8x384xf32>
    %205 = tpu.reciprocal %204 {approx = true} : vector<8x384xf32> -> vector<8x384xf32>
    %206 = vector.extract_strided_slice %205 {offsets = [0, 0], sizes = [8, 128], strides = [1, 1]} : vector<8x384xf32> to vector<8x128xf32>
    %207 = vector.extract_strided_slice %205 {offsets = [0, 128], sizes = [8, 128], strides = [1, 1]} : vector<8x384xf32> to vector<8x128xf32>
    %208 = vector.extract_strided_slice %205 {offsets = [0, 256], sizes = [8, 128], strides = [1, 1]} : vector<8x384xf32> to vector<8x128xf32>
    %209 = vector.extract_strided_slice %198 {offsets = [0, 384], sizes = [8, 128], strides = [1, 1]} : vector<8x512xf32> to vector<8x128xf32>
    %210 = math.tanh %209 : vector<8x128xf32>
    %211 = arith.mulf %207, %186 : vector<8x128xf32>
    %212 = arith.mulf %206, %210 : vector<8x128xf32>
    %213 = arith.addf %211, %212 : vector<8x128xf32>
    %214 = math.tanh %213 : vector<8x128xf32>
    %215 = arith.mulf %208, %214 : vector<8x128xf32>
    %216 = arith.index_cast %c7_i32 : i32 to index
    %c0_65 = arith.constant 0 : index
    %c0_66 = arith.constant 0 : index
    %217 = vector.load %arg15[%216, %c0_65, %c0_66] : memref<8x8x128xf32, #tpu.memory_space<vmem>>, vector<1x8x128xf32>
    %218 = vector.shape_cast %217 : vector<1x8x128xf32> to vector<8x128xf32>
    %219 = vector.shape_cast %215 : vector<8x128xf32> to vector<1x8x128xf32>
    tpu.vector_store %arg15[%216, %c0_65, %c0_66], %219 {strides = array<i32>} : memref<8x8x128xf32, #tpu.memory_space<vmem>>, vector<1x8x128xf32>,
    %c7_i32_67 = arith.constant 7 : i32
    %c0_68 = arith.constant 0 : index
    %c0_69 = arith.constant 0 : index
    %c0_70 = arith.constant 0 : index
    %220 = vector.load %arg15[%c0_68, %c0_69, %c0_70] : memref<8x8x128xf32, #tpu.memory_space<vmem>>, vector<8x8x128xf32>
    %221 = vector.shape_cast %220 : vector<8x8x128xf32> to vector<64x128xf32>
    %222 = arith.truncf %221 : vector<64x128xf32> to vector<64x128xbf16>
    %c0_71 = arith.constant 0 : index
    %c0_72 = arith.constant 0 : index
    %223 = vector.load %arg5[%c0_71, %c0_72] : memref<128x512xbf16, #tpu.memory_space<vmem>>, vector<128x512xbf16>
    %cst_73 = arith.constant dense<0.000000e+00> : vector<64x512xf32>
    %224 = tpu.matmul %222, %223, %cst_73 {dimension_numbers = #tpu.dot_dimension_numbers<[1], [0], [0], [1], [0, 0, 1, 1], [], []>} : vector<64x128xbf16>, vector<128x512xbf16>, vector<64x512xf32> -> vector<64x512xf32>
    %c0_74 = arith.constant 0 : index
    %c0_75 = arith.constant 0 : index
    %225 = vector.load %arg7[%c0_74, %c0_75] : memref<1x512xf32, #tpu.memory_space<vmem>>, vector<1x512xf32>
    %226 = vector.broadcast %225 : vector<1x512xf32> to vector<64x512xf32>
    %227 = arith.addf %224, %226 : vector<64x512xf32>
    %228 = vector.shape_cast %227 : vector<64x512xf32> to vector<8x8x512xf32>
    %c0_76 = arith.constant 0 : index
    %c0_77 = arith.constant 0 : index
    %c0_78 = arith.constant 0 : index
    %229 = vector.load %arg14[%c0_76, %c0_77, %c0_78] : memref<8x8x512xf32, #tpu.memory_space<vmem>>, vector<8x8x512xf32>
    tpu.vector_store %arg14[%c0_76, %c0_77, %c0_78], %228 {strides = array<i32>} : memref<8x8x512xf32, #tpu.memory_space<vmem>>, vector<8x8x512xf32>,
    %c0_79 = arith.constant 0 : index
    %c0_80 = arith.constant 0 : index
    %c0_81 = arith.constant 0 : index
    %230 = vector.load %arg14[%c0_79, %c0_80, %c0_81] : memref<8x8x512xf32, #tpu.memory_space<vmem>>, vector<1x8x512xf32>
    %231 = vector.shape_cast %230 : vector<1x8x512xf32> to vector<8x512xf32>
    %232 = vector.extract_strided_slice %231 {offsets = [0, 0], sizes = [8, 384], strides = [1, 1]} : vector<8x512xf32> to vector<8x384xf32>
    %cst_82 = arith.constant 0.000000e+00 : f32
    %233 = vector.broadcast %cst_82 : f32 to vector<8x384xf32>
    %234 = arith.subf %233, %232 : vector<8x384xf32>
    %235 = math.exp %234 : vector<8x384xf32>
    %cst_83 = arith.constant 1.000000e+00 : f32
    %236 = vector.broadcast %cst_83 : f32 to vector<8x384xf32>
    %237 = arith.addf %236, %235 : vector<8x384xf32>
    %238 = tpu.reciprocal %237 {approx = true} : vector<8x384xf32> -> vector<8x384xf32>
    %239 = vector.extract_strided_slice %238 {offsets = [0, 0], sizes = [8, 128], strides = [1, 1]} : vector<8x384xf32> to vector<8x128xf32>
    %240 = vector.extract_strided_slice %238 {offsets = [0, 256], sizes = [8, 128], strides = [1, 1]} : vector<8x384xf32> to vector<8x128xf32>
    %241 = vector.extract_strided_slice %231 {offsets = [0, 384], sizes = [8, 128], strides = [1, 1]} : vector<8x512xf32> to vector<8x128xf32>
    %242 = math.tanh %241 : vector<8x128xf32>
    %243 = arith.mulf %239, %242 : vector<8x128xf32>
    %244 = math.tanh %243 : vector<8x128xf32>
    %245 = arith.mulf %240, %244 : vector<8x128xf32>
    %c0_84 = arith.constant 0 : index
    %c0_85 = arith.constant 0 : index
    %c0_86 = arith.constant 0 : index
    %246 = vector.load %arg15[%c0_84, %c0_85, %c0_86] : memref<8x8x128xf32, #tpu.memory_space<vmem>>, vector<1x8x128xf32>
    %247 = vector.shape_cast %246 : vector<1x8x128xf32> to vector<8x128xf32>
    %248 = vector.shape_cast %245 : vector<8x128xf32> to vector<1x8x128xf32>
    tpu.vector_store %arg15[%c0_84, %c0_85, %c0_86], %248 {strides = array<i32>} : memref<8x8x128xf32, #tpu.memory_space<vmem>>, vector<1x8x128xf32>,
    %c0_87 = arith.constant 0 : index
    %c0_88 = arith.constant 0 : index
    %249 = vector.load %arg6[%c0_87, %c0_88] : memref<128x512xbf16, #tpu.memory_space<vmem>>, vector<128x512xbf16>
    %c1_i32_89 = arith.constant 1 : i32
    %250 = arith.index_cast %c1_i32_89 : i32 to index
    %c0_90 = arith.constant 0 : index
    %c0_91 = arith.constant 0 : index
    %251 = vector.load %arg14[%250, %c0_90, %c0_91] : memref<8x8x512xf32, #tpu.memory_space<vmem>>, vector<1x8x512xf32>
    %252 = vector.shape_cast %251 : vector<1x8x512xf32> to vector<8x512xf32>
    %253 = arith.truncf %245 : vector<8x128xf32> to vector<8x128xbf16>
    %cst_92 = arith.constant dense<0.000000e+00> : vector<8x512xf32>
    %254 = tpu.matmul %253, %249, %cst_92 {dimension_numbers = #tpu.dot_dimension_numbers<[1], [0], [0], [1], [0, 0, 1, 1], [], []>} : vector<8x128xbf16>, vector<128x512xbf16>, vector<8x512xf32> -> vector<8x512xf32>
    %255 = arith.addf %252, %254 : vector<8x512xf32>
    %256 = vector.extract_strided_slice %255 {offsets = [0, 0], sizes = [8, 384], strides = [1, 1]} : vector<8x512xf32> to vector<8x384xf32>
    %cst_93 = arith.constant 0.000000e+00 : f32
    %257 = vector.broadcast %cst_93 : f32 to vector<8x384xf32>
    %258 = arith.subf %257, %256 : vector<8x384xf32>
    %259 = math.exp %258 : vector<8x384xf32>
    %cst_94 = arith.constant 1.000000e+00 : f32
    %260 = vector.broadcast %cst_94 : f32 to vector<8x384xf32>
    %261 = arith.addf %260, %259 : vector<8x384xf32>
    %262 = tpu.reciprocal %261 {approx = true} : vector<8x384xf32> -> vector<8x384xf32>
    %263 = vector.extract_strided_slice %262 {offsets = [0, 0], sizes = [8, 128], strides = [1, 1]} : vector<8x384xf32> to vector<8x128xf32>
    %264 = vector.extract_strided_slice %262 {offsets = [0, 128], sizes = [8, 128], strides = [1, 1]} : vector<8x384xf32> to vector<8x128xf32>
    %265 = vector.extract_strided_slice %262 {offsets = [0, 256], sizes = [8, 128], strides = [1, 1]} : vector<8x384xf32> to vector<8x128xf32>
    %266 = vector.extract_strided_slice %255 {offsets = [0, 384], sizes = [8, 128], strides = [1, 1]} : vector<8x512xf32> to vector<8x128xf32>
    %267 = math.tanh %266 : vector<8x128xf32>
    %268 = arith.mulf %264, %243 : vector<8x128xf32>
    %269 = arith.mulf %263, %267 : vector<8x128xf32>
    %270 = arith.addf %268, %269 : vector<8x128xf32>
    %271 = math.tanh %270 : vector<8x128xf32>
    %272 = arith.mulf %265, %271 : vector<8x128xf32>
    %273 = arith.index_cast %c1_i32_89 : i32 to index
    %c0_95 = arith.constant 0 : index
    %c0_96 = arith.constant 0 : index
    %274 = vector.load %arg15[%273, %c0_95, %c0_96] : memref<8x8x128xf32, #tpu.memory_space<vmem>>, vector<1x8x128xf32>
    %275 = vector.shape_cast %274 : vector<1x8x128xf32> to vector<8x128xf32>
    %276 = vector.shape_cast %272 : vector<8x128xf32> to vector<1x8x128xf32>
    tpu.vector_store %arg15[%273, %c0_95, %c0_96], %276 {strides = array<i32>} : memref<8x8x128xf32, #tpu.memory_space<vmem>>, vector<1x8x128xf32>,
    %c2_i32_97 = arith.constant 2 : i32
    %277 = arith.index_cast %c2_i32_97 : i32 to index
    %c0_98 = arith.constant 0 : index
    %c0_99 = arith.constant 0 : index
    %278 = vector.load %arg14[%277, %c0_98, %c0_99] : memref<8x8x512xf32, #tpu.memory_space<vmem>>, vector<1x8x512xf32>
    %279 = vector.shape_cast %278 : vector<1x8x512xf32> to vector<8x512xf32>
    %280 = arith.truncf %272 : vector<8x128xf32> to vector<8x128xbf16>
    %cst_100 = arith.constant dense<0.000000e+00> : vector<8x512xf32>
    %281 = tpu.matmul %280, %249, %cst_100 {dimension_numbers = #tpu.dot_dimension_numbers<[1], [0], [0], [1], [0, 0, 1, 1], [], []>} : vector<8x128xbf16>, vector<128x512xbf16>, vector<8x512xf32> -> vector<8x512xf32>
    %282 = arith.addf %279, %281 : vector<8x512xf32>
    %283 = vector.extract_strided_slice %282 {offsets = [0, 0], sizes = [8, 384], strides = [1, 1]} : vector<8x512xf32> to vector<8x384xf32>
    %cst_101 = arith.constant 0.000000e+00 : f32
    %284 = vector.broadcast %cst_101 : f32 to vector<8x384xf32>
    %285 = arith.subf %284, %283 : vector<8x384xf32>
    %286 = math.exp %285 : vector<8x384xf32>
    %cst_102 = arith.constant 1.000000e+00 : f32
    %287 = vector.broadcast %cst_102 : f32 to vector<8x384xf32>
    %288 = arith.addf %287, %286 : vector<8x384xf32>
    %289 = tpu.reciprocal %288 {approx = true} : vector<8x384xf32> -> vector<8x384xf32>
    %290 = vector.extract_strided_slice %289 {offsets = [0, 0], sizes = [8, 128], strides = [1, 1]} : vector<8x384xf32> to vector<8x128xf32>
    %291 = vector.extract_strided_slice %289 {offsets = [0, 128], sizes = [8, 128], strides = [1, 1]} : vector<8x384xf32> to vector<8x128xf32>
    %292 = vector.extract_strided_slice %289 {offsets = [0, 256], sizes = [8, 128], strides = [1, 1]} : vector<8x384xf32> to vector<8x128xf32>
    %293 = vector.extract_strided_slice %282 {offsets = [0, 384], sizes = [8, 128], strides = [1, 1]} : vector<8x512xf32> to vector<8x128xf32>
    %294 = math.tanh %293 : vector<8x128xf32>
    %295 = arith.mulf %291, %270 : vector<8x128xf32>
    %296 = arith.mulf %290, %294 : vector<8x128xf32>
    %297 = arith.addf %295, %296 : vector<8x128xf32>
    %298 = math.tanh %297 : vector<8x128xf32>
    %299 = arith.mulf %292, %298 : vector<8x128xf32>
    %300 = arith.index_cast %c2_i32_97 : i32 to index
    %c0_103 = arith.constant 0 : index
    %c0_104 = arith.constant 0 : index
    %301 = vector.load %arg15[%300, %c0_103, %c0_104] : memref<8x8x128xf32, #tpu.memory_space<vmem>>, vector<1x8x128xf32>
    %302 = vector.shape_cast %301 : vector<1x8x128xf32> to vector<8x128xf32>
    %303 = vector.shape_cast %299 : vector<8x128xf32> to vector<1x8x128xf32>
    tpu.vector_store %arg15[%300, %c0_103, %c0_104], %303 {strides = array<i32>} : memref<8x8x128xf32, #tpu.memory_space<vmem>>, vector<1x8x128xf32>,
    %c3_i32_105 = arith.constant 3 : i32
    %304 = arith.index_cast %c3_i32_105 : i32 to index
    %c0_106 = arith.constant 0 : index
    %c0_107 = arith.constant 0 : index
    %305 = vector.load %arg14[%304, %c0_106, %c0_107] : memref<8x8x512xf32, #tpu.memory_space<vmem>>, vector<1x8x512xf32>
    %306 = vector.shape_cast %305 : vector<1x8x512xf32> to vector<8x512xf32>
    %307 = arith.truncf %299 : vector<8x128xf32> to vector<8x128xbf16>
    %cst_108 = arith.constant dense<0.000000e+00> : vector<8x512xf32>
    %308 = tpu.matmul %307, %249, %cst_108 {dimension_numbers = #tpu.dot_dimension_numbers<[1], [0], [0], [1], [0, 0, 1, 1], [], []>} : vector<8x128xbf16>, vector<128x512xbf16>, vector<8x512xf32> -> vector<8x512xf32>
    %309 = arith.addf %306, %308 : vector<8x512xf32>
    %310 = vector.extract_strided_slice %309 {offsets = [0, 0], sizes = [8, 384], strides = [1, 1]} : vector<8x512xf32> to vector<8x384xf32>
    %cst_109 = arith.constant 0.000000e+00 : f32
    %311 = vector.broadcast %cst_109 : f32 to vector<8x384xf32>
    %312 = arith.subf %311, %310 : vector<8x384xf32>
    %313 = math.exp %312 : vector<8x384xf32>
    %cst_110 = arith.constant 1.000000e+00 : f32
    %314 = vector.broadcast %cst_110 : f32 to vector<8x384xf32>
    %315 = arith.addf %314, %313 : vector<8x384xf32>
    %316 = tpu.reciprocal %315 {approx = true} : vector<8x384xf32> -> vector<8x384xf32>
    %317 = vector.extract_strided_slice %316 {offsets = [0, 0], sizes = [8, 128], strides = [1, 1]} : vector<8x384xf32> to vector<8x128xf32>
    %318 = vector.extract_strided_slice %316 {offsets = [0, 128], sizes = [8, 128], strides = [1, 1]} : vector<8x384xf32> to vector<8x128xf32>
    %319 = vector.extract_strided_slice %316 {offsets = [0, 256], sizes = [8, 128], strides = [1, 1]} : vector<8x384xf32> to vector<8x128xf32>
    %320 = vector.extract_strided_slice %309 {offsets = [0, 384], sizes = [8, 128], strides = [1, 1]} : vector<8x512xf32> to vector<8x128xf32>
    %321 = math.tanh %320 : vector<8x128xf32>
    %322 = arith.mulf %318, %297 : vector<8x128xf32>
    %323 = arith.mulf %317, %321 : vector<8x128xf32>
    %324 = arith.addf %322, %323 : vector<8x128xf32>
    %325 = math.tanh %324 : vector<8x128xf32>
    %326 = arith.mulf %319, %325 : vector<8x128xf32>
    %327 = arith.index_cast %c3_i32_105 : i32 to index
    %c0_111 = arith.constant 0 : index
    %c0_112 = arith.constant 0 : index
    %328 = vector.load %arg15[%327, %c0_111, %c0_112] : memref<8x8x128xf32, #tpu.memory_space<vmem>>, vector<1x8x128xf32>
    %329 = vector.shape_cast %328 : vector<1x8x128xf32> to vector<8x128xf32>
    %330 = vector.shape_cast %326 : vector<8x128xf32> to vector<1x8x128xf32>
    tpu.vector_store %arg15[%327, %c0_111, %c0_112], %330 {strides = array<i32>} : memref<8x8x128xf32, #tpu.memory_space<vmem>>, vector<1x8x128xf32>,
    %c4_i32_113 = arith.constant 4 : i32
    %331 = arith.index_cast %c4_i32_113 : i32 to index
    %c0_114 = arith.constant 0 : index
    %c0_115 = arith.constant 0 : index
    %332 = vector.load %arg14[%331, %c0_114, %c0_115] : memref<8x8x512xf32, #tpu.memory_space<vmem>>, vector<1x8x512xf32>
    %333 = vector.shape_cast %332 : vector<1x8x512xf32> to vector<8x512xf32>
    %334 = arith.truncf %326 : vector<8x128xf32> to vector<8x128xbf16>
    %cst_116 = arith.constant dense<0.000000e+00> : vector<8x512xf32>
    %335 = tpu.matmul %334, %249, %cst_116 {dimension_numbers = #tpu.dot_dimension_numbers<[1], [0], [0], [1], [0, 0, 1, 1], [], []>} : vector<8x128xbf16>, vector<128x512xbf16>, vector<8x512xf32> -> vector<8x512xf32>
    %336 = arith.addf %333, %335 : vector<8x512xf32>
    %337 = vector.extract_strided_slice %336 {offsets = [0, 0], sizes = [8, 384], strides = [1, 1]} : vector<8x512xf32> to vector<8x384xf32>
    %cst_117 = arith.constant 0.000000e+00 : f32
    %338 = vector.broadcast %cst_117 : f32 to vector<8x384xf32>
    %339 = arith.subf %338, %337 : vector<8x384xf32>
    %340 = math.exp %339 : vector<8x384xf32>
    %cst_118 = arith.constant 1.000000e+00 : f32
    %341 = vector.broadcast %cst_118 : f32 to vector<8x384xf32>
    %342 = arith.addf %341, %340 : vector<8x384xf32>
    %343 = tpu.reciprocal %342 {approx = true} : vector<8x384xf32> -> vector<8x384xf32>
    %344 = vector.extract_strided_slice %343 {offsets = [0, 0], sizes = [8, 128], strides = [1, 1]} : vector<8x384xf32> to vector<8x128xf32>
    %345 = vector.extract_strided_slice %343 {offsets = [0, 128], sizes = [8, 128], strides = [1, 1]} : vector<8x384xf32> to vector<8x128xf32>
    %346 = vector.extract_strided_slice %343 {offsets = [0, 256], sizes = [8, 128], strides = [1, 1]} : vector<8x384xf32> to vector<8x128xf32>
    %347 = vector.extract_strided_slice %336 {offsets = [0, 384], sizes = [8, 128], strides = [1, 1]} : vector<8x512xf32> to vector<8x128xf32>
    %348 = math.tanh %347 : vector<8x128xf32>
    %349 = arith.mulf %345, %324 : vector<8x128xf32>
    %350 = arith.mulf %344, %348 : vector<8x128xf32>
    %351 = arith.addf %349, %350 : vector<8x128xf32>
    %352 = math.tanh %351 : vector<8x128xf32>
    %353 = arith.mulf %346, %352 : vector<8x128xf32>
    %354 = arith.index_cast %c4_i32_113 : i32 to index
    %c0_119 = arith.constant 0 : index
    %c0_120 = arith.constant 0 : index
    %355 = vector.load %arg15[%354, %c0_119, %c0_120] : memref<8x8x128xf32, #tpu.memory_space<vmem>>, vector<1x8x128xf32>
    %356 = vector.shape_cast %355 : vector<1x8x128xf32> to vector<8x128xf32>
    %357 = vector.shape_cast %353 : vector<8x128xf32> to vector<1x8x128xf32>
    tpu.vector_store %arg15[%354, %c0_119, %c0_120], %357 {strides = array<i32>} : memref<8x8x128xf32, #tpu.memory_space<vmem>>, vector<1x8x128xf32>,
    %c5_i32_121 = arith.constant 5 : i32
    %358 = arith.index_cast %c5_i32_121 : i32 to index
    %c0_122 = arith.constant 0 : index
    %c0_123 = arith.constant 0 : index
    %359 = vector.load %arg14[%358, %c0_122, %c0_123] : memref<8x8x512xf32, #tpu.memory_space<vmem>>, vector<1x8x512xf32>
    %360 = vector.shape_cast %359 : vector<1x8x512xf32> to vector<8x512xf32>
    %361 = arith.truncf %353 : vector<8x128xf32> to vector<8x128xbf16>
    %cst_124 = arith.constant dense<0.000000e+00> : vector<8x512xf32>
    %362 = tpu.matmul %361, %249, %cst_124 {dimension_numbers = #tpu.dot_dimension_numbers<[1], [0], [0], [1], [0, 0, 1, 1], [], []>} : vector<8x128xbf16>, vector<128x512xbf16>, vector<8x512xf32> -> vector<8x512xf32>
    %363 = arith.addf %360, %362 : vector<8x512xf32>
    %364 = vector.extract_strided_slice %363 {offsets = [0, 0], sizes = [8, 384], strides = [1, 1]} : vector<8x512xf32> to vector<8x384xf32>
    %cst_125 = arith.constant 0.000000e+00 : f32
    %365 = vector.broadcast %cst_125 : f32 to vector<8x384xf32>
    %366 = arith.subf %365, %364 : vector<8x384xf32>
    %367 = math.exp %366 : vector<8x384xf32>
    %cst_126 = arith.constant 1.000000e+00 : f32
    %368 = vector.broadcast %cst_126 : f32 to vector<8x384xf32>
    %369 = arith.addf %368, %367 : vector<8x384xf32>
    %370 = tpu.reciprocal %369 {approx = true} : vector<8x384xf32> -> vector<8x384xf32>
    %371 = vector.extract_strided_slice %370 {offsets = [0, 0], sizes = [8, 128], strides = [1, 1]} : vector<8x384xf32> to vector<8x128xf32>
    %372 = vector.extract_strided_slice %370 {offsets = [0, 128], sizes = [8, 128], strides = [1, 1]} : vector<8x384xf32> to vector<8x128xf32>
    %373 = vector.extract_strided_slice %370 {offsets = [0, 256], sizes = [8, 128], strides = [1, 1]} : vector<8x384xf32> to vector<8x128xf32>
    %374 = vector.extract_strided_slice %363 {offsets = [0, 384], sizes = [8, 128], strides = [1, 1]} : vector<8x512xf32> to vector<8x128xf32>
    %375 = math.tanh %374 : vector<8x128xf32>
    %376 = arith.mulf %372, %351 : vector<8x128xf32>
    %377 = arith.mulf %371, %375 : vector<8x128xf32>
    %378 = arith.addf %376, %377 : vector<8x128xf32>
    %379 = math.tanh %378 : vector<8x128xf32>
    %380 = arith.mulf %373, %379 : vector<8x128xf32>
    %381 = arith.index_cast %c5_i32_121 : i32 to index
    %c0_127 = arith.constant 0 : index
    %c0_128 = arith.constant 0 : index
    %382 = vector.load %arg15[%381, %c0_127, %c0_128] : memref<8x8x128xf32, #tpu.memory_space<vmem>>, vector<1x8x128xf32>
    %383 = vector.shape_cast %382 : vector<1x8x128xf32> to vector<8x128xf32>
    %384 = vector.shape_cast %380 : vector<8x128xf32> to vector<1x8x128xf32>
    tpu.vector_store %arg15[%381, %c0_127, %c0_128], %384 {strides = array<i32>} : memref<8x8x128xf32, #tpu.memory_space<vmem>>, vector<1x8x128xf32>,
    %c6_i32_129 = arith.constant 6 : i32
    %385 = arith.index_cast %c6_i32_129 : i32 to index
    %c0_130 = arith.constant 0 : index
    %c0_131 = arith.constant 0 : index
    %386 = vector.load %arg14[%385, %c0_130, %c0_131] : memref<8x8x512xf32, #tpu.memory_space<vmem>>, vector<1x8x512xf32>
    %387 = vector.shape_cast %386 : vector<1x8x512xf32> to vector<8x512xf32>
    %388 = arith.truncf %380 : vector<8x128xf32> to vector<8x128xbf16>
    %cst_132 = arith.constant dense<0.000000e+00> : vector<8x512xf32>
    %389 = tpu.matmul %388, %249, %cst_132 {dimension_numbers = #tpu.dot_dimension_numbers<[1], [0], [0], [1], [0, 0, 1, 1], [], []>} : vector<8x128xbf16>, vector<128x512xbf16>, vector<8x512xf32> -> vector<8x512xf32>
    %390 = arith.addf %387, %389 : vector<8x512xf32>
    %391 = vector.extract_strided_slice %390 {offsets = [0, 0], sizes = [8, 384], strides = [1, 1]} : vector<8x512xf32> to vector<8x384xf32>
    %cst_133 = arith.constant 0.000000e+00 : f32
    %392 = vector.broadcast %cst_133 : f32 to vector<8x384xf32>
    %393 = arith.subf %392, %391 : vector<8x384xf32>
    %394 = math.exp %393 : vector<8x384xf32>
    %cst_134 = arith.constant 1.000000e+00 : f32
    %395 = vector.broadcast %cst_134 : f32 to vector<8x384xf32>
    %396 = arith.addf %395, %394 : vector<8x384xf32>
    %397 = tpu.reciprocal %396 {approx = true} : vector<8x384xf32> -> vector<8x384xf32>
    %398 = vector.extract_strided_slice %397 {offsets = [0, 0], sizes = [8, 128], strides = [1, 1]} : vector<8x384xf32> to vector<8x128xf32>
    %399 = vector.extract_strided_slice %397 {offsets = [0, 128], sizes = [8, 128], strides = [1, 1]} : vector<8x384xf32> to vector<8x128xf32>
    %400 = vector.extract_strided_slice %397 {offsets = [0, 256], sizes = [8, 128], strides = [1, 1]} : vector<8x384xf32> to vector<8x128xf32>
    %401 = vector.extract_strided_slice %390 {offsets = [0, 384], sizes = [8, 128], strides = [1, 1]} : vector<8x512xf32> to vector<8x128xf32>
    %402 = math.tanh %401 : vector<8x128xf32>
    %403 = arith.mulf %399, %378 : vector<8x128xf32>
    %404 = arith.mulf %398, %402 : vector<8x128xf32>
    %405 = arith.addf %403, %404 : vector<8x128xf32>
    %406 = math.tanh %405 : vector<8x128xf32>
    %407 = arith.mulf %400, %406 : vector<8x128xf32>
    %408 = arith.index_cast %c6_i32_129 : i32 to index
    %c0_135 = arith.constant 0 : index
    %c0_136 = arith.constant 0 : index
    %409 = vector.load %arg15[%408, %c0_135, %c0_136] : memref<8x8x128xf32, #tpu.memory_space<vmem>>, vector<1x8x128xf32>
    %410 = vector.shape_cast %409 : vector<1x8x128xf32> to vector<8x128xf32>
    %411 = vector.shape_cast %407 : vector<8x128xf32> to vector<1x8x128xf32>
    tpu.vector_store %arg15[%408, %c0_135, %c0_136], %411 {strides = array<i32>} : memref<8x8x128xf32, #tpu.memory_space<vmem>>, vector<1x8x128xf32>,
    %c7_i32_137 = arith.constant 7 : i32
    %412 = arith.index_cast %c7_i32_137 : i32 to index
    %c0_138 = arith.constant 0 : index
    %c0_139 = arith.constant 0 : index
    %413 = vector.load %arg14[%412, %c0_138, %c0_139] : memref<8x8x512xf32, #tpu.memory_space<vmem>>, vector<1x8x512xf32>
    %414 = vector.shape_cast %413 : vector<1x8x512xf32> to vector<8x512xf32>
    %415 = arith.truncf %407 : vector<8x128xf32> to vector<8x128xbf16>
    %cst_140 = arith.constant dense<0.000000e+00> : vector<8x512xf32>
    %416 = tpu.matmul %415, %249, %cst_140 {dimension_numbers = #tpu.dot_dimension_numbers<[1], [0], [0], [1], [0, 0, 1, 1], [], []>} : vector<8x128xbf16>, vector<128x512xbf16>, vector<8x512xf32> -> vector<8x512xf32>
    %417 = arith.addf %414, %416 : vector<8x512xf32>
    %418 = vector.extract_strided_slice %417 {offsets = [0, 0], sizes = [8, 384], strides = [1, 1]} : vector<8x512xf32> to vector<8x384xf32>
    %cst_141 = arith.constant 0.000000e+00 : f32
    %419 = vector.broadcast %cst_141 : f32 to vector<8x384xf32>
    %420 = arith.subf %419, %418 : vector<8x384xf32>
    %421 = math.exp %420 : vector<8x384xf32>
    %cst_142 = arith.constant 1.000000e+00 : f32
    %422 = vector.broadcast %cst_142 : f32 to vector<8x384xf32>
    %423 = arith.addf %422, %421 : vector<8x384xf32>
    %424 = tpu.reciprocal %423 {approx = true} : vector<8x384xf32> -> vector<8x384xf32>
    %425 = vector.extract_strided_slice %424 {offsets = [0, 0], sizes = [8, 128], strides = [1, 1]} : vector<8x384xf32> to vector<8x128xf32>
    %426 = vector.extract_strided_slice %424 {offsets = [0, 128], sizes = [8, 128], strides = [1, 1]} : vector<8x384xf32> to vector<8x128xf32>
    %427 = vector.extract_strided_slice %424 {offsets = [0, 256], sizes = [8, 128], strides = [1, 1]} : vector<8x384xf32> to vector<8x128xf32>
    %428 = vector.extract_strided_slice %417 {offsets = [0, 384], sizes = [8, 128], strides = [1, 1]} : vector<8x512xf32> to vector<8x128xf32>
    %429 = math.tanh %428 : vector<8x128xf32>
    %430 = arith.mulf %426, %405 : vector<8x128xf32>
    %431 = arith.mulf %425, %429 : vector<8x128xf32>
    %432 = arith.addf %430, %431 : vector<8x128xf32>
    %433 = math.tanh %432 : vector<8x128xf32>
    %434 = arith.mulf %427, %433 : vector<8x128xf32>
    %435 = arith.index_cast %c7_i32_137 : i32 to index
    %c0_143 = arith.constant 0 : index
    %c0_144 = arith.constant 0 : index
    %436 = vector.load %arg15[%435, %c0_143, %c0_144] : memref<8x8x128xf32, #tpu.memory_space<vmem>>, vector<1x8x128xf32>
    %437 = vector.shape_cast %436 : vector<1x8x128xf32> to vector<8x128xf32>
    %438 = vector.shape_cast %434 : vector<8x128xf32> to vector<1x8x128xf32>
    tpu.vector_store %arg15[%435, %c0_143, %c0_144], %438 {strides = array<i32>} : memref<8x8x128xf32, #tpu.memory_space<vmem>>, vector<1x8x128xf32>,
    %c7_i32_145 = arith.constant 7 : i32
    %c0_146 = arith.constant 0 : index
    %c0_147 = arith.constant 0 : index
    %c0_148 = arith.constant 0 : index
    %439 = vector.load %arg15[%c0_146, %c0_147, %c0_148] : memref<8x8x128xf32, #tpu.memory_space<vmem>>, vector<8x8x128xf32>
    %440 = vector.shape_cast %439 : vector<8x8x128xf32> to vector<64x128xf32>
    %441 = arith.truncf %440 : vector<64x128xf32> to vector<64x128xbf16>
    %c0_149 = arith.constant 0 : index
    %c0_150 = arith.constant 0 : index
    %442 = vector.load %arg8[%c0_149, %c0_150] : memref<128x512xbf16, #tpu.memory_space<vmem>>, vector<128x512xbf16>
    %cst_151 = arith.constant dense<0.000000e+00> : vector<64x512xf32>
    %443 = tpu.matmul %441, %442, %cst_151 {dimension_numbers = #tpu.dot_dimension_numbers<[1], [0], [0], [1], [0, 0, 1, 1], [], []>} : vector<64x128xbf16>, vector<128x512xbf16>, vector<64x512xf32> -> vector<64x512xf32>
    %c0_152 = arith.constant 0 : index
    %c0_153 = arith.constant 0 : index
    %444 = vector.load %arg10[%c0_152, %c0_153] : memref<1x512xf32, #tpu.memory_space<vmem>>, vector<1x512xf32>
    %445 = vector.broadcast %444 : vector<1x512xf32> to vector<64x512xf32>
    %446 = arith.addf %443, %445 : vector<64x512xf32>
    %447 = vector.shape_cast %446 : vector<64x512xf32> to vector<8x8x512xf32>
    %c0_154 = arith.constant 0 : index
    %c0_155 = arith.constant 0 : index
    %c0_156 = arith.constant 0 : index
    %448 = vector.load %arg14[%c0_154, %c0_155, %c0_156] : memref<8x8x512xf32, #tpu.memory_space<vmem>>, vector<8x8x512xf32>
    tpu.vector_store %arg14[%c0_154, %c0_155, %c0_156], %447 {strides = array<i32>} : memref<8x8x512xf32, #tpu.memory_space<vmem>>, vector<8x8x512xf32>,
    %c0_157 = arith.constant 0 : index
    %c0_158 = arith.constant 0 : index
    %c0_159 = arith.constant 0 : index
    %449 = vector.load %arg14[%c0_157, %c0_158, %c0_159] : memref<8x8x512xf32, #tpu.memory_space<vmem>>, vector<1x8x512xf32>
    %450 = vector.shape_cast %449 : vector<1x8x512xf32> to vector<8x512xf32>
    %451 = vector.extract_strided_slice %450 {offsets = [0, 0], sizes = [8, 384], strides = [1, 1]} : vector<8x512xf32> to vector<8x384xf32>
    %cst_160 = arith.constant 0.000000e+00 : f32
    %452 = vector.broadcast %cst_160 : f32 to vector<8x384xf32>
    %453 = arith.subf %452, %451 : vector<8x384xf32>
    %454 = math.exp %453 : vector<8x384xf32>
    %cst_161 = arith.constant 1.000000e+00 : f32
    %455 = vector.broadcast %cst_161 : f32 to vector<8x384xf32>
    %456 = arith.addf %455, %454 : vector<8x384xf32>
    %457 = tpu.reciprocal %456 {approx = true} : vector<8x384xf32> -> vector<8x384xf32>
    %458 = vector.extract_strided_slice %457 {offsets = [0, 0], sizes = [8, 128], strides = [1, 1]} : vector<8x384xf32> to vector<8x128xf32>
    %459 = vector.extract_strided_slice %457 {offsets = [0, 256], sizes = [8, 128], strides = [1, 1]} : vector<8x384xf32> to vector<8x128xf32>
    %460 = vector.extract_strided_slice %450 {offsets = [0, 384], sizes = [8, 128], strides = [1, 1]} : vector<8x512xf32> to vector<8x128xf32>
    %461 = math.tanh %460 : vector<8x128xf32>
    %462 = arith.mulf %458, %461 : vector<8x128xf32>
    %463 = math.tanh %462 : vector<8x128xf32>
    %464 = arith.mulf %459, %463 : vector<8x128xf32>
    %c0_162 = arith.constant 0 : index
    %c0_163 = arith.constant 0 : index
    %465 = vector.load %arg9[%c0_162, %c0_163] : memref<128x512xbf16, #tpu.memory_space<vmem>>, vector<128x512xbf16>
    %c1_i32_164 = arith.constant 1 : i32
    %466 = arith.index_cast %c1_i32_164 : i32 to index
    %c0_165 = arith.constant 0 : index
    %c0_166 = arith.constant 0 : index
    %467 = vector.load %arg14[%466, %c0_165, %c0_166] : memref<8x8x512xf32, #tpu.memory_space<vmem>>, vector<1x8x512xf32>
    %468 = vector.shape_cast %467 : vector<1x8x512xf32> to vector<8x512xf32>
    %469 = arith.truncf %464 : vector<8x128xf32> to vector<8x128xbf16>
    %cst_167 = arith.constant dense<0.000000e+00> : vector<8x512xf32>
    %470 = tpu.matmul %469, %465, %cst_167 {dimension_numbers = #tpu.dot_dimension_numbers<[1], [0], [0], [1], [0, 0, 1, 1], [], []>} : vector<8x128xbf16>, vector<128x512xbf16>, vector<8x512xf32> -> vector<8x512xf32>
    %471 = arith.addf %468, %470 : vector<8x512xf32>
    %472 = vector.extract_strided_slice %471 {offsets = [0, 0], sizes = [8, 384], strides = [1, 1]} : vector<8x512xf32> to vector<8x384xf32>
    %cst_168 = arith.constant 0.000000e+00 : f32
    %473 = vector.broadcast %cst_168 : f32 to vector<8x384xf32>
    %474 = arith.subf %473, %472 : vector<8x384xf32>
    %475 = math.exp %474 : vector<8x384xf32>
    %cst_169 = arith.constant 1.000000e+00 : f32
    %476 = vector.broadcast %cst_169 : f32 to vector<8x384xf32>
    %477 = arith.addf %476, %475 : vector<8x384xf32>
    %478 = tpu.reciprocal %477 {approx = true} : vector<8x384xf32> -> vector<8x384xf32>
    %479 = vector.extract_strided_slice %478 {offsets = [0, 0], sizes = [8, 128], strides = [1, 1]} : vector<8x384xf32> to vector<8x128xf32>
    %480 = vector.extract_strided_slice %478 {offsets = [0, 128], sizes = [8, 128], strides = [1, 1]} : vector<8x384xf32> to vector<8x128xf32>
    %481 = vector.extract_strided_slice %478 {offsets = [0, 256], sizes = [8, 128], strides = [1, 1]} : vector<8x384xf32> to vector<8x128xf32>
    %482 = vector.extract_strided_slice %471 {offsets = [0, 384], sizes = [8, 128], strides = [1, 1]} : vector<8x512xf32> to vector<8x128xf32>
    %483 = math.tanh %482 : vector<8x128xf32>
    %484 = arith.mulf %480, %462 : vector<8x128xf32>
    %485 = arith.mulf %479, %483 : vector<8x128xf32>
    %486 = arith.addf %484, %485 : vector<8x128xf32>
    %487 = math.tanh %486 : vector<8x128xf32>
    %488 = arith.mulf %481, %487 : vector<8x128xf32>
    %c2_i32_170 = arith.constant 2 : i32
    %489 = arith.index_cast %c2_i32_170 : i32 to index
    %c0_171 = arith.constant 0 : index
    %c0_172 = arith.constant 0 : index
    %490 = vector.load %arg14[%489, %c0_171, %c0_172] : memref<8x8x512xf32, #tpu.memory_space<vmem>>, vector<1x8x512xf32>
    %491 = vector.shape_cast %490 : vector<1x8x512xf32> to vector<8x512xf32>
    %492 = arith.truncf %488 : vector<8x128xf32> to vector<8x128xbf16>
    %cst_173 = arith.constant dense<0.000000e+00> : vector<8x512xf32>
    %493 = tpu.matmul %492, %465, %cst_173 {dimension_numbers = #tpu.dot_dimension_numbers<[1], [0], [0], [1], [0, 0, 1, 1], [], []>} : vector<8x128xbf16>, vector<128x512xbf16>, vector<8x512xf32> -> vector<8x512xf32>
    %494 = arith.addf %491, %493 : vector<8x512xf32>
    %495 = vector.extract_strided_slice %494 {offsets = [0, 0], sizes = [8, 384], strides = [1, 1]} : vector<8x512xf32> to vector<8x384xf32>
    %cst_174 = arith.constant 0.000000e+00 : f32
    %496 = vector.broadcast %cst_174 : f32 to vector<8x384xf32>
    %497 = arith.subf %496, %495 : vector<8x384xf32>
    %498 = math.exp %497 : vector<8x384xf32>
    %cst_175 = arith.constant 1.000000e+00 : f32
    %499 = vector.broadcast %cst_175 : f32 to vector<8x384xf32>
    %500 = arith.addf %499, %498 : vector<8x384xf32>
    %501 = tpu.reciprocal %500 {approx = true} : vector<8x384xf32> -> vector<8x384xf32>
    %502 = vector.extract_strided_slice %501 {offsets = [0, 0], sizes = [8, 128], strides = [1, 1]} : vector<8x384xf32> to vector<8x128xf32>
    %503 = vector.extract_strided_slice %501 {offsets = [0, 128], sizes = [8, 128], strides = [1, 1]} : vector<8x384xf32> to vector<8x128xf32>
    %504 = vector.extract_strided_slice %501 {offsets = [0, 256], sizes = [8, 128], strides = [1, 1]} : vector<8x384xf32> to vector<8x128xf32>
    %505 = vector.extract_strided_slice %494 {offsets = [0, 384], sizes = [8, 128], strides = [1, 1]} : vector<8x512xf32> to vector<8x128xf32>
    %506 = math.tanh %505 : vector<8x128xf32>
    %507 = arith.mulf %503, %486 : vector<8x128xf32>
    %508 = arith.mulf %502, %506 : vector<8x128xf32>
    %509 = arith.addf %507, %508 : vector<8x128xf32>
    %510 = math.tanh %509 : vector<8x128xf32>
    %511 = arith.mulf %504, %510 : vector<8x128xf32>
    %c3_i32_176 = arith.constant 3 : i32
    %512 = arith.index_cast %c3_i32_176 : i32 to index
    %c0_177 = arith.constant 0 : index
    %c0_178 = arith.constant 0 : index
    %513 = vector.load %arg14[%512, %c0_177, %c0_178] : memref<8x8x512xf32, #tpu.memory_space<vmem>>, vector<1x8x512xf32>
    %514 = vector.shape_cast %513 : vector<1x8x512xf32> to vector<8x512xf32>
    %515 = arith.truncf %511 : vector<8x128xf32> to vector<8x128xbf16>
    %cst_179 = arith.constant dense<0.000000e+00> : vector<8x512xf32>
    %516 = tpu.matmul %515, %465, %cst_179 {dimension_numbers = #tpu.dot_dimension_numbers<[1], [0], [0], [1], [0, 0, 1, 1], [], []>} : vector<8x128xbf16>, vector<128x512xbf16>, vector<8x512xf32> -> vector<8x512xf32>
    %517 = arith.addf %514, %516 : vector<8x512xf32>
    %518 = vector.extract_strided_slice %517 {offsets = [0, 0], sizes = [8, 384], strides = [1, 1]} : vector<8x512xf32> to vector<8x384xf32>
    %cst_180 = arith.constant 0.000000e+00 : f32
    %519 = vector.broadcast %cst_180 : f32 to vector<8x384xf32>
    %520 = arith.subf %519, %518 : vector<8x384xf32>
    %521 = math.exp %520 : vector<8x384xf32>
    %cst_181 = arith.constant 1.000000e+00 : f32
    %522 = vector.broadcast %cst_181 : f32 to vector<8x384xf32>
    %523 = arith.addf %522, %521 : vector<8x384xf32>
    %524 = tpu.reciprocal %523 {approx = true} : vector<8x384xf32> -> vector<8x384xf32>
    %525 = vector.extract_strided_slice %524 {offsets = [0, 0], sizes = [8, 128], strides = [1, 1]} : vector<8x384xf32> to vector<8x128xf32>
    %526 = vector.extract_strided_slice %524 {offsets = [0, 128], sizes = [8, 128], strides = [1, 1]} : vector<8x384xf32> to vector<8x128xf32>
    %527 = vector.extract_strided_slice %524 {offsets = [0, 256], sizes = [8, 128], strides = [1, 1]} : vector<8x384xf32> to vector<8x128xf32>
    %528 = vector.extract_strided_slice %517 {offsets = [0, 384], sizes = [8, 128], strides = [1, 1]} : vector<8x512xf32> to vector<8x128xf32>
    %529 = math.tanh %528 : vector<8x128xf32>
    %530 = arith.mulf %526, %509 : vector<8x128xf32>
    %531 = arith.mulf %525, %529 : vector<8x128xf32>
    %532 = arith.addf %530, %531 : vector<8x128xf32>
    %533 = math.tanh %532 : vector<8x128xf32>
    %534 = arith.mulf %527, %533 : vector<8x128xf32>
    %c4_i32_182 = arith.constant 4 : i32
    %535 = arith.index_cast %c4_i32_182 : i32 to index
    %c0_183 = arith.constant 0 : index
    %c0_184 = arith.constant 0 : index
    %536 = vector.load %arg14[%535, %c0_183, %c0_184] : memref<8x8x512xf32, #tpu.memory_space<vmem>>, vector<1x8x512xf32>
    %537 = vector.shape_cast %536 : vector<1x8x512xf32> to vector<8x512xf32>
    %538 = arith.truncf %534 : vector<8x128xf32> to vector<8x128xbf16>
    %cst_185 = arith.constant dense<0.000000e+00> : vector<8x512xf32>
    %539 = tpu.matmul %538, %465, %cst_185 {dimension_numbers = #tpu.dot_dimension_numbers<[1], [0], [0], [1], [0, 0, 1, 1], [], []>} : vector<8x128xbf16>, vector<128x512xbf16>, vector<8x512xf32> -> vector<8x512xf32>
    %540 = arith.addf %537, %539 : vector<8x512xf32>
    %541 = vector.extract_strided_slice %540 {offsets = [0, 0], sizes = [8, 384], strides = [1, 1]} : vector<8x512xf32> to vector<8x384xf32>
    %cst_186 = arith.constant 0.000000e+00 : f32
    %542 = vector.broadcast %cst_186 : f32 to vector<8x384xf32>
    %543 = arith.subf %542, %541 : vector<8x384xf32>
    %544 = math.exp %543 : vector<8x384xf32>
    %cst_187 = arith.constant 1.000000e+00 : f32
    %545 = vector.broadcast %cst_187 : f32 to vector<8x384xf32>
    %546 = arith.addf %545, %544 : vector<8x384xf32>
    %547 = tpu.reciprocal %546 {approx = true} : vector<8x384xf32> -> vector<8x384xf32>
    %548 = vector.extract_strided_slice %547 {offsets = [0, 0], sizes = [8, 128], strides = [1, 1]} : vector<8x384xf32> to vector<8x128xf32>
    %549 = vector.extract_strided_slice %547 {offsets = [0, 128], sizes = [8, 128], strides = [1, 1]} : vector<8x384xf32> to vector<8x128xf32>
    %550 = vector.extract_strided_slice %547 {offsets = [0, 256], sizes = [8, 128], strides = [1, 1]} : vector<8x384xf32> to vector<8x128xf32>
    %551 = vector.extract_strided_slice %540 {offsets = [0, 384], sizes = [8, 128], strides = [1, 1]} : vector<8x512xf32> to vector<8x128xf32>
    %552 = math.tanh %551 : vector<8x128xf32>
    %553 = arith.mulf %549, %532 : vector<8x128xf32>
    %554 = arith.mulf %548, %552 : vector<8x128xf32>
    %555 = arith.addf %553, %554 : vector<8x128xf32>
    %556 = math.tanh %555 : vector<8x128xf32>
    %557 = arith.mulf %550, %556 : vector<8x128xf32>
    %c5_i32_188 = arith.constant 5 : i32
    %558 = arith.index_cast %c5_i32_188 : i32 to index
    %c0_189 = arith.constant 0 : index
    %c0_190 = arith.constant 0 : index
    %559 = vector.load %arg14[%558, %c0_189, %c0_190] : memref<8x8x512xf32, #tpu.memory_space<vmem>>, vector<1x8x512xf32>
    %560 = vector.shape_cast %559 : vector<1x8x512xf32> to vector<8x512xf32>
    %561 = arith.truncf %557 : vector<8x128xf32> to vector<8x128xbf16>
    %cst_191 = arith.constant dense<0.000000e+00> : vector<8x512xf32>
    %562 = tpu.matmul %561, %465, %cst_191 {dimension_numbers = #tpu.dot_dimension_numbers<[1], [0], [0], [1], [0, 0, 1, 1], [], []>} : vector<8x128xbf16>, vector<128x512xbf16>, vector<8x512xf32> -> vector<8x512xf32>
    %563 = arith.addf %560, %562 : vector<8x512xf32>
    %564 = vector.extract_strided_slice %563 {offsets = [0, 0], sizes = [8, 384], strides = [1, 1]} : vector<8x512xf32> to vector<8x384xf32>
    %cst_192 = arith.constant 0.000000e+00 : f32
    %565 = vector.broadcast %cst_192 : f32 to vector<8x384xf32>
    %566 = arith.subf %565, %564 : vector<8x384xf32>
    %567 = math.exp %566 : vector<8x384xf32>
    %cst_193 = arith.constant 1.000000e+00 : f32
    %568 = vector.broadcast %cst_193 : f32 to vector<8x384xf32>
    %569 = arith.addf %568, %567 : vector<8x384xf32>
    %570 = tpu.reciprocal %569 {approx = true} : vector<8x384xf32> -> vector<8x384xf32>
    %571 = vector.extract_strided_slice %570 {offsets = [0, 0], sizes = [8, 128], strides = [1, 1]} : vector<8x384xf32> to vector<8x128xf32>
    %572 = vector.extract_strided_slice %570 {offsets = [0, 128], sizes = [8, 128], strides = [1, 1]} : vector<8x384xf32> to vector<8x128xf32>
    %573 = vector.extract_strided_slice %570 {offsets = [0, 256], sizes = [8, 128], strides = [1, 1]} : vector<8x384xf32> to vector<8x128xf32>
    %574 = vector.extract_strided_slice %563 {offsets = [0, 384], sizes = [8, 128], strides = [1, 1]} : vector<8x512xf32> to vector<8x128xf32>
    %575 = math.tanh %574 : vector<8x128xf32>
    %576 = arith.mulf %572, %555 : vector<8x128xf32>
    %577 = arith.mulf %571, %575 : vector<8x128xf32>
    %578 = arith.addf %576, %577 : vector<8x128xf32>
    %579 = math.tanh %578 : vector<8x128xf32>
    %580 = arith.mulf %573, %579 : vector<8x128xf32>
    %c6_i32_194 = arith.constant 6 : i32
    %581 = arith.index_cast %c6_i32_194 : i32 to index
    %c0_195 = arith.constant 0 : index
    %c0_196 = arith.constant 0 : index
    %582 = vector.load %arg14[%581, %c0_195, %c0_196] : memref<8x8x512xf32, #tpu.memory_space<vmem>>, vector<1x8x512xf32>
    %583 = vector.shape_cast %582 : vector<1x8x512xf32> to vector<8x512xf32>
    %584 = arith.truncf %580 : vector<8x128xf32> to vector<8x128xbf16>
    %cst_197 = arith.constant dense<0.000000e+00> : vector<8x512xf32>
    %585 = tpu.matmul %584, %465, %cst_197 {dimension_numbers = #tpu.dot_dimension_numbers<[1], [0], [0], [1], [0, 0, 1, 1], [], []>} : vector<8x128xbf16>, vector<128x512xbf16>, vector<8x512xf32> -> vector<8x512xf32>
    %586 = arith.addf %583, %585 : vector<8x512xf32>
    %587 = vector.extract_strided_slice %586 {offsets = [0, 0], sizes = [8, 384], strides = [1, 1]} : vector<8x512xf32> to vector<8x384xf32>
    %cst_198 = arith.constant 0.000000e+00 : f32
    %588 = vector.broadcast %cst_198 : f32 to vector<8x384xf32>
    %589 = arith.subf %588, %587 : vector<8x384xf32>
    %590 = math.exp %589 : vector<8x384xf32>
    %cst_199 = arith.constant 1.000000e+00 : f32
    %591 = vector.broadcast %cst_199 : f32 to vector<8x384xf32>
    %592 = arith.addf %591, %590 : vector<8x384xf32>
    %593 = tpu.reciprocal %592 {approx = true} : vector<8x384xf32> -> vector<8x384xf32>
    %594 = vector.extract_strided_slice %593 {offsets = [0, 0], sizes = [8, 128], strides = [1, 1]} : vector<8x384xf32> to vector<8x128xf32>
    %595 = vector.extract_strided_slice %593 {offsets = [0, 128], sizes = [8, 128], strides = [1, 1]} : vector<8x384xf32> to vector<8x128xf32>
    %596 = vector.extract_strided_slice %593 {offsets = [0, 256], sizes = [8, 128], strides = [1, 1]} : vector<8x384xf32> to vector<8x128xf32>
    %597 = vector.extract_strided_slice %586 {offsets = [0, 384], sizes = [8, 128], strides = [1, 1]} : vector<8x512xf32> to vector<8x128xf32>
    %598 = math.tanh %597 : vector<8x128xf32>
    %599 = arith.mulf %595, %578 : vector<8x128xf32>
    %600 = arith.mulf %594, %598 : vector<8x128xf32>
    %601 = arith.addf %599, %600 : vector<8x128xf32>
    %602 = math.tanh %601 : vector<8x128xf32>
    %603 = arith.mulf %596, %602 : vector<8x128xf32>
    %c7_i32_200 = arith.constant 7 : i32
    %604 = arith.index_cast %c7_i32_200 : i32 to index
    %c0_201 = arith.constant 0 : index
    %c0_202 = arith.constant 0 : index
    %605 = vector.load %arg14[%604, %c0_201, %c0_202] : memref<8x8x512xf32, #tpu.memory_space<vmem>>, vector<1x8x512xf32>
    %606 = vector.shape_cast %605 : vector<1x8x512xf32> to vector<8x512xf32>
    %607 = arith.truncf %603 : vector<8x128xf32> to vector<8x128xbf16>
    %cst_203 = arith.constant dense<0.000000e+00> : vector<8x512xf32>
    %608 = tpu.matmul %607, %465, %cst_203 {dimension_numbers = #tpu.dot_dimension_numbers<[1], [0], [0], [1], [0, 0, 1, 1], [], []>} : vector<8x128xbf16>, vector<128x512xbf16>, vector<8x512xf32> -> vector<8x512xf32>
    %609 = arith.addf %606, %608 : vector<8x512xf32>
    %610 = vector.extract_strided_slice %609 {offsets = [0, 0], sizes = [8, 384], strides = [1, 1]} : vector<8x512xf32> to vector<8x384xf32>
    %cst_204 = arith.constant 0.000000e+00 : f32
    %611 = vector.broadcast %cst_204 : f32 to vector<8x384xf32>
    %612 = arith.subf %611, %610 : vector<8x384xf32>
    %613 = math.exp %612 : vector<8x384xf32>
    %cst_205 = arith.constant 1.000000e+00 : f32
    %614 = vector.broadcast %cst_205 : f32 to vector<8x384xf32>
    %615 = arith.addf %614, %613 : vector<8x384xf32>
    %616 = tpu.reciprocal %615 {approx = true} : vector<8x384xf32> -> vector<8x384xf32>
    %617 = vector.extract_strided_slice %616 {offsets = [0, 0], sizes = [8, 128], strides = [1, 1]} : vector<8x384xf32> to vector<8x128xf32>
    %618 = vector.extract_strided_slice %616 {offsets = [0, 128], sizes = [8, 128], strides = [1, 1]} : vector<8x384xf32> to vector<8x128xf32>
    %619 = vector.extract_strided_slice %616 {offsets = [0, 256], sizes = [8, 128], strides = [1, 1]} : vector<8x384xf32> to vector<8x128xf32>
    %620 = vector.extract_strided_slice %609 {offsets = [0, 384], sizes = [8, 128], strides = [1, 1]} : vector<8x512xf32> to vector<8x128xf32>
    %621 = math.tanh %620 : vector<8x128xf32>
    %622 = arith.mulf %618, %601 : vector<8x128xf32>
    %623 = arith.mulf %617, %621 : vector<8x128xf32>
    %624 = arith.addf %622, %623 : vector<8x128xf32>
    %625 = math.tanh %624 : vector<8x128xf32>
    %626 = arith.mulf %619, %625 : vector<8x128xf32>
    %c7_i32_206 = arith.constant 7 : i32
    %c0_207 = arith.constant 0 : index
    %c0_208 = arith.constant 0 : index
    %627 = vector.load %arg11[%c0_207, %c0_208] : memref<1x128xf32, #tpu.memory_space<vmem>>, vector<1x128xf32>
    %628 = vector.broadcast %627 : vector<1x128xf32> to vector<8x128xf32>
    %629 = arith.mulf %626, %628 : vector<8x128xf32>
    %cst_209 = arith.constant dense<0.000000e+00> : vector<8xf32>
    %630 = vector.multi_reduction <add>, %629, %cst_209 [1] : vector<8x128xf32> to vector<8xf32>
    %631 = vector.shape_cast %630 : vector<8xf32> to vector<8x1xf32>
    %c0_210 = arith.constant 0 : index
    %c0_211 = arith.constant 0 : index
    %632 = vector.load %arg12[%c0_210, %c0_211] : memref<1x1xf32, #tpu.memory_space<vmem>>, vector<1x1xf32>
    %633 = vector.broadcast %632 : vector<1x1xf32> to vector<8x1xf32>
    %634 = arith.addf %631, %633 : vector<8x1xf32>
    %c0_212 = arith.constant 0 : index
    %c0_213 = arith.constant 0 : index
    %635 = vector.load %arg13[%c0_212, %c0_213] : memref<8x1xf32, #tpu.memory_space<vmem>>, vector<8x1xf32>
    tpu.vector_store %arg13[%c0_212, %c0_213], %634 {strides = array<i32>} : memref<8x1xf32, #tpu.memory_space<vmem>>, vector<8x1xf32>,
    return
  }
  func.func @transform_0(%arg0: i32) -> (i32, i32, i32) {
    %c0_i32 = arith.constant 0 : i32
    %c0_i32_0 = arith.constant 0 : i32
    %c0_i32_1 = arith.constant 0 : i32
    return %c0_i32, %arg0, %c0_i32_0 : i32, i32, i32
  }
  func.func @transform_1(%arg0: i32) -> (i32, i32) {
    %c0_i32 = arith.constant 0 : i32
    %c0_i32_0 = arith.constant 0 : i32
    %c0_i32_1 = arith.constant 0 : i32
    return %c0_i32, %c0_i32_0 : i32, i32
  }
  func.func @transform_2(%arg0: i32) -> (i32, i32) {
    %c0_i32 = arith.constant 0 : i32
    %c0_i32_0 = arith.constant 0 : i32
    %c0_i32_1 = arith.constant 0 : i32
    return %c0_i32, %c0_i32_0 : i32, i32
  }
  func.func @transform_3(%arg0: i32) -> (i32, i32) {
    %c0_i32 = arith.constant 0 : i32
    %c0_i32_0 = arith.constant 0 : i32
    %c0_i32_1 = arith.constant 0 : i32
    return %c0_i32, %c0_i32_0 : i32, i32
  }
  func.func @transform_4(%arg0: i32) -> (i32, i32) {
    %c0_i32 = arith.constant 0 : i32
    %c0_i32_0 = arith.constant 0 : i32
    %c0_i32_1 = arith.constant 0 : i32
    return %c0_i32, %c0_i32_0 : i32, i32
  }
  func.func @transform_5(%arg0: i32) -> (i32, i32) {
    %c0_i32 = arith.constant 0 : i32
    %c0_i32_0 = arith.constant 0 : i32
    %c0_i32_1 = arith.constant 0 : i32
    return %c0_i32, %c0_i32_0 : i32, i32
  }
  func.func @transform_6(%arg0: i32) -> (i32, i32) {
    %c0_i32 = arith.constant 0 : i32
    %c0_i32_0 = arith.constant 0 : i32
    %c0_i32_1 = arith.constant 0 : i32
    return %c0_i32, %c0_i32_0 : i32, i32
  }
  func.func @transform_7(%arg0: i32) -> (i32, i32) {
    %c0_i32 = arith.constant 0 : i32
    %c0_i32_0 = arith.constant 0 : i32
    %c0_i32_1 = arith.constant 0 : i32
    return %c0_i32, %c0_i32_0 : i32, i32
  }
  func.func @transform_8(%arg0: i32) -> (i32, i32) {
    %c0_i32 = arith.constant 0 : i32
    %c0_i32_0 = arith.constant 0 : i32
    %c0_i32_1 = arith.constant 0 : i32
    return %c0_i32, %c0_i32_0 : i32, i32
  }
  func.func @transform_9(%arg0: i32) -> (i32, i32) {
    %c0_i32 = arith.constant 0 : i32
    %c0_i32_0 = arith.constant 0 : i32
    %c0_i32_1 = arith.constant 0 : i32
    return %c0_i32, %c0_i32_0 : i32, i32
  }
  func.func @transform_10(%arg0: i32) -> (i32, i32) {
    %c0_i32 = arith.constant 0 : i32
    %c0_i32_0 = arith.constant 0 : i32
    %c0_i32_1 = arith.constant 0 : i32
    return %c0_i32, %c0_i32_0 : i32, i32
  }
  func.func @transform_11(%arg0: i32) -> (i32, i32) {
    %c0_i32 = arith.constant 0 : i32
    %c0_i32_0 = arith.constant 0 : i32
    %c0_i32_1 = arith.constant 0 : i32
    return %c0_i32, %c0_i32_0 : i32, i32
  }
  func.func @transform_12(%arg0: i32) -> (i32, i32) {
    %c0_i32 = arith.constant 0 : i32
    %c0_i32_0 = arith.constant 0 : i32
    return %arg0, %c0_i32 : i32, i32
  }
}

</mosaic_0001>

<bundles_post_ra>
// kernel: lstm_model_forward.1
= control target key start
LH: loop header
LB: loop body
LE: loop exit
PB: predicated region body
PF: predicated region fallthrough
CT: control target
= control target key end

     0   :  { %s6799_s0 = inlined_call_operand.vmem [shape: f32[8,8,1], index: 0, kind: input, shape index: {}]   ;;  %s6800_s1 = inlined_call_operand.vmem [shape: f32[1,512], index: 1, kind: input, shape index: {}]   ;;  %s6801_s2 = inlined_call_operand.hbm [shape: bf16[128,512], index: 2, kind: input, shape index: {}]   ;;  %s6802_s3 = inlined_call_operand.vmem [shape: f32[1,512], index: 3, kind: input, shape index: {}]   ;;  %s6803_s4 = inlined_call_operand.hbm [shape: bf16[128,512], index: 4, kind: input, shape index: {}]   ;;  %s6804_s5 = inlined_call_operand.hbm [shape: bf16[128,512], index: 5, kind: input, shape index: {}]   ;;  %s6805_s6 = inlined_call_operand.vmem [shape: f32[1,512], index: 6, kind: input, shape index: {}]   ;;  %s6806_s7 = inlined_call_operand.hbm [shape: bf16[128,512], index: 7, kind: input, shape index: {}]   ;;  %s6807_s8 = inlined_call_operand.hbm [shape: bf16[128,512], index: 8, kind: input, shape index: {}]   ;;  %s6808_s9 = inlined_call_operand.vmem [shape: f32[1,512], index: 9, kind: input, shape index: {}]   ;;  %s6809_s10 = inlined_call_operand.vmem [shape: f32[1,128], index: 10, kind: input, shape index: {}]   ;;  %s6810_s11 = inlined_call_operand.<no memory space> [shape: f32[1,1], index: 11, kind: input, shape index: {}]   ;;  %s6811_s12 = inlined_call_operand.vmem [shape: f32[8,1], index: 12, kind: output, shape index: {}]  }
   0x1   :  { %v17_v0 = vstv %s6810_s11 }
   0x2   :  { %18 = vst [vmem:[#allocation4] sm:$0x1] %v17_v0 }
   0x3   :  { %19 = vsyncpa [#allocation6], 0 }
   0x4   :  { %20 = vsyncpa [#allocation8], 0 }
   0x5   :  { %21 = vsyncpa [#allocation11], 0  ;;  %s5140_s23 = smov [#allocation7]   ;;  %s5141_s25 = smov [#allocation10]  }
   0x6   :  { %s45_s24 = sshll.u32 %s5140_s23, 4  ;;  %s71_s26 = sshll.u32 %s5141_s25, 4  ;;  %s46_s24 = int_to_ptr.vmem [resolvable:$true] %s45_s24  ;;  %s5216_s26 = int_to_ptr.vmem [resolvable:$true] %s71_s26 }
   0x7   :  { %s5024_s29 = scalar_lea.hbm %s6803_s4, 4096 }
   0x8   :  { %p5025_p0 = scmp.ne.s32.totalorder %s6803_s4, %s5024_s29  ;;  %p5028_p1 = scmp.lt.u32.totalorder %s5024_s29, %s6803_s4 }
   0xa   :  { %p5030_p2 = pnand %p5028_p1, %p5025_p0 }
   0xc   :  { %5033 = shalt.err (!%p5030_p2)
}
   0xd   :  { %s5034_s15 = scalar_lea.vmem %s46_s24, 4096  ;;  %p5039_p4 = scmp.lt.s32.totalorder %s46_s24, %s46_s24 }
   0xe   :  { %p5035_p3 = scmp.ne.s32.totalorder %s46_s24, %s5034_s15  ;;  %p5040_p5 = scmp.lt.s32.totalorder %s5034_s15, %s5034_s15 }
  0x10   :  { %p5041_p6 = por %p5040_p5, %p5039_p4 }
  0x12   :  { %p5042_p7 = pnand %p5041_p6, %p5035_p3 }
  0x14   :  { %5045 = shalt.err (!%p5042_p7)
}
  0x15   :  { %s5142_s16 = smov 256   ;;  %s5143_s17 = smov 16  }
  0x16   :  { %51 = dma.hbm_to_vmem [thread:$0]  %s6803_s4, 4096, %s46_s24, [#allocation8], %s5142_s16, %s5142_s16, %s5143_s17  }
  0x17   :  { %s5046_s22 = scalar_lea.hbm %s6806_s7, 4096 }
  0x18   :  { %p5047_p8 = scmp.ne.s32.totalorder %s6806_s7, %s5046_s22  ;;  %p5050_p9 = scmp.lt.u32.totalorder %s5046_s22, %s6806_s7 }
  0x1a   :  { %p5052_p10 = pnand %p5050_p9, %p5047_p8 }
  0x1c   :  { %5055 = shalt.err (!%p5052_p10)
}
  0x1d   :  { %s5056_s29 = scalar_lea.vmem %s5216_s26, 4096  ;;  %p5061_p12 = scmp.lt.s32.totalorder %s5216_s26, %s5216_s26 }
  0x1e   :  { %p5057_p11 = scmp.ne.s32.totalorder %s5216_s26, %s5056_s29  ;;  %p5062_p13 = scmp.lt.s32.totalorder %s5056_s29, %s5056_s29 }
  0x20   :  { %p5063_p0 = por %p5062_p13, %p5061_p12 }
  0x22   :  { %p5064_p1 = pnand %p5063_p0, %p5057_p11 }
  0x24   :  { %5067 = shalt.err (!%p5064_p1)
}
  0x25   :  { %77 = dma.hbm_to_vmem [thread:$0]  %s6806_s7, 4096, %s5216_s26, [#allocation11], %s5142_s16, %s5142_s16, %s5143_s17  }
  0x26   :  { %s5144_s30 = smov [#allocation5]   ;;  %s5145_s11 = smov [#allocation9]  }
  0x27   :  { %s31_s13 = sshll.u32 %s5144_s30, 4  ;;  %s57_s14 = sshll.u32 %s5145_s11, 4  ;;  %s32_s13 = int_to_ptr.vmem [resolvable:$true] %s31_s13  ;;  %s5253_s14 = int_to_ptr.vmem [resolvable:$true] %s57_s14 }
  0x28   :  { %s5068_s19 = scalar_lea.hbm %s6801_s2, 4096 }
  0x29   :  { %p5069_p2 = scmp.ne.s32.totalorder %s6801_s2, %s5068_s19  ;;  %p5072_p3 = scmp.lt.u32.totalorder %s5068_s19, %s6801_s2 }
  0x2b   :  { %p5074_p4 = pnand %p5072_p3, %p5069_p2 }
  0x2d   :  { %5077 = shalt.err (!%p5074_p4)
}
  0x2e   :  { %s5078_s7 = scalar_lea.vmem %s32_s13, 4096  ;;  %p5083_p6 = scmp.lt.s32.totalorder %s32_s13, %s32_s13 }
  0x2f   :  { %p5079_p5 = scmp.ne.s32.totalorder %s32_s13, %s5078_s7  ;;  %p5084_p7 = scmp.lt.s32.totalorder %s5078_s7, %s5078_s7 }
  0x31   :  { %p5085_p8 = por %p5084_p7, %p5083_p6 }
  0x33   :  { %p5086_p9 = pnand %p5085_p8, %p5079_p5 }
  0x35   :  { %5089 = shalt.err (!%p5086_p9)
}
  0x36   :  { %37 = dma.hbm_to_vmem [thread:$0]  %s6801_s2, 4096, %s32_s13, [#allocation6], %s5142_s16, %s5142_s16, %s5143_s17  }
  0x37   :  { %s5090_s29 = scalar_lea.hbm %s6804_s5, 4096 }
  0x38   :  { %p5091_p10 = scmp.ne.s32.totalorder %s6804_s5, %s5090_s29  ;;  %p5094_p11 = scmp.lt.u32.totalorder %s5090_s29, %s6804_s5 }
  0x3a   :  { %p5096_p12 = pnand %p5094_p11, %p5091_p10 }
  0x3c   :  { %5099 = shalt.err (!%p5096_p12)
}
  0x3d   :  { %s5100_s15 = scalar_lea.vmem %s5253_s14, 4096  ;;  %p5105_p0 = scmp.lt.s32.totalorder %s5253_s14, %s5253_s14 }
  0x3e   :  { %p5101_p13 = scmp.ne.s32.totalorder %s5253_s14, %s5100_s15  ;;  %p5106_p1 = scmp.lt.s32.totalorder %s5100_s15, %s5100_s15 }
  0x40   :  { %p5107_p2 = por %p5106_p1, %p5105_p0 }
  0x42   :  { %p5108_p3 = pnand %p5107_p2, %p5101_p13 }
  0x44   :  { %5111 = shalt.err (!%p5108_p3)
}
  0x45   :  { %63 = dma.hbm_to_vmem [thread:$0]  %s6804_s5, 4096, %s5253_s14, [#allocation8], %s5142_s16, %s5142_s16, %s5143_s17  }
  0x46   :  { %s5146_s18 = smov [#allocation12]   ;;  %s5112_s22 = scalar_lea.hbm %s6807_s8, 4096 }
  0x47   :  { %s83_s19 = sshll.u32 %s5146_s18, 4  ;;  %p5113_p4 = scmp.ne.s32.totalorder %s6807_s8, %s5112_s22  ;;  %s84_s19 = int_to_ptr.vmem [resolvable:$true] %s83_s19 }
  0x48   :  { %p5116_p5 = scmp.lt.u32.totalorder %s5112_s22, %s6807_s8 }
  0x4a   :  { %p5118_p6 = pnand %p5116_p5, %p5113_p4 }
  0x4c   :  { %5121 = shalt.err (!%p5118_p6)
}
  0x4d   :  { %s5122_s27 = scalar_lea.vmem %s84_s19, 4096  ;;  %p5127_p8 = scmp.lt.s32.totalorder %s84_s19, %s84_s19 }
  0x4e   :  { %p5123_p7 = scmp.ne.s32.totalorder %s84_s19, %s5122_s27  ;;  %p5128_p9 = scmp.lt.s32.totalorder %s5122_s27, %s5122_s27 }
  0x50   :  { %p5129_p10 = por %p5128_p9, %p5127_p8 }
  0x52   :  { %p5130_p11 = pnand %p5129_p10, %p5123_p7 }
  0x54   :  { %5133 = shalt.err (!%p5130_p11)
}
  0x55   :  { %89 = dma.hbm_to_vmem [thread:$0]  %s6807_s8, 4096, %s84_s19, [#allocation11], %s5142_s16, %s5142_s16, %s5143_s17  }
  0x56   :  { %5134 = dma.done.wait [#allocation6], 4096  }
  0x57   :  { %5135 = vsyncadd [#allocation6], 4294963200 }
  0x58   :  { %5136 = dma.done.wait [#allocation8], 8192  }
  0x59   :  { %5137 = vsyncadd [#allocation8], 4294959104 }
  0x5a   :  { %5138 = dma.done.wait [#allocation11], 8192  }
  0x5b   :  { %5139 = vsyncadd [#allocation11], 4294959104  ;;  %v6812_v1 = vmov 0   ;;  %v112_v2 = vld [vmem:[%s6799_s0] sm:$0xff]  ;;  %v113_v3 = vld [vmem:[%s6799_s0 + $0x8] sm:$0xff]  ;;  %v162_v38 = vlaneseq  ;;  %vm4135_vm0 = vcmask 7168  }
  0x5c   :  { %4314 = vset.pattern.permute.xlu0 %v6812_v1  ;;  %548 = vmatprep.mubr.bf16.mxu0 %v6812_v1  ;;  %v116_v4 = vld [vmem:[%s6799_s0 + $0x20] sm:$0xff]  ;;  %v118_v5 = vld [vmem:[%s6799_s0 + $0x30] sm:$0xff]  ;;  %v5327_v9 = vld [vmem:[#allocation5 + $0x8] ss:$16 sps:$4 sm:$0xff]  }
  0x5d   :  { %589 = vmatprep.mubr.bf16.mxu1 %v6812_v1  ;;  %4315 = vset.pattern.permute.xlu1 %v6812_v1  ;;  %v5321_v6 = vld [vmem:[#allocation5 + $0x4] ss:$16 sps:$4 sm:$0xff]   ;;  %v5323_v7 = vld [vmem:[#allocation5 + $0xc] ss:$16 sps:$4 sm:$0xff]   ;;  %v5325_v8 = vld [vmem:[#allocation5] ss:$16 sps:$4 sm:$0xff]  }
  0x5e   :  { %123 = vperm.xlu0 %4314, %v112_v2   ;;  %516 = vmatprep.subr.bf16.mxu0 %v5321_v6  ;;  %v5333_v10 = vld [vmem:[#allocation5 + $0x24] ss:$16 sps:$4 sm:$0xff]   ;;  %v5335_v11 = vld [vmem:[#allocation5 + $0x2c] ss:$16 sps:$4 sm:$0xff]   ;;  %v5337_v12 = vld [vmem:[#allocation5 + $0x20] ss:$16 sps:$4 sm:$0xff]  }
  0x5f   :  { %557 = vmatprep.subr.bf16.mxu1 %v5323_v7  ;;  %517 = vmatpush1.bf16.msra.mxu0 %v5325_v8  ;;  %v5339_v13 = vld [vmem:[#allocation5 + $0x28] ss:$16 sps:$4 sm:$0xff]   ;;  %v5345_v14 = vld [vmem:[#allocation5 + $0x44] ss:$16 sps:$4 sm:$0xff]   ;;  %v5347_v15 = vld [vmem:[#allocation5 + $0x4c] ss:$16 sps:$4 sm:$0xff]  }
  0x60   :  { %558 = vmatpush1.bf16.msra.mxu1 %v5327_v9  ;;  %518 = vmatprep.subr.bf16.mxu0 %v5333_v10  ;;  %v5349_v16 = vld [vmem:[#allocation5 + $0x40] ss:$16 sps:$4 sm:$0xff]   ;;  %v5351_v17 = vld [vmem:[#allocation5 + $0x48] ss:$16 sps:$4 sm:$0xff]   ;;  %v5357_v18 = vld [vmem:[#allocation5 + $0x64] ss:$16 sps:$4 sm:$0xff]  }
  0x61   :  { %559 = vmatprep.subr.bf16.mxu1 %v5335_v11  ;;  %v5359_v19 = vld [vmem:[#allocation5 + $0x6c] ss:$16 sps:$4 sm:$0xff]   ;;  %v5361_v20 = vld [vmem:[#allocation5 + $0x60] ss:$16 sps:$4 sm:$0xff]   ;;  %v5363_v21 = vld [vmem:[#allocation5 + $0x68] ss:$16 sps:$4 sm:$0xff]  }
  0x62   :  { %128 = vperm.xlu0 %4314, %v113_v3   ;;  %v5369_v22 = vld [vmem:[#allocation5 + $0x84] ss:$16 sps:$4 sm:$0xff]   ;;  %v5371_v23 = vld [vmem:[#allocation5 + $0x8c] ss:$16 sps:$4 sm:$0xff]   ;;  %v5373_v24 = vld [vmem:[#allocation5 + $0x80] ss:$16 sps:$4 sm:$0xff]  }
  0x63   :  { %519 = vmatpush1.bf16.msra.mxu0 %v5337_v12  ;;  %v5375_v25 = vld [vmem:[#allocation5 + $0x88] ss:$16 sps:$4 sm:$0xff]   ;;  %v5377_v26 = vld [vmem:[#allocation5 + $0xa4] ss:$16 sps:$4 sm:$0xff]   ;;  %v5379_v27 = vld [vmem:[#allocation5 + $0xac] ss:$16 sps:$4 sm:$0xff]  }
  0x64   :  { %560 = vmatpush1.bf16.msra.mxu1 %v5339_v13  ;;  %520 = vmatprep.subr.bf16.mxu0 %v5345_v14  ;;  %v5385_v28 = vld [vmem:[#allocation5 + $0xa0] ss:$16 sps:$4 sm:$0xff]   ;;  %v5387_v29 = vld [vmem:[#allocation5 + $0xa8] ss:$16 sps:$4 sm:$0xff]   ;;  %v5391_v30 = vld [vmem:[#allocation5 + $0xc4] ss:$16 sps:$4 sm:$0xff]  }
  0x65   :  { %561 = vmatprep.subr.bf16.mxu1 %v5347_v15  ;;  %v5393_v31 = vld [vmem:[#allocation5 + $0xcc] ss:$16 sps:$4 sm:$0xff]   ;;  %v5395_v32 = vld [vmem:[#allocation5 + $0xc0] ss:$16 sps:$4 sm:$0xff]   ;;  %v5397_v33 = vld [vmem:[#allocation5 + $0xc8] ss:$16 sps:$4 sm:$0xff]  }
  0x66   :  { %143 = vperm.xlu0 %4314, %v116_v4   ;;  %v5399_v34 = vld [vmem:[#allocation5 + $0xe4] ss:$16 sps:$4 sm:$0xff]   ;;  %v5401_v35 = vld [vmem:[#allocation5 + $0xec] ss:$16 sps:$4 sm:$0xff]   ;;  %v5407_v36 = vld [vmem:[#allocation5 + $0xe0] ss:$16 sps:$4 sm:$0xff]  }
  0x67   :  { %521 = vmatpush1.bf16.msra.mxu0 %v5349_v16  ;;  %v5409_v37 = vld [vmem:[#allocation5 + $0xe8] ss:$16 sps:$4 sm:$0xff]   ;;  %v5419_v39 = vshrl.u32 %v162_v38, 7  ;;  %v5430_v42 = vld [vmem:[%s6800_s1] sm:$0xf] }
  0x68   :  { %562 = vmatpush1.bf16.msra.mxu1 %v5351_v17  ;;  %522 = vmatprep.subr.bf16.mxu0 %v5357_v18  ;;  %v5435_v43 = vld [vmem:[%s6802_s3] sm:$0xf] }
  0x69   :  { %563 = vmatprep.subr.bf16.mxu1 %v5359_v19  ;;  %v5422_v40 = vsub.s32 0, %v5419_v39  ;;  %v5425_v41 = vsub.s32 2, %v5419_v39  ;;  %v5457_v52 = vsub.s32 3, %v5419_v39 }
  0x6a   :  { %153 = vperm.xlu0 %4314, %v118_v5  }
  0x6b   :  { %523 = vmatpush1.bf16.msra.mxu0 %v5361_v20  ;;  %6830 = vst [vmem:[#allocation16_spill] sm:$0xff] %v5422_v40  ;;  %6831 = vst [vmem:[#allocation17_spill] sm:$0xff] %v5425_v41  ;;  %v5439_v44 = vrot.slane %v5430_v42, %v5422_v40  ;;  %v5443_v45 = vrot.slane %v5430_v42, %v5425_v41  ;;  %v5447_v46 = vrot.slane %v5435_v43, %v5422_v40 }
  0x6c   :  { %564 = vmatpush1.bf16.msra.mxu1 %v5363_v21  ;;  %524 = vmatprep.subr.bf16.mxu0 %v5369_v22  ;;  %v5451_v48 = vrot.slane %v5435_v43, %v5425_v41  ;;  %6832 = vst [vmem:[#allocation18_spill] sm:$0xff] %v5457_v52  ;;  %v5462_v56 = vrot.slane %v5430_v42, %v5457_v52 }
  0x6d   :  { %565 = vmatprep.subr.bf16.mxu1 %v5371_v23  ;;  %v5466_v58 = vrot.slane %v5435_v43, %v5457_v52 }
  0x6f   :  { %525 = vmatpush1.bf16.msra.mxu0 %v5373_v24 }
  0x70   :  { %566 = vmatpush1.bf16.msra.mxu1 %v5375_v25  ;;  %526 = vmatprep.subr.bf16.mxu0 %v5377_v26 }
  0x71   :  { %567 = vmatprep.subr.bf16.mxu1 %v5379_v27 }
  0x73   :  { %527 = vmatpush1.bf16.msra.mxu0 %v5385_v28 }
  0x74   :  { %568 = vmatpush1.bf16.msra.mxu1 %v5387_v29  ;;  %528 = vmatprep.subr.bf16.mxu0 %v5391_v30 }
  0x75   :  { %569 = vmatprep.subr.bf16.mxu1 %v5393_v31 }
  0x77   :  { %529 = vmatpush1.bf16.msra.mxu0 %v5395_v32 }
  0x78   :  { %570 = vmatpush1.bf16.msra.mxu1 %v5397_v33  ;;  %530 = vmatprep.subr.bf16.mxu0 %v5399_v34 }
  0x79   :  { %571 = vmatprep.subr.bf16.mxu1 %v5401_v35 }
  0x7b   :  { %531 = vmatpush1.bf16.msra.mxu0 %v5407_v36 }
  0x7c   :  { %572 = vmatpush1.bf16.msra.mxu1 %v5409_v37  ;;  %631 = vmatprep.subr.bf16.mxu0 %v5321_v6 }
  0x7d   :  { %672 = vmatprep.subr.bf16.mxu1 %v5323_v7 }
  0xdd   :  { %v124_v47 = vpop.permute.xlu0 %123 }
  0xde   :  { %v182_v49 = vmul.f32 %v5439_v44, %v124_v47  ;;  %v184_v50 = vmul.f32 %v5443_v45, %v124_v47  ;;  %v185_v59 = vmul.f32 %v5462_v56, %v124_v47 }
  0xe0   :  { %v236_v51 = vadd.f32 %v5447_v46, %v182_v49  ;;  %v238_v53 = vadd.f32 %v5451_v48, %v184_v50  ;;  %v239_v61 = vadd.f32 %v5466_v58, %v185_v59 }
  0xe1   :  { %v129_v59 = vpop.permute.xlu0 %128 }
  0xe2   :  { %v303_v54 = vsub.f32 0.0, %v236_v51  ;;  %v304_v57 = vsub.f32 0.0, %v238_v53  ;;  %v114_v51 = vld [vmem:[%s6799_s0 + $0x10] sm:$0xff]  ;;  %v115_v53 = vld [vmem:[%s6799_s0 + $0x18] sm:$0xff] }
  0xe3   :  { %133 = vperm.xlu1 %4315, %v114_v51  }
  0xe4   :  { %v305_v55 = vmul.f32 1.442695, %v303_v54  ;;  %v307_v60 = vmul.f32 1.442695, %v304_v57  ;;  %v117_v54 = vld [vmem:[%s6799_s0 + $0x28] sm:$0xff]  ;;  %v5524_v57 = vsub.s32 1, %v5419_v39 }
  0xe6   :  { %4556 = vpow2.f32 %v305_v55  ;;  %v119_v55 = vld [vmem:[%s6799_s0 + $0x38] sm:$0xff]  ;;  %6834 = vst [vmem:[#allocation20_spill] sm:$0xff] %v5524_v57 }
  0xe7   :  { %4558 = vpow2.f32 %v307_v60  ;;  %138 = vperm.xlu1 %4315, %v115_v53   ;;  %v5528_v60 = vrot.slane %v5430_v42, %v5524_v57 }
  0xe8   :  { %4560 = vtanh.f32 %v239_v61  ;;  %v186_v61 = vmul.f32 %v5439_v44, %v129_v59 }
  0xeb   :  { %148 = vperm.xlu1 %4315, %v117_v54  }
  0xef   :  { %158 = vperm.xlu1 %4315, %v119_v55  }
  0xf0   :  { %v4557_v62 = vpop.eup %4556 }
  0xf1   :  { %v309_v63 = vadd.f32 1.0, %v4557_v62  ;;  %v4559_v0 = vpop.eup %4558  ;;  %v187_v62 = vmul.f32 %v5528_v60, %v129_v59 }
  0xf2   :  { %v310_v2 = vadd.f32 1.0, %v4559_v0  ;;  %v4561_v3 = vpop.eup %4560  ;;  %v240_v0 = vadd.f32 %v5447_v46, %v186_v61 }
  0xf3   :  { %4562 = vrcp.f32 %v309_v63  ;;  %v5534_v63 = vrot.slane %v5435_v43, %v5524_v57 }
  0xf4   :  { %4564 = vrcp.f32 %v310_v2 }
  0xf5   :  { %v241_v39 = vadd.f32 %v5534_v63, %v187_v62  ;;  %v189_v62 = vmul.f32 %v5462_v56, %v129_v59 }
  0xfd   :  { %v4563_v4 = vpop.eup %4562 }
  0xfe   :  { %v5470_v5 = vmul.f32 %v4563_v4, %v4561_v3  ;;  %v4565_v38 = vpop.eup %4564 }
 0x100   :  { %4566 = vtanh.f32 %v5470_v5 }
 0x10a   :  { %v4567_v49 = vpop.eup %4566 }
 0x10b   :  { %v5473_v47 = vmul.f32 %v4567_v49, %v4565_v38  ;;  %v188_v38 = vmul.f32 %v5443_v45, %v129_v59 }
 0x10d   :  { %6833 = vst [vmem:[#allocation19_spill] sm:$0xff] %v5473_v47  ;;  %v355_v50 = vpack.c.bf16 %v5473_v47, %v5473_v47  ;;  %v242_v57 = vadd.f32 %v5451_v48, %v188_v38 }
 0x10f   :  { %549 = vmatmul.mubr.bf16.vlgmr.msra.gmra.mrb[0].mxu0 %v355_v50  ;;  %590 = vmatmul.mubr.bf16.vlgmr.msra.gmra.mrb[0].mxu1 %v355_v50 }
 0x110   :  { %632 = vmatpush1.bf16.msra.mxu0 %v5325_v8  ;;  %673 = vmatpush1.bf16.msra.mxu1 %v5327_v9 }
 0x111   :  { %633 = vmatprep.subr.bf16.mxu0 %v5333_v10  ;;  %674 = vmatprep.subr.bf16.mxu1 %v5335_v11 }
 0x112   :  { %663 = vmatprep.mubr.bf16.mxu0 %v6812_v1  ;;  %704 = vmatprep.mubr.bf16.mxu1 %v6812_v1 }
 0x114   :  { %634 = vmatpush1.bf16.msra.mxu0 %v5337_v12  ;;  %675 = vmatpush1.bf16.msra.mxu1 %v5339_v13 }
 0x115   :  { %635 = vmatprep.subr.bf16.mxu0 %v5345_v14  ;;  %676 = vmatprep.subr.bf16.mxu1 %v5347_v15 }
 0x118   :  { %636 = vmatpush1.bf16.msra.mxu0 %v5349_v16  ;;  %677 = vmatpush1.bf16.msra.mxu1 %v5351_v17 }
 0x119   :  { %637 = vmatprep.subr.bf16.mxu0 %v5357_v18  ;;  %678 = vmatprep.subr.bf16.mxu1 %v5359_v19 }
 0x11c   :  { %638 = vmatpush1.bf16.msra.mxu0 %v5361_v20  ;;  %679 = vmatpush1.bf16.msra.mxu1 %v5363_v21 }
 0x11d   :  { %639 = vmatprep.subr.bf16.mxu0 %v5369_v22  ;;  %680 = vmatprep.subr.bf16.mxu1 %v5371_v23 }
 0x120   :  { %640 = vmatpush1.bf16.msra.mxu0 %v5373_v24  ;;  %681 = vmatpush1.bf16.msra.mxu1 %v5375_v25 }
 0x121   :  { %641 = vmatprep.subr.bf16.mxu0 %v5377_v26  ;;  %682 = vmatprep.subr.bf16.mxu1 %v5379_v27 }
 0x124   :  { %642 = vmatpush1.bf16.msra.mxu0 %v5385_v28  ;;  %683 = vmatpush1.bf16.msra.mxu1 %v5387_v29 }
 0x125   :  { %643 = vmatprep.subr.bf16.mxu0 %v5391_v30  ;;  %684 = vmatprep.subr.bf16.mxu1 %v5393_v31 }
 0x128   :  { %644 = vmatpush1.bf16.msra.mxu0 %v5395_v32  ;;  %685 = vmatpush1.bf16.msra.mxu1 %v5397_v33 }
 0x129   :  { %645 = vmatprep.subr.bf16.mxu0 %v5399_v34  ;;  %686 = vmatprep.subr.bf16.mxu1 %v5401_v35 }
 0x12c   :  { %646 = vmatpush1.bf16.msra.mxu0 %v5407_v36  ;;  %687 = vmatpush1.bf16.msra.mxu1 %v5409_v37 }
 0x12d   :  { %746 = vmatprep.subr.bf16.mxu0 %v5321_v6  ;;  %787 = vmatprep.subr.bf16.mxu1 %v5323_v7 }
 0x1e2   :  { %v550_v2 = vpop.f32.mrb[0].mxu0  ;;  %v591_v3 = vpop.f32.mrb[0].mxu1 }
 0x1e3   :  { %v598_v4 = vadd.f32 %v550_v2, %v240_v0  ;;  %v552_v49 = vpop.f32.mrb[1].mxu0  ;;  %v593_v42 = vpop.f32.mrb[1].mxu1  ;;  %v600_v41 = vadd.f32 %v591_v3, %v242_v57  ;;  %v243_v2 = vadd.f32 %v5466_v58, %v189_v62 }
 0x1e4   :  { %v599_v50 = vadd.f32 %v552_v49, %v241_v39  ;;  %v554_v51 = vpop.f32.mrb[2].mxu0  ;;  %v595_v53 = vpop.f32.mrb[2].mxu1 }
 0x1e5   :  { %v602_v54 = vsub.f32 0.0, %v598_v4  ;;  %v555_v55 = vpop.f32.mrb[3].mxu0  ;;  %v596_v1 = vpop.f32.mrb[3].mxu1  ;;  %v604_v0 = vsub.f32 0.0, %v600_v41  ;;  %v601_v40 = vadd.f32 %v593_v42, %v243_v2 }
 0x1e6   :  { %v603_v52 = vsub.f32 0.0, %v599_v50 }
 0x1e7   :  { %v605_v43 = vmul.f32 1.442695, %v602_v54  ;;  %v609_v39 = vmul.f32 1.442695, %v604_v0 }
 0x1e8   :  { %v607_v61 = vmul.f32 1.442695, %v603_v52 }
 0x1e9   :  { %4568 = vpow2.f32 %v605_v43  ;;  %v134_v43 = vpop.permute.xlu1 %133 }
 0x1ea   :  { %4570 = vpow2.f32 %v607_v61  ;;  %v190_v61 = vmul.f32 %v5439_v44, %v134_v43  ;;  %v191_v62 = vmul.f32 %v5528_v60, %v134_v43 }
 0x1eb   :  { %4572 = vtanh.f32 %v601_v40 }
 0x1ec   :  { %4574 = vpow2.f32 %v609_v39  ;;  %v244_v0 = vadd.f32 %v5447_v46, %v190_v61  ;;  %v245_v2 = vadd.f32 %v5534_v63, %v191_v62  ;;  %v192_v39 = vmul.f32 %v5443_v45, %v134_v43 }
 0x1ed   :  { %v193_v62 = vmul.f32 %v5462_v56, %v134_v43 }
 0x1f3   :  { %v4569_v49 = vpop.eup %4568 }
 0x1f4   :  { %v611_v51 = vadd.f32 1.0, %v4569_v49  ;;  %v4571_v4 = vpop.eup %4570 }
 0x1f5   :  { %v612_v1 = vadd.f32 1.0, %v4571_v4  ;;  %v4573_v38 = vpop.eup %4572 }
 0x1f6   :  { %4576 = vrcp.f32 %v611_v51  ;;  %v4575_v52 = vpop.eup %4574 }
 0x1f7   :  { %4578 = vrcp.f32 %v612_v1  ;;  %v613_v59 = vadd.f32 1.0, %v4575_v52 }
 0x1f9   :  { %4580 = vrcp.f32 %v613_v59  ;;  %v246_v59 = vadd.f32 %v5451_v48, %v192_v39 }
 0x200   :  { %v4577_v50 = vpop.eup %4576 }
 0x201   :  { %v619_v57 = vmul.f32 %v4577_v50, %v4573_v38  ;;  %v4579_v3 = vpop.eup %4578 }
 0x202   :  { %v618_v41 = vmul.f32 %v4579_v3, %v5470_v5  ;;  %v6836_v5 = vmov 0  }
 0x203   :  { %v4581_v42 = vpop.eup %4580 }
 0x204   :  { %v5543_v53 = vadd.f32 %v619_v57, %v618_v41 }
 0x206   :  { %4582 = vtanh.f32 %v5543_v53 }
 0x210   :  { %v4583_v40 = vpop.eup %4582 }
 0x211   :  { %v5546_v54 = vmul.f32 %v4583_v40, %v4581_v42 }
 0x213   :  { %6835 = vst [vmem:[#allocation21_spill] sm:$0xff] %v5546_v54  ;;  %v630_v55 = vpack.c.bf16 %v5546_v54, %v5546_v54 }
 0x215   :  { %664 = vmatmul.mubr.bf16.vlgmr.msra.gmra.mrb[4].mxu0 %v630_v55  ;;  %705 = vmatmul.mubr.bf16.vlgmr.msra.gmra.mrb[4].mxu1 %v630_v55 }
 0x216   :  { %747 = vmatpush1.bf16.msra.mxu0 %v5325_v8  ;;  %788 = vmatpush1.bf16.msra.mxu1 %v5327_v9 }
 0x217   :  { %748 = vmatprep.subr.bf16.mxu0 %v5333_v10  ;;  %789 = vmatprep.subr.bf16.mxu1 %v5335_v11 }
 0x218   :  { %778 = vmatprep.mubr.bf16.mxu0 %v6836_v5  ;;  %819 = vmatprep.mubr.bf16.mxu1 %v6836_v5 }
 0x21a   :  { %749 = vmatpush1.bf16.msra.mxu0 %v5337_v12  ;;  %790 = vmatpush1.bf16.msra.mxu1 %v5339_v13 }
 0x21b   :  { %750 = vmatprep.subr.bf16.mxu0 %v5345_v14  ;;  %791 = vmatprep.subr.bf16.mxu1 %v5347_v15 }
 0x21e   :  { %751 = vmatpush1.bf16.msra.mxu0 %v5349_v16  ;;  %792 = vmatpush1.bf16.msra.mxu1 %v5351_v17 }
 0x21f   :  { %752 = vmatprep.subr.bf16.mxu0 %v5357_v18  ;;  %793 = vmatprep.subr.bf16.mxu1 %v5359_v19 }
 0x222   :  { %753 = vmatpush1.bf16.msra.mxu0 %v5361_v20  ;;  %794 = vmatpush1.bf16.msra.mxu1 %v5363_v21 }
 0x223   :  { %754 = vmatprep.subr.bf16.mxu0 %v5369_v22  ;;  %795 = vmatprep.subr.bf16.mxu1 %v5371_v23 }
 0x226   :  { %755 = vmatpush1.bf16.msra.mxu0 %v5373_v24  ;;  %796 = vmatpush1.bf16.msra.mxu1 %v5375_v25 }
 0x227   :  { %756 = vmatprep.subr.bf16.mxu0 %v5377_v26  ;;  %797 = vmatprep.subr.bf16.mxu1 %v5379_v27 }
 0x22a   :  { %757 = vmatpush1.bf16.msra.mxu0 %v5385_v28  ;;  %798 = vmatpush1.bf16.msra.mxu1 %v5387_v29 }
 0x22b   :  { %758 = vmatprep.subr.bf16.mxu0 %v5391_v30  ;;  %799 = vmatprep.subr.bf16.mxu1 %v5393_v31 }
 0x22e   :  { %759 = vmatpush1.bf16.msra.mxu0 %v5395_v32  ;;  %800 = vmatpush1.bf16.msra.mxu1 %v5397_v33 }
 0x22f   :  { %760 = vmatprep.subr.bf16.mxu0 %v5399_v34  ;;  %801 = vmatprep.subr.bf16.mxu1 %v5401_v35 }
 0x232   :  { %761 = vmatpush1.bf16.msra.mxu0 %v5407_v36  ;;  %802 = vmatpush1.bf16.msra.mxu1 %v5409_v37 }
 0x233   :  { %861 = vmatprep.subr.bf16.mxu0 %v5321_v6  ;;  %902 = vmatprep.subr.bf16.mxu1 %v5323_v7 }
 0x2e8   :  { %v665_v49 = vpop.f32.mrb[4].mxu0  ;;  %v706_v51 = vpop.f32.mrb[4].mxu1 }
 0x2e9   :  { %v713_v4 = vadd.f32 %v665_v49, %v244_v0  ;;  %v667_v1 = vpop.f32.mrb[5].mxu0  ;;  %v708_v38 = vpop.f32.mrb[5].mxu1  ;;  %v715_v54 = vadd.f32 %v706_v51, %v246_v59  ;;  %v247_v0 = vadd.f32 %v5466_v58, %v193_v62 }
 0x2ea   :  { %v714_v52 = vadd.f32 %v667_v1, %v245_v2  ;;  %v669_v50 = vpop.f32.mrb[6].mxu0  ;;  %v710_v57 = vpop.f32.mrb[6].mxu1 }
 0x2eb   :  { %v717_v3 = vsub.f32 0.0, %v713_v4  ;;  %v670_v41 = vpop.f32.mrb[7].mxu0  ;;  %v711_v42 = vpop.f32.mrb[7].mxu1  ;;  %v719_v49 = vsub.f32 0.0, %v715_v54  ;;  %v716_v47 = vadd.f32 %v708_v38, %v247_v0 }
 0x2ec   :  { %v718_v40 = vsub.f32 0.0, %v714_v52 }
 0x2ed   :  { %v720_v55 = vmul.f32 1.442695, %v717_v3  ;;  %v724_v2 = vmul.f32 1.442695, %v719_v49 }
 0x2ee   :  { %v722_v61 = vmul.f32 1.442695, %v718_v40 }
 0x2ef   :  { %4584 = vpow2.f32 %v720_v55 }
 0x2f0   :  { %4586 = vpow2.f32 %v722_v61 }
 0x2f1   :  { %4588 = vtanh.f32 %v716_v47 }
 0x2f2   :  { %4590 = vpow2.f32 %v724_v2 }
 0x2f9   :  { %v4585_v1 = vpop.eup %4584 }
 0x2fa   :  { %v726_v50 = vadd.f32 1.0, %v4585_v1  ;;  %v4587_v4 = vpop.eup %4586 }
 0x2fb   :  { %v727_v39 = vadd.f32 1.0, %v4587_v4  ;;  %v4589_v52 = vpop.eup %4588 }
 0x2fc   :  { %4592 = vrcp.f32 %v726_v50  ;;  %v4591_v57 = vpop.eup %4590 }
 0x2fd   :  { %4594 = vrcp.f32 %v727_v39  ;;  %v728_v51 = vadd.f32 1.0, %v4591_v57 }
 0x2ff   :  { %4596 = vrcp.f32 %v728_v51 }
 0x306   :  { %v4593_v3 = vpop.eup %4592 }
 0x307   :  { %v734_v43 = vmul.f32 %v4593_v3, %v4589_v52  ;;  %v4595_v41 = vpop.eup %4594 }
 0x308   :  { %v733_v59 = vmul.f32 %v4595_v41, %v5543_v53  ;;  %v139_v53 = vpop.permute.xlu1 %138 }
 0x309   :  { %v4597_v54 = vpop.eup %4596  ;;  %v194_v55 = vmul.f32 %v5439_v44, %v139_v53  ;;  %v195_v61 = vmul.f32 %v5528_v60, %v139_v53  ;;  %v196_v50 = vmul.f32 %v5443_v45, %v139_v53 }
 0x30a   :  { %v5593_v42 = vadd.f32 %v734_v43, %v733_v59 }
 0x30b   :  { %v248_v62 = vadd.f32 %v5447_v46, %v194_v55  ;;  %v249_v2 = vadd.f32 %v5534_v63, %v195_v61  ;;  %v250_v59 = vadd.f32 %v5451_v48, %v196_v50 }
 0x30c   :  { %4598 = vtanh.f32 %v5593_v42 }
 0x316   :  { %v4599_v47 = vpop.eup %4598 }
 0x317   :  { %v5596_v38 = vmul.f32 %v4599_v47, %v4597_v54 }
 0x319   :  { %v745_v40 = vpack.c.bf16 %v5596_v38, %v5596_v38 }
 0x31b   :  { %779 = vmatmul.mubr.bf16.vlgmr.msra.gmra.mrb[8].mxu0 %v745_v40  ;;  %820 = vmatmul.mubr.bf16.vlgmr.msra.gmra.mrb[8].mxu1 %v745_v40  ;;  %v197_v40 = vmul.f32 %v5462_v56, %v139_v53 }
 0x31c   :  { %862 = vmatpush1.bf16.msra.mxu0 %v5325_v8  ;;  %903 = vmatpush1.bf16.msra.mxu1 %v5327_v9 }
 0x31d   :  { %863 = vmatprep.subr.bf16.mxu0 %v5333_v10  ;;  %904 = vmatprep.subr.bf16.mxu1 %v5335_v11  ;;  %v251_v61 = vadd.f32 %v5466_v58, %v197_v40 }
 0x31e   :  { %893 = vmatprep.mubr.bf16.mxu0 %v6836_v5  ;;  %934 = vmatprep.mubr.bf16.mxu1 %v6836_v5 }
 0x320   :  { %864 = vmatpush1.bf16.msra.mxu0 %v5337_v12  ;;  %905 = vmatpush1.bf16.msra.mxu1 %v5339_v13 }
 0x321   :  { %865 = vmatprep.subr.bf16.mxu0 %v5345_v14  ;;  %906 = vmatprep.subr.bf16.mxu1 %v5347_v15 }
 0x324   :  { %866 = vmatpush1.bf16.msra.mxu0 %v5349_v16  ;;  %907 = vmatpush1.bf16.msra.mxu1 %v5351_v17 }
 0x325   :  { %867 = vmatprep.subr.bf16.mxu0 %v5357_v18  ;;  %908 = vmatprep.subr.bf16.mxu1 %v5359_v19 }
 0x328   :  { %868 = vmatpush1.bf16.msra.mxu0 %v5361_v20  ;;  %909 = vmatpush1.bf16.msra.mxu1 %v5363_v21 }
 0x329   :  { %869 = vmatprep.subr.bf16.mxu0 %v5369_v22  ;;  %910 = vmatprep.subr.bf16.mxu1 %v5371_v23 }
 0x32c   :  { %870 = vmatpush1.bf16.msra.mxu0 %v5373_v24  ;;  %911 = vmatpush1.bf16.msra.mxu1 %v5375_v25 }
 0x32d   :  { %871 = vmatprep.subr.bf16.mxu0 %v5377_v26  ;;  %912 = vmatprep.subr.bf16.mxu1 %v5379_v27 }
 0x330   :  { %872 = vmatpush1.bf16.msra.mxu0 %v5385_v28  ;;  %913 = vmatpush1.bf16.msra.mxu1 %v5387_v29 }
 0x331   :  { %873 = vmatprep.subr.bf16.mxu0 %v5391_v30  ;;  %914 = vmatprep.subr.bf16.mxu1 %v5393_v31 }
 0x334   :  { %874 = vmatpush1.bf16.msra.mxu0 %v5395_v32  ;;  %915 = vmatpush1.bf16.msra.mxu1 %v5397_v33 }
 0x335   :  { %875 = vmatprep.subr.bf16.mxu0 %v5399_v34  ;;  %916 = vmatprep.subr.bf16.mxu1 %v5401_v35 }
 0x338   :  { %876 = vmatpush1.bf16.msra.mxu0 %v5407_v36  ;;  %917 = vmatpush1.bf16.msra.mxu1 %v5409_v37 }
 0x339   :  { %976 = vmatprep.subr.bf16.mxu0 %v5321_v6  ;;  %1017 = vmatprep.subr.bf16.mxu1 %v5323_v7 }
 0x3ee   :  { %v780_v0 = vpop.f32.mrb[8].mxu0  ;;  %v821_v49 = vpop.f32.mrb[8].mxu1 }
 0x3ef   :  { %v828_v1 = vadd.f32 %v780_v0, %v248_v62  ;;  %v782_v4 = vpop.f32.mrb[9].mxu0  ;;  %v823_v39 = vpop.f32.mrb[9].mxu1  ;;  %v830_v47 = vadd.f32 %v821_v49, %v250_v59 }
 0x3f0   :  { %v829_v52 = vadd.f32 %v782_v4, %v249_v2  ;;  %v784_v6 = vpop.f32.mrb[10].mxu0  ;;  %v825_v57 = vpop.f32.mrb[10].mxu1  ;;  %v831_v62 = vadd.f32 %v823_v39, %v251_v61 }
 0x3f1   :  { %v832_v7 = vsub.f32 0.0, %v828_v1  ;;  %v785_v3 = vpop.f32.mrb[11].mxu0  ;;  %v826_v43 = vpop.f32.mrb[11].mxu1  ;;  %v834_v55 = vsub.f32 0.0, %v830_v47 }
 0x3f2   :  { %v833_v41 = vsub.f32 0.0, %v829_v52 }
 0x3f3   :  { %v835_v51 = vmul.f32 1.442695, %v832_v7  ;;  %v839_v0 = vmul.f32 1.442695, %v834_v55 }
 0x3f4   :  { %v837_v54 = vmul.f32 1.442695, %v833_v41 }
 0x3f5   :  { %4600 = vpow2.f32 %v835_v51 }
 0x3f6   :  { %4602 = vpow2.f32 %v837_v54 }
 0x3f7   :  { %4604 = vtanh.f32 %v831_v62 }
 0x3f8   :  { %4606 = vpow2.f32 %v839_v0 }
 0x3ff   :  { %v4601_v2 = vpop.eup %4600 }
 0x400   :  { %v841_v4 = vadd.f32 1.0, %v4601_v2  ;;  %v4603_v1 = vpop.eup %4602 }
 0x401   :  { %v842_v52 = vadd.f32 1.0, %v4603_v1  ;;  %v4605_v50 = vpop.eup %4604 }
 0x402   :  { %4608 = vrcp.f32 %v841_v4  ;;  %v4607_v6 = vpop.eup %4606 }
 0x403   :  { %4610 = vrcp.f32 %v842_v52  ;;  %v843_v53 = vadd.f32 1.0, %v4607_v6 }
 0x405   :  { %4612 = vrcp.f32 %v843_v53  ;;  %v5710_v53 = vld [vmem:[#allocation5 + $0x24] ss:$16 sps:$4 sm:$0xff]  }
 0x40c   :  { %v4609_v57 = vpop.eup %4608 }
 0x40d   :  { %v849_v49 = vmul.f32 %v4609_v57, %v4605_v50  ;;  %v4611_v7 = vpop.eup %4610 }
 0x40e   :  { %v848_v3 = vmul.f32 %v4611_v7, %v5593_v42  ;;  %v5707_v7 = vld [vmem:[#allocation5 + $0x8] ss:$16 sps:$4 sm:$0xff]  }
 0x40f   :  { %v4613_v39 = vpop.eup %4612 }
 0x410   :  { %v5643_v43 = vadd.f32 %v849_v49, %v848_v3  ;;  %v5704_v49 = vld [vmem:[#allocation5] ss:$16 sps:$4 sm:$0xff]   ;;  %v5713_v3 = vld [vmem:[#allocation5 + $0x2c] ss:$16 sps:$4 sm:$0xff]  }
 0x412   :  { %4614 = vtanh.f32 %v5643_v43 }
 0x41c   :  { %v4615_v41 = vpop.eup %4614 }
 0x41d   :  { %v5646_v51 = vmul.f32 %v4615_v41, %v4613_v39  ;;  %v5721_v39 = vld [vmem:[#allocation5 + $0x28] ss:$16 sps:$4 sm:$0xff]   ;;  %v5724_v41 = vld [vmem:[#allocation5 + $0x44] ss:$16 sps:$4 sm:$0xff]  }
 0x41f   :  { %v860_v59 = vpack.c.bf16 %v5646_v51, %v5646_v51 }
 0x421   :  { %894 = vmatmul.mubr.bf16.vlgmr.msra.gmra.mrb[12].mxu0 %v860_v59  ;;  %935 = vmatmul.mubr.bf16.vlgmr.msra.gmra.mrb[12].mxu1 %v860_v59  ;;  %v5727_v59 = vld [vmem:[#allocation5 + $0x4c] ss:$16 sps:$4 sm:$0xff]  }
 0x422   :  { %977 = vmatpush1.bf16.msra.mxu0 %v5325_v8  ;;  %1018 = vmatpush1.bf16.msra.mxu1 %v5327_v9  ;;  %v5682_v8 = vld [vmem:[#allocation5 + $0x4] ss:$16 sps:$4 sm:$0xff]   ;;  %v5685_v9 = vld [vmem:[#allocation5 + $0xc] ss:$16 sps:$4 sm:$0xff]  }
 0x423   :  { %978 = vmatprep.subr.bf16.mxu0 %v5333_v10  ;;  %1019 = vmatprep.subr.bf16.mxu1 %v5335_v11  ;;  %v144_v10 = vpop.permute.xlu0 %143 }
 0x424   :  { %1008 = vmatprep.mubr.bf16.mxu0 %v6836_v5  ;;  %1049 = vmatprep.mubr.bf16.mxu1 %v6836_v5  ;;  %v198_v11 = vmul.f32 %v5439_v44, %v144_v10 }
 0x426   :  { %979 = vmatpush1.bf16.msra.mxu0 %v5337_v12  ;;  %1020 = vmatpush1.bf16.msra.mxu1 %v5339_v13  ;;  %v199_v12 = vmul.f32 %v5528_v60, %v144_v10  ;;  %v252_v13 = vadd.f32 %v5447_v46, %v198_v11  ;;  %v5733_v11 = vld [vmem:[#allocation5 + $0x48] ss:$16 sps:$4 sm:$0xff]  }
 0x427   :  { %980 = vmatprep.subr.bf16.mxu0 %v5345_v14  ;;  %1021 = vmatprep.subr.bf16.mxu1 %v5347_v15 }
 0x42a   :  { %981 = vmatpush1.bf16.msra.mxu0 %v5349_v16  ;;  %1022 = vmatpush1.bf16.msra.mxu1 %v5351_v17  ;;  %v253_v16 = vadd.f32 %v5534_v63, %v199_v12  ;;  %v5736_v12 = vld [vmem:[#allocation5 + $0x64] ss:$16 sps:$4 sm:$0xff]  }
 0x42b   :  { %982 = vmatprep.subr.bf16.mxu0 %v5357_v18  ;;  %1023 = vmatprep.subr.bf16.mxu1 %v5359_v19  ;;  %v200_v18 = vmul.f32 %v5443_v45, %v144_v10 }
 0x42e   :  { %983 = vmatpush1.bf16.msra.mxu0 %v5361_v20  ;;  %1024 = vmatpush1.bf16.msra.mxu1 %v5363_v21 }
 0x42f   :  { %984 = vmatprep.subr.bf16.mxu0 %v5369_v22  ;;  %1025 = vmatprep.subr.bf16.mxu1 %v5371_v23 }
 0x432   :  { %985 = vmatpush1.bf16.msra.mxu0 %v5373_v24  ;;  %1026 = vmatpush1.bf16.msra.mxu1 %v5375_v25 }
 0x433   :  { %986 = vmatprep.subr.bf16.mxu0 %v5377_v26  ;;  %1027 = vmatprep.subr.bf16.mxu1 %v5379_v27 }
 0x436   :  { %987 = vmatpush1.bf16.msra.mxu0 %v5385_v28  ;;  %1028 = vmatpush1.bf16.msra.mxu1 %v5387_v29  ;;  %v254_v29 = vadd.f32 %v5451_v48, %v200_v18  ;;  %v5754_v18 = vld [vmem:[#allocation5 + $0x80] ss:$16 sps:$4 sm:$0xff]  }
 0x437   :  { %988 = vmatprep.subr.bf16.mxu0 %v5391_v30  ;;  %1029 = vmatprep.subr.bf16.mxu1 %v5393_v31 }
 0x43a   :  { %989 = vmatpush1.bf16.msra.mxu0 %v5395_v32  ;;  %1030 = vmatpush1.bf16.msra.mxu1 %v5397_v33  ;;  %v201_v32 = vmul.f32 %v5462_v56, %v144_v10  ;;  %v5730_v10 = vld [vmem:[#allocation5 + $0x40] ss:$16 sps:$4 sm:$0xff]  }
 0x43b   :  { %990 = vmatprep.subr.bf16.mxu0 %v5399_v34  ;;  %1031 = vmatprep.subr.bf16.mxu1 %v5401_v35 }
 0x43c   :  { %v255_v34 = vadd.f32 %v5466_v58, %v201_v32  ;;  %v149_v32 = vpop.permute.xlu1 %148 }
 0x43e   :  { %991 = vmatpush1.bf16.msra.mxu0 %v5407_v36  ;;  %1032 = vmatpush1.bf16.msra.mxu1 %v5409_v37 }
 0x43f   :  { %1091 = vmatprep.subr.bf16.mxu0 %v5682_v8  ;;  %1132 = vmatprep.subr.bf16.mxu1 %v5685_v9 }
 0x4f4   :  { %v895_v14 = vpop.f32.mrb[12].mxu0  ;;  %v936_v15 = vpop.f32.mrb[12].mxu1 }
 0x4f5   :  { %v943_v17 = vadd.f32 %v895_v14, %v252_v13  ;;  %v897_v19 = vpop.f32.mrb[13].mxu0  ;;  %v938_v20 = vpop.f32.mrb[13].mxu1  ;;  %v945_v31 = vadd.f32 %v936_v15, %v254_v29  ;;  %v5739_v13 = vld [vmem:[#allocation5 + $0x6c] ss:$16 sps:$4 sm:$0xff]   ;;  %v5742_v14 = vld [vmem:[#allocation5 + $0x60] ss:$16 sps:$4 sm:$0xff]  }
 0x4f6   :  { %v944_v21 = vadd.f32 %v897_v19, %v253_v16  ;;  %v899_v22 = vpop.f32.mrb[14].mxu0  ;;  %v940_v23 = vpop.f32.mrb[14].mxu1  ;;  %v946_v35 = vadd.f32 %v938_v20, %v255_v34  ;;  %v5745_v15 = vld [vmem:[#allocation5 + $0x68] ss:$16 sps:$4 sm:$0xff]   ;;  %v5748_v16 = vld [vmem:[#allocation5 + $0x84] ss:$16 sps:$4 sm:$0xff]   ;;  %v203_v34 = vmul.f32 %v5528_v60, %v149_v32 }
 0x4f7   :  { %v947_v24 = vsub.f32 0.0, %v943_v17  ;;  %v900_v25 = vpop.f32.mrb[15].mxu0  ;;  %v941_v26 = vpop.f32.mrb[15].mxu1  ;;  %v949_v33 = vsub.f32 0.0, %v945_v31  ;;  %v5751_v17 = vld [vmem:[#allocation5 + $0x8c] ss:$16 sps:$4 sm:$0xff]  }
 0x4f8   :  { %v948_v27 = vsub.f32 0.0, %v944_v21  ;;  %v5757_v19 = vld [vmem:[#allocation5 + $0x88] ss:$16 sps:$4 sm:$0xff]   ;;  %v5760_v20 = vld [vmem:[#allocation5 + $0xa4] ss:$16 sps:$4 sm:$0xff]  }
 0x4f9   :  { %v950_v28 = vmul.f32 1.442695, %v947_v24  ;;  %v954_v36 = vmul.f32 1.442695, %v949_v33  ;;  %v5763_v21 = vld [vmem:[#allocation5 + $0xac] ss:$16 sps:$4 sm:$0xff]   ;;  %v202_v33 = vmul.f32 %v5439_v44, %v149_v32 }
 0x4fa   :  { %v952_v30 = vmul.f32 1.442695, %v948_v27  ;;  %v5766_v22 = vld [vmem:[#allocation5 + $0xa0] ss:$16 sps:$4 sm:$0xff]   ;;  %v5769_v23 = vld [vmem:[#allocation5 + $0xa8] ss:$16 sps:$4 sm:$0xff]  }
 0x4fb   :  { %4616 = vpow2.f32 %v950_v28  ;;  %v5772_v24 = vld [vmem:[#allocation5 + $0xc4] ss:$16 sps:$4 sm:$0xff]   ;;  %v5775_v25 = vld [vmem:[#allocation5 + $0xcc] ss:$16 sps:$4 sm:$0xff]   ;;  %v5778_v26 = vld [vmem:[#allocation5 + $0xc0] ss:$16 sps:$4 sm:$0xff]  }
 0x4fc   :  { %4618 = vpow2.f32 %v952_v30  ;;  %v5781_v27 = vld [vmem:[#allocation5 + $0xc8] ss:$16 sps:$4 sm:$0xff]   ;;  %v5784_v28 = vld [vmem:[#allocation5 + $0xe4] ss:$16 sps:$4 sm:$0xff]   ;;  %v5787_v29 = vld [vmem:[#allocation5 + $0xec] ss:$16 sps:$4 sm:$0xff]  }
 0x4fd   :  { %4620 = vtanh.f32 %v946_v35  ;;  %v5790_v30 = vld [vmem:[#allocation5 + $0xe0] ss:$16 sps:$4 sm:$0xff]   ;;  %v5793_v31 = vld [vmem:[#allocation5 + $0xe8] ss:$16 sps:$4 sm:$0xff]   ;;  %v256_v35 = vadd.f32 %v5447_v46, %v202_v33 }
 0x4fe   :  { %4622 = vpow2.f32 %v954_v36 }
 0x505   :  { %v4617_v37 = vpop.eup %4616 }
 0x506   :  { %v956_v42 = vadd.f32 1.0, %v4617_v37  ;;  %v4619_v54 = vpop.eup %4618 }
 0x507   :  { %v957_v47 = vadd.f32 1.0, %v4619_v54  ;;  %v4621_v40 = vpop.eup %4620 }
 0x508   :  { %4624 = vrcp.f32 %v956_v42  ;;  %v4623_v55 = vpop.eup %4622  ;;  %v257_v42 = vadd.f32 %v5534_v63, %v203_v34  ;;  %v205_v34 = vmul.f32 %v5462_v56, %v149_v32 }
 0x509   :  { %4626 = vrcp.f32 %v957_v47  ;;  %v958_v2 = vadd.f32 1.0, %v4623_v55  ;;  %v204_v47 = vmul.f32 %v5443_v45, %v149_v32 }
 0x50b   :  { %4628 = vrcp.f32 %v958_v2 }
 0x512   :  { %v4625_v61 = vpop.eup %4624 }
 0x513   :  { %v964_v62 = vmul.f32 %v4625_v61, %v4621_v40  ;;  %v4627_v0 = vpop.eup %4626 }
 0x514   :  { %v963_v4 = vmul.f32 %v4627_v0, %v5643_v43  ;;  %v5718_v43 = vld [vmem:[#allocation5 + $0x20] ss:$16 sps:$4 sm:$0xff]  }
 0x515   :  { %v4629_v52 = vpop.eup %4628 }
 0x516   :  { %v5697_v1 = vadd.f32 %v964_v62, %v963_v4 }
 0x518   :  { %4630 = vtanh.f32 %v5697_v1 }
 0x522   :  { %v4631_v50 = vpop.eup %4630 }
 0x523   :  { %v5700_v6 = vmul.f32 %v4631_v50, %v4629_v52  ;;  %v258_v50 = vadd.f32 %v5451_v48, %v204_v47 }
 0x525   :  { %6837 = vst [vmem:[#allocation22_spill] sm:$0xff] %v5700_v6  ;;  %v975_v57 = vpack.c.bf16 %v5700_v6, %v5700_v6 }
 0x527   :  { %1009 = vmatmul.mubr.bf16.vlgmr.msra.gmra.mrb[16].mxu0 %v975_v57  ;;  %1050 = vmatmul.mubr.bf16.vlgmr.msra.gmra.mrb[16].mxu1 %v975_v57 }
 0x528   :  { %1092 = vmatpush1.bf16.msra.mxu0 %v5704_v49  ;;  %1133 = vmatpush1.bf16.msra.mxu1 %v5707_v7 }
 0x529   :  { %1093 = vmatprep.subr.bf16.mxu0 %v5710_v53  ;;  %1134 = vmatprep.subr.bf16.mxu1 %v5713_v3 }
 0x52a   :  { %1123 = vmatprep.mubr.bf16.mxu0 %v6836_v5  ;;  %1164 = vmatprep.mubr.bf16.mxu1 %v6836_v5 }
 0x52c   :  { %1094 = vmatpush1.bf16.msra.mxu0 %v5718_v43  ;;  %1135 = vmatpush1.bf16.msra.mxu1 %v5721_v39 }
 0x52d   :  { %1095 = vmatprep.subr.bf16.mxu0 %v5724_v41  ;;  %1136 = vmatprep.subr.bf16.mxu1 %v5727_v59 }
 0x530   :  { %1096 = vmatpush1.bf16.msra.mxu0 %v5730_v10  ;;  %1137 = vmatpush1.bf16.msra.mxu1 %v5733_v11 }
 0x531   :  { %1097 = vmatprep.subr.bf16.mxu0 %v5736_v12  ;;  %1138 = vmatprep.subr.bf16.mxu1 %v5739_v13 }
 0x534   :  { %1098 = vmatpush1.bf16.msra.mxu0 %v5742_v14  ;;  %1139 = vmatpush1.bf16.msra.mxu1 %v5745_v15 }
 0x535   :  { %1099 = vmatprep.subr.bf16.mxu0 %v5748_v16  ;;  %1140 = vmatprep.subr.bf16.mxu1 %v5751_v17 }
 0x538   :  { %1100 = vmatpush1.bf16.msra.mxu0 %v5754_v18  ;;  %1141 = vmatpush1.bf16.msra.mxu1 %v5757_v19 }
 0x539   :  { %1101 = vmatprep.subr.bf16.mxu0 %v5760_v20  ;;  %1142 = vmatprep.subr.bf16.mxu1 %v5763_v21 }
 0x53c   :  { %1102 = vmatpush1.bf16.msra.mxu0 %v5766_v22  ;;  %1143 = vmatpush1.bf16.msra.mxu1 %v5769_v23 }
 0x53d   :  { %1103 = vmatprep.subr.bf16.mxu0 %v5772_v24  ;;  %1144 = vmatprep.subr.bf16.mxu1 %v5775_v25 }
 0x540   :  { %1104 = vmatpush1.bf16.msra.mxu0 %v5778_v26  ;;  %1145 = vmatpush1.bf16.msra.mxu1 %v5781_v27 }
 0x541   :  { %1105 = vmatprep.subr.bf16.mxu0 %v5784_v28  ;;  %1146 = vmatprep.subr.bf16.mxu1 %v5787_v29 }
 0x544   :  { %1106 = vmatpush1.bf16.msra.mxu0 %v5790_v30  ;;  %1147 = vmatpush1.bf16.msra.mxu1 %v5793_v31 }
 0x545   :  { %1206 = vmatprep.subr.bf16.mxu0 %v5682_v8  ;;  %1247 = vmatprep.subr.bf16.mxu1 %v5685_v9 }
 0x5fa   :  { %v1010_v36 = vpop.f32.mrb[16].mxu0  ;;  %v1051_v37 = vpop.f32.mrb[16].mxu1 }
 0x5fb   :  { %v1058_v54 = vadd.f32 %v1010_v36, %v256_v35  ;;  %v1012_v40 = vpop.f32.mrb[17].mxu0  ;;  %v1053_v55 = vpop.f32.mrb[17].mxu1  ;;  %v1060_v33 = vadd.f32 %v1051_v37, %v258_v50  ;;  %v259_v36 = vadd.f32 %v5466_v58, %v205_v34 }
 0x5fc   :  { %v1059_v61 = vadd.f32 %v1012_v40, %v257_v42  ;;  %v1014_v8 = vpop.f32.mrb[18].mxu0  ;;  %v1055_v62 = vpop.f32.mrb[18].mxu1 }
 0x5fd   :  { %v1062_v9 = vsub.f32 0.0, %v1058_v54  ;;  %v1015_v0 = vpop.f32.mrb[19].mxu0  ;;  %v1056_v2 = vpop.f32.mrb[19].mxu1  ;;  %v1064_v35 = vsub.f32 0.0, %v1060_v33  ;;  %v1061_v6 = vadd.f32 %v1053_v55, %v259_v36 }
 0x5fe   :  { %v1063_v4 = vsub.f32 0.0, %v1059_v61 }
 0x5ff   :  { %v1065_v52 = vmul.f32 1.442695, %v1062_v9  ;;  %v1069_v42 = vmul.f32 1.442695, %v1064_v35 }
 0x600   :  { %v1067_v57 = vmul.f32 1.442695, %v1063_v4 }
 0x601   :  { %4632 = vpow2.f32 %v1065_v52 }
 0x602   :  { %4634 = vpow2.f32 %v1067_v57 }
 0x603   :  { %4636 = vtanh.f32 %v1061_v6 }
 0x604   :  { %4638 = vpow2.f32 %v1069_v42 }
 0x60b   :  { %v4633_v40 = vpop.eup %4632 }
 0x60c   :  { %v1071_v8 = vadd.f32 1.0, %v4633_v40  ;;  %v4635_v54 = vpop.eup %4634 }
 0x60d   :  { %v1072_v61 = vadd.f32 1.0, %v4635_v54  ;;  %v4637_v47 = vpop.eup %4636 }
 0x60e   :  { %4640 = vrcp.f32 %v1071_v8  ;;  %v4639_v62 = vpop.eup %4638 }
 0x60f   :  { %4642 = vrcp.f32 %v1072_v61  ;;  %v1073_v32 = vadd.f32 1.0, %v4639_v62 }
 0x611   :  { %4644 = vrcp.f32 %v1073_v32 }
 0x618   :  { %v4641_v9 = vpop.eup %4640 }
 0x619   :  { %v1079_v37 = vmul.f32 %v4641_v9, %v4637_v47  ;;  %v4643_v0 = vpop.eup %4642 }
 0x61a   :  { %v1078_v2 = vmul.f32 %v4643_v0, %v5697_v1  ;;  %v4366_v1 = vld [vmem:[#allocation7 + $0x4] ss:$16 sps:$4 sm:$0xff]   ;;  %v4367_v0 = vld [vmem:[#allocation7 + $0x8] ss:$16 sps:$4 sm:$0xff]  }
 0x61b   :  { %v4645_v55 = vpop.eup %4644 }
 0x61c   :  { %v5807_v4 = vadd.f32 %v1079_v37, %v1078_v2  ;;  %v4364_v37 = vld [vmem:[#allocation7] ss:$16 sps:$4 sm:$0xff]   ;;  %v4372_v2 = vld [vmem:[#allocation7 + $0x24] ss:$16 sps:$4 sm:$0xff]  }
 0x61e   :  { %4646 = vtanh.f32 %v5807_v4 }
 0x628   :  { %v4647_v6 = vpop.eup %4646 }
 0x629   :  { %v5810_v52 = vmul.f32 %v4647_v6, %v4645_v55  ;;  %v4375_v55 = vld [vmem:[#allocation7 + $0x2c] ss:$16 sps:$4 sm:$0xff]   ;;  %v4373_v6 = vld [vmem:[#allocation7 + $0x28] ss:$16 sps:$4 sm:$0xff]  }
 0x62b   :  { %v1090_v50 = vpack.c.bf16 %v5810_v52, %v5810_v52 }
 0x62d   :  { %1124 = vmatmul.mubr.bf16.vlgmr.msra.gmra.mrb[20].mxu0 %v1090_v50  ;;  %1165 = vmatmul.mubr.bf16.vlgmr.msra.gmra.mrb[20].mxu1 %v1090_v50  ;;  %v4378_v50 = vld [vmem:[#allocation7 + $0x44] ss:$16 sps:$4 sm:$0xff]  }
 0x62e   :  { %1207 = vmatpush1.bf16.msra.mxu0 %v5704_v49  ;;  %1248 = vmatpush1.bf16.msra.mxu1 %v5707_v7  ;;  %v4369_v49 = vld [vmem:[#allocation7 + $0xc] ss:$16 sps:$4 sm:$0xff]   ;;  %v154_v7 = vpop.permute.xlu0 %153 }
 0x62f   :  { %1208 = vmatprep.subr.bf16.mxu0 %v5710_v53  ;;  %1249 = vmatprep.subr.bf16.mxu1 %v5713_v3  ;;  %v206_v53 = vmul.f32 %v5439_v44, %v154_v7  ;;  %v207_v3 = vmul.f32 %v5528_v60, %v154_v7 }
 0x630   :  { %1238 = vmatprep.mubr.bf16.mxu0 %v6836_v5  ;;  %1279 = vmatprep.mubr.bf16.mxu1 %v6836_v5 }
 0x632   :  { %1209 = vmatpush1.bf16.msra.mxu0 %v5718_v43  ;;  %1250 = vmatpush1.bf16.msra.mxu1 %v5721_v39  ;;  %v260_v43 = vadd.f32 %v5447_v46, %v206_v53  ;;  %v4384_v53 = vld [vmem:[#allocation7 + $0x64] ss:$16 sps:$4 sm:$0xff]  }
 0x633   :  { %1210 = vmatprep.subr.bf16.mxu0 %v5724_v41  ;;  %1251 = vmatprep.subr.bf16.mxu1 %v5727_v59  ;;  %v261_v59 = vadd.f32 %v5534_v63, %v207_v3  ;;  %v4387_v3 = vld [vmem:[#allocation7 + $0x6c] ss:$16 sps:$4 sm:$0xff]  }
 0x636   :  { %1211 = vmatpush1.bf16.msra.mxu0 %v5730_v10  ;;  %1252 = vmatpush1.bf16.msra.mxu1 %v5733_v11  ;;  %v208_v11 = vmul.f32 %v5443_v45, %v154_v7 }
 0x637   :  { %1212 = vmatprep.subr.bf16.mxu0 %v5736_v12  ;;  %1253 = vmatprep.subr.bf16.mxu1 %v5739_v13 }
 0x63a   :  { %1213 = vmatpush1.bf16.msra.mxu0 %v5742_v14  ;;  %1254 = vmatpush1.bf16.msra.mxu1 %v5745_v15 }
 0x63b   :  { %1214 = vmatprep.subr.bf16.mxu0 %v5748_v16  ;;  %1255 = vmatprep.subr.bf16.mxu1 %v5751_v17 }
 0x63e   :  { %1215 = vmatpush1.bf16.msra.mxu0 %v5754_v18  ;;  %1256 = vmatpush1.bf16.msra.mxu1 %v5757_v19 }
 0x63f   :  { %1216 = vmatprep.subr.bf16.mxu0 %v5760_v20  ;;  %1257 = vmatprep.subr.bf16.mxu1 %v5763_v21 }
 0x642   :  { %1217 = vmatpush1.bf16.msra.mxu0 %v5766_v22  ;;  %1258 = vmatpush1.bf16.msra.mxu1 %v5769_v23  ;;  %v262_v22 = vadd.f32 %v5451_v48, %v208_v11  ;;  %v4391_v11 = vld [vmem:[#allocation7 + $0x88] ss:$16 sps:$4 sm:$0xff]  }
 0x643   :  { %1218 = vmatprep.subr.bf16.mxu0 %v5772_v24  ;;  %1259 = vmatprep.subr.bf16.mxu1 %v5775_v25  ;;  %v209_v25 = vmul.f32 %v5462_v56, %v154_v7  ;;  %v4379_v7 = vld [vmem:[#allocation7 + $0x48] ss:$16 sps:$4 sm:$0xff]  }
 0x646   :  { %1219 = vmatpush1.bf16.msra.mxu0 %v5778_v26  ;;  %1260 = vmatpush1.bf16.msra.mxu1 %v5781_v27  ;;  %v263_v27 = vadd.f32 %v5466_v58, %v209_v25  ;;  %v6839_v25 = vld [vmem:[#allocation21_spill] sm:$0xff] }
 0x647   :  { %1220 = vmatprep.subr.bf16.mxu0 %v5784_v28  ;;  %1261 = vmatprep.subr.bf16.mxu1 %v5787_v29 }
 0x64a   :  { %1221 = vmatpush1.bf16.msra.mxu0 %v5790_v30  ;;  %1262 = vmatpush1.bf16.msra.mxu1 %v5793_v31 }
 0x64b   :  { %1541 = vmatprep.subr.bf16.mxu0 %v4366_v1  ;;  %1614 = vmatprep.subr.bf16.mxu1 %v4369_v49  ;;  %v4381_v1 = vld [vmem:[#allocation7 + $0x4c] ss:$16 sps:$4 sm:$0xff]   ;;  %v4376_v49 = vld [vmem:[#allocation7 + $0x40] ss:$16 sps:$4 sm:$0xff]  }
 0x700   :  { %v1125_v39 = vpop.f32.mrb[20].mxu0  ;;  %v1166_v41 = vpop.f32.mrb[20].mxu1 }
 0x701   :  { %v1173_v10 = vadd.f32 %v1125_v39, %v260_v43  ;;  %v1127_v12 = vpop.f32.mrb[21].mxu0  ;;  %v1168_v13 = vpop.f32.mrb[21].mxu1  ;;  %v1175_v24 = vadd.f32 %v1166_v41, %v262_v22  ;;  %v4382_v43 = vld [vmem:[#allocation7 + $0x60] ss:$16 sps:$4 sm:$0xff]   ;;  %v4385_v39 = vld [vmem:[#allocation7 + $0x68] ss:$16 sps:$4 sm:$0xff]  }
 0x702   :  { %v1174_v14 = vadd.f32 %v1127_v12, %v261_v59  ;;  %v1129_v15 = vpop.f32.mrb[22].mxu0  ;;  %v1170_v16 = vpop.f32.mrb[22].mxu1  ;;  %v1176_v28 = vadd.f32 %v1168_v13, %v263_v27  ;;  %v4390_v41 = vld [vmem:[#allocation7 + $0x84] ss:$16 sps:$4 sm:$0xff]   ;;  %v4393_v59 = vld [vmem:[#allocation7 + $0x8c] ss:$16 sps:$4 sm:$0xff]   ;;  %v1324_v27 = vpack.c.bf16 %v5646_v51, %v5596_v38 }
 0x703   :  { %v1177_v17 = vsub.f32 0.0, %v1173_v10  ;;  %v1130_v18 = vpop.f32.mrb[23].mxu0  ;;  %v1171_v19 = vpop.f32.mrb[23].mxu1  ;;  %v1179_v26 = vsub.f32 0.0, %v1175_v24  ;;  %v4388_v10 = vld [vmem:[#allocation7 + $0x80] ss:$16 sps:$4 sm:$0xff]  }
 0x704   :  { %v1178_v20 = vsub.f32 0.0, %v1174_v14  ;;  %v4396_v12 = vld [vmem:[#allocation7 + $0xa4] ss:$16 sps:$4 sm:$0xff]   ;;  %v4399_v13 = vld [vmem:[#allocation7 + $0xac] ss:$16 sps:$4 sm:$0xff]  }
 0x705   :  { %v1180_v21 = vmul.f32 1.442695, %v1177_v17  ;;  %v1184_v29 = vmul.f32 1.442695, %v1179_v26  ;;  %v4394_v14 = vld [vmem:[#allocation7 + $0xa0] ss:$16 sps:$4 sm:$0xff]  }
 0x706   :  { %v1182_v23 = vmul.f32 1.442695, %v1178_v20  ;;  %v4397_v15 = vld [vmem:[#allocation7 + $0xa8] ss:$16 sps:$4 sm:$0xff]   ;;  %v4402_v16 = vld [vmem:[#allocation7 + $0xc4] ss:$16 sps:$4 sm:$0xff]  }
 0x707   :  { %4648 = vpow2.f32 %v1180_v21  ;;  %v4405_v17 = vld [vmem:[#allocation7 + $0xcc] ss:$16 sps:$4 sm:$0xff]   ;;  %v4400_v18 = vld [vmem:[#allocation7 + $0xc0] ss:$16 sps:$4 sm:$0xff]   ;;  %v4403_v19 = vld [vmem:[#allocation7 + $0xc8] ss:$16 sps:$4 sm:$0xff]  }
 0x708   :  { %4650 = vpow2.f32 %v1182_v23  ;;  %v4408_v20 = vld [vmem:[#allocation7 + $0xe4] ss:$16 sps:$4 sm:$0xff]   ;;  %v4411_v21 = vld [vmem:[#allocation7 + $0xec] ss:$16 sps:$4 sm:$0xff]   ;;  %v4406_v22 = vld [vmem:[#allocation7 + $0xe0] ss:$16 sps:$4 sm:$0xff]  }
 0x709   :  { %4652 = vtanh.f32 %v1176_v28  ;;  %v4409_v23 = vld [vmem:[#allocation7 + $0xe8] ss:$16 sps:$4 sm:$0xff]   ;;  %v6840_v28 = vld [vmem:[#allocation22_spill] sm:$0xff] }
 0x70a   :  { %4654 = vpow2.f32 %v1184_v29  ;;  %v6838_v24 = vld [vmem:[#allocation19_spill] sm:$0xff]  ;;  %v1325_v29 = vpack.c.bf16 %v5810_v52, %v6840_v28  ;;  %v5880_v38 = vld [vmem:[#allocation9] ss:$16 sps:$4 sm:$0xff]   ;;  %v5888_v52 = vld [vmem:[#allocation9 + $0x24] ss:$16 sps:$4 sm:$0xff]  }
 0x70b   :  { %v1323_v26 = vpack.c.bf16 %v6839_v25, %v6838_v24  ;;  %v5882_v51 = vld [vmem:[#allocation9 + $0x8] ss:$16 sps:$4 sm:$0xff]  }
 0x711   :  { %v4649_v30 = vpop.eup %4648 }
 0x712   :  { %v1186_v31 = vadd.f32 1.0, %v4649_v30  ;;  %v4651_v57 = vpop.eup %4650  ;;  %v5876_v30 = vld [vmem:[#allocation9 + $0x4] ss:$16 sps:$4 sm:$0xff]  }
 0x713   :  { %v1187_v33 = vadd.f32 1.0, %v4651_v57  ;;  %v4653_v34 = vpop.eup %4652  ;;  %v5890_v57 = vld [vmem:[#allocation9 + $0x2c] ss:$16 sps:$4 sm:$0xff]  }
 0x714   :  { %4656 = vrcp.f32 %v1186_v31  ;;  %v4655_v35 = vpop.eup %4654  ;;  %v5878_v31 = vld [vmem:[#allocation9 + $0xc] ss:$16 sps:$4 sm:$0xff]  }
 0x715   :  { %4658 = vrcp.f32 %v1187_v33  ;;  %v1188_v8 = vadd.f32 1.0, %v4655_v35  ;;  %v5892_v33 = vld [vmem:[#allocation9 + $0x20] ss:$16 sps:$4 sm:$0xff]   ;;  %v5900_v35 = vld [vmem:[#allocation9 + $0x44] ss:$16 sps:$4 sm:$0xff]  }
 0x717   :  { %4660 = vrcp.f32 %v1188_v8  ;;  %v5912_v8 = vld [vmem:[#allocation9 + $0x64] ss:$16 sps:$4 sm:$0xff]  }
 0x71e   :  { %v4657_v36 = vpop.eup %4656 }
 0x71f   :  { %v1194_v42 = vmul.f32 %v4657_v36, %v4653_v34  ;;  %v4659_v40 = vpop.eup %4658  ;;  %v5894_v34 = vld [vmem:[#allocation9 + $0x28] ss:$16 sps:$4 sm:$0xff]   ;;  %v5902_v36 = vld [vmem:[#allocation9 + $0x4c] ss:$16 sps:$4 sm:$0xff]  }
 0x720   :  { %v1193_v54 = vmul.f32 %v4659_v40, %v5807_v4  ;;  %v4370_v4 = vld [vmem:[#allocation7 + $0x20] ss:$16 sps:$4 sm:$0xff]   ;;  %v5906_v40 = vld [vmem:[#allocation9 + $0x48] ss:$16 sps:$4 sm:$0xff]  }
 0x721   :  { %v4661_v47 = vpop.eup %4660 }
 0x722   :  { %v5855_v61 = vadd.f32 %v1194_v42, %v1193_v54  ;;  %v5904_v42 = vld [vmem:[#allocation9 + $0x40] ss:$16 sps:$4 sm:$0xff]   ;;  %v5914_v54 = vld [vmem:[#allocation9 + $0x6c] ss:$16 sps:$4 sm:$0xff]  }
 0x724   :  { %4662 = vtanh.f32 %v5855_v61 }
 0x72e   :  { %v4663_v62 = vpop.eup %4662 }
 0x72f   :  { %v5858_v9 = vmul.f32 %v4663_v62, %v4661_v47  ;;  %v5916_v47 = vld [vmem:[#allocation9 + $0x60] ss:$16 sps:$4 sm:$0xff]   ;;  %v5918_v62 = vld [vmem:[#allocation9 + $0x68] ss:$16 sps:$4 sm:$0xff]  }
 0x731   :  { %v1205_v32 = vpack.c.bf16 %v5858_v9, %v5858_v9 }
 0x733   :  { %1239 = vmatmul.mubr.bf16.vlgmr.msra.gmra.mrb[24].mxu0 %v1205_v32  ;;  %1280 = vmatmul.mubr.bf16.vlgmr.msra.gmra.mrb[24].mxu1 %v1205_v32  ;;  %v5928_v32 = vld [vmem:[#allocation9 + $0x80] ss:$16 sps:$4 sm:$0xff]  }
 0x734   :  { %1542 = vmatpush1.bf16.msra.mxu0 %v4364_v37  ;;  %1615 = vmatpush1.bf16.msra.mxu1 %v4367_v0  ;;  %v5924_v37 = vld [vmem:[#allocation9 + $0x84] ss:$16 sps:$4 sm:$0xff]   ;;  %v5926_v0 = vld [vmem:[#allocation9 + $0x8c] ss:$16 sps:$4 sm:$0xff]  }
 0x735   :  { %1543 = vmatprep.subr.bf16.mxu0 %v4372_v2  ;;  %1616 = vmatprep.subr.bf16.mxu1 %v4375_v55  ;;  %v5930_v2 = vld [vmem:[#allocation9 + $0x88] ss:$16 sps:$4 sm:$0xff]   ;;  %v5934_v55 = vld [vmem:[#allocation9 + $0xa4] ss:$16 sps:$4 sm:$0xff]  }
 0x736   :  { %1573 = vmatprep.mubr.bf16.mxu0 %v6836_v5  ;;  %1646 = vmatprep.mubr.bf16.mxu1 %v6836_v5 }
 0x738   :  { %1544 = vmatpush1.bf16.msra.mxu0 %v4370_v4  ;;  %1617 = vmatpush1.bf16.msra.mxu1 %v4373_v6  ;;  %v5936_v4 = vld [vmem:[#allocation9 + $0xac] ss:$16 sps:$4 sm:$0xff]   ;;  %v5940_v6 = vld [vmem:[#allocation9 + $0xa0] ss:$16 sps:$4 sm:$0xff]  }
 0x739   :  { %1545 = vmatprep.subr.bf16.mxu0 %v4378_v50  ;;  %1618 = vmatprep.subr.bf16.mxu1 %v4381_v1  ;;  %v5942_v50 = vld [vmem:[#allocation9 + $0xa8] ss:$16 sps:$4 sm:$0xff]   ;;  %v5946_v1 = vld [vmem:[#allocation9 + $0xc4] ss:$16 sps:$4 sm:$0xff]  }
 0x73c   :  { %1546 = vmatpush1.bf16.msra.mxu0 %v4376_v49  ;;  %1619 = vmatpush1.bf16.msra.mxu1 %v4379_v7  ;;  %v5948_v49 = vld [vmem:[#allocation9 + $0xcc] ss:$16 sps:$4 sm:$0xff]   ;;  %v5952_v7 = vld [vmem:[#allocation9 + $0xc0] ss:$16 sps:$4 sm:$0xff]  }
 0x73d   :  { %1547 = vmatprep.subr.bf16.mxu0 %v4384_v53  ;;  %1620 = vmatprep.subr.bf16.mxu1 %v4387_v3  ;;  %v5954_v53 = vld [vmem:[#allocation9 + $0xc8] ss:$16 sps:$4 sm:$0xff]   ;;  %v5958_v3 = vld [vmem:[#allocation9 + $0xe4] ss:$16 sps:$4 sm:$0xff]  }
 0x740   :  { %1548 = vmatpush1.bf16.msra.mxu0 %v4382_v43  ;;  %1621 = vmatpush1.bf16.msra.mxu1 %v4385_v39  ;;  %v5960_v43 = vld [vmem:[#allocation9 + $0xec] ss:$16 sps:$4 sm:$0xff]   ;;  %v5964_v39 = vld [vmem:[#allocation9 + $0xe0] ss:$16 sps:$4 sm:$0xff]  }
 0x741   :  { %1549 = vmatprep.subr.bf16.mxu0 %v4390_v41  ;;  %1622 = vmatprep.subr.bf16.mxu1 %v4393_v59  ;;  %v5966_v41 = vld [vmem:[#allocation9 + $0xe8] ss:$16 sps:$4 sm:$0xff]   ;;  %v159_v59 = vpop.permute.xlu1 %158 }
 0x744   :  { %1550 = vmatpush1.bf16.msra.mxu0 %v4388_v10  ;;  %1623 = vmatpush1.bf16.msra.mxu1 %v4391_v11  ;;  %v210_v10 = vmul.f32 %v5439_v44, %v159_v59  ;;  %v211_v11 = vmul.f32 %v5528_v60, %v159_v59 }
 0x745   :  { %1551 = vmatprep.subr.bf16.mxu0 %v4396_v12  ;;  %1624 = vmatprep.subr.bf16.mxu1 %v4399_v13 }
 0x746   :  { %v264_v12 = vadd.f32 %v5447_v46, %v210_v10 }
 0x748   :  { %1552 = vmatpush1.bf16.msra.mxu0 %v4394_v14  ;;  %1625 = vmatpush1.bf16.msra.mxu1 %v4397_v15  ;;  %v265_v15 = vadd.f32 %v5534_v63, %v211_v11  ;;  %v213_v63 = vmul.f32 %v5462_v56, %v159_v59 }
 0x749   :  { %1553 = vmatprep.subr.bf16.mxu0 %v4402_v16  ;;  %1626 = vmatprep.subr.bf16.mxu1 %v4405_v17  ;;  %v212_v16 = vmul.f32 %v5443_v45, %v159_v59 }
 0x74a   :  { %v267_v28 = vadd.f32 %v5466_v58, %v213_v63 }
 0x74b   :  { %v266_v60 = vadd.f32 %v5451_v48, %v212_v16  ;;  %v5985_v48 = vld [vmem:[%s6805_s6] sm:$0xf] }
 0x74c   :  { %1554 = vmatpush1.bf16.msra.mxu0 %v4400_v18  ;;  %1627 = vmatpush1.bf16.msra.mxu1 %v4403_v19 }
 0x74d   :  { %1555 = vmatprep.subr.bf16.mxu0 %v4408_v20  ;;  %1628 = vmatprep.subr.bf16.mxu1 %v4411_v21 }
 0x750   :  { %1556 = vmatpush1.bf16.msra.mxu0 %v4406_v22  ;;  %1629 = vmatpush1.bf16.msra.mxu1 %v4409_v23 }
 0x751   :  { %1934 = vmatprep.subr.bf16.mxu0 %v5876_v30  ;;  %1975 = vmatprep.subr.bf16.mxu1 %v5878_v31 }
 0x753   :  { %1574 = vmatmul.mubr.bf16.vlgmr.msra.gmra.mrb[28].mxu0 %v1323_v26  ;;  %1647 = vmatmul.mubr.bf16.vlgmr.msra.gmra.mrb[28].mxu1 %v1323_v26 }
 0x754   :  { %1583 = vmatprep.mubr.bf16.mxu0 %v6836_v5  ;;  %1656 = vmatprep.mubr.bf16.mxu1 %v6836_v5 }
 0x755   :  { %1935 = vmatpush1.bf16.msra.mxu0 %v5880_v38  ;;  %1976 = vmatpush1.bf16.msra.mxu1 %v5882_v51 }
 0x756   :  { %1936 = vmatprep.subr.bf16.mxu0 %v5888_v52  ;;  %1977 = vmatprep.subr.bf16.mxu1 %v5890_v57 }
 0x759   :  { %1937 = vmatpush1.bf16.msra.mxu0 %v5892_v33  ;;  %1978 = vmatpush1.bf16.msra.mxu1 %v5894_v34 }
 0x75a   :  { %1938 = vmatprep.subr.bf16.mxu0 %v5900_v35  ;;  %1979 = vmatprep.subr.bf16.mxu1 %v5902_v36 }
 0x75b   :  { %1584 = vmatmul.mubr.bf16.gmra.mrb[32].mxu0 %v1324_v27  ;;  %1657 = vmatmul.mubr.bf16.gmra.mrb[32].mxu1 %v1324_v27 }
 0x75c   :  { %1593 = vmatprep.mubr.bf16.mxu0 %v6836_v5  ;;  %1666 = vmatprep.mubr.bf16.mxu1 %v6836_v5 }
 0x75d   :  { %1939 = vmatpush1.bf16.msra.mxu0 %v5904_v42  ;;  %1980 = vmatpush1.bf16.msra.mxu1 %v5906_v40 }
 0x75e   :  { %1940 = vmatprep.subr.bf16.mxu0 %v5912_v8  ;;  %1981 = vmatprep.subr.bf16.mxu1 %v5914_v54 }
 0x761   :  { %1941 = vmatpush1.bf16.msra.mxu0 %v5916_v47  ;;  %1982 = vmatpush1.bf16.msra.mxu1 %v5918_v62 }
 0x762   :  { %1942 = vmatprep.subr.bf16.mxu0 %v5924_v37  ;;  %1983 = vmatprep.subr.bf16.mxu1 %v5926_v0 }
 0x763   :  { %1594 = vmatmul.mubr.bf16.gmra.mrb[36].mxu0 %v1325_v29  ;;  %1667 = vmatmul.mubr.bf16.gmra.mrb[36].mxu1 %v1325_v29 }
 0x764   :  { %1603 = vmatprep.mubr.bf16.mxu0 %v6836_v5  ;;  %1676 = vmatprep.mubr.bf16.mxu1 %v6836_v5 }
 0x765   :  { %1943 = vmatpush1.bf16.msra.mxu0 %v5928_v32  ;;  %1984 = vmatpush1.bf16.msra.mxu1 %v5930_v2 }
 0x766   :  { %1944 = vmatprep.subr.bf16.mxu0 %v5934_v55  ;;  %1985 = vmatprep.subr.bf16.mxu1 %v5936_v4 }
 0x769   :  { %1945 = vmatpush1.bf16.msra.mxu0 %v5940_v6  ;;  %1986 = vmatpush1.bf16.msra.mxu1 %v5942_v50 }
 0x76a   :  { %1946 = vmatprep.subr.bf16.mxu0 %v5946_v1  ;;  %1987 = vmatprep.subr.bf16.mxu1 %v5948_v49 }
 0x76d   :  { %1947 = vmatpush1.bf16.msra.mxu0 %v5952_v7  ;;  %1988 = vmatpush1.bf16.msra.mxu1 %v5954_v53 }
 0x76e   :  { %1948 = vmatprep.subr.bf16.mxu0 %v5958_v3  ;;  %1989 = vmatprep.subr.bf16.mxu1 %v5960_v43 }
 0x771   :  { %1949 = vmatpush1.bf16.msra.mxu0 %v5964_v39  ;;  %1990 = vmatpush1.bf16.msra.mxu1 %v5966_v41 }
 0x772   :  { %2047 = vmatprep.subr.bf16.mxu0 %v5876_v30  ;;  %2088 = vmatprep.subr.bf16.mxu1 %v5878_v31 }
 0x806   :  { %v1240_v13 = vpop.f32.mrb[24].mxu0  ;;  %v1281_v14 = vpop.f32.mrb[24].mxu1 }
 0x807   :  { %v1288_v17 = vadd.f32 %v1240_v13, %v264_v12  ;;  %v1242_v18 = vpop.f32.mrb[25].mxu0  ;;  %v1283_v19 = vpop.f32.mrb[25].mxu1  ;;  %v1290_v27 = vadd.f32 %v1281_v14, %v266_v60  ;;  %v6841_v14 = vld [vmem:[#allocation16_spill] sm:$0xff] }
 0x808   :  { %v1289_v20 = vadd.f32 %v1242_v18, %v265_v15  ;;  %v1244_v21 = vpop.f32.mrb[26].mxu0  ;;  %v1285_v22 = vpop.f32.mrb[26].mxu1  ;;  %v1291_v29 = vadd.f32 %v1283_v19, %v267_v28  ;;  %v5989_v58 = vrot.slane %v5985_v48, %v6841_v14  ;;  %v6842_v18 = vld [vmem:[#allocation17_spill] sm:$0xff] }
 0x809   :  { %v1292_v23 = vsub.f32 0.0, %v1288_v17  ;;  %v1245_v24 = vpop.f32.mrb[27].mxu0  ;;  %v1286_v25 = vpop.f32.mrb[27].mxu1  ;;  %v1294_v45 = vsub.f32 0.0, %v1290_v27  ;;  %v5993_v19 = vrot.slane %v5985_v48, %v6842_v18 }
 0x80a   :  { %v1293_v44 = vsub.f32 0.0, %v1289_v20 }
 0x80b   :  { %v1295_v26 = vmul.f32 1.442695, %v1292_v23  ;;  %v1299_v10 = vmul.f32 1.442695, %v1294_v45 }
 0x80c   :  { %v1297_v46 = vmul.f32 1.442695, %v1293_v44 }
 0x80d   :  { %4664 = vpow2.f32 %v1295_v26 }
 0x80e   :  { %4666 = vpow2.f32 %v1297_v46 }
 0x80f   :  { %4668 = vtanh.f32 %v1291_v29 }
 0x810   :  { %4670 = vpow2.f32 %v1299_v10 }
 0x817   :  { %v4665_v11 = vpop.eup %4664 }
 0x818   :  { %v1301_v12 = vadd.f32 1.0, %v4665_v11  ;;  %v4667_v13 = vpop.eup %4666 }
 0x819   :  { %v1302_v15 = vadd.f32 1.0, %v4667_v13  ;;  %v4669_v56 = vpop.eup %4668 }
 0x81a   :  { %4672 = vrcp.f32 %v1301_v12  ;;  %v4671_v59 = vpop.eup %4670 }
 0x81b   :  { %4674 = vrcp.f32 %v1302_v15  ;;  %v1303_v21 = vadd.f32 1.0, %v4671_v59 }
 0x81d   :  { %4676 = vrcp.f32 %v1303_v21 }
 0x824   :  { %v4673_v16 = vpop.eup %4672 }
 0x825   :  { %v1309_v17 = vmul.f32 %v4673_v16, %v4669_v56  ;;  %v4675_v20 = vpop.eup %4674 }
 0x826   :  { %v1575_v22 = vpop.f32.mrb[28].mxu0  ;;  %v1648_v23 = vpop.f32.mrb[28].mxu1  ;;  %v1308_v24 = vmul.f32 %v4675_v20, %v5855_v61 }
 0x827   :  { %v1576_v25 = vadd.f32 %v1575_v22, %v5989_v58  ;;  %v1577_v44 = vpop.f32.mrb[29].mxu0  ;;  %v1650_v26 = vpop.f32.mrb[29].mxu1  ;;  %v1649_v45 = vadd.f32 %v1648_v23, %v5993_v19 }
 0x828   :  { %v5997_v60 = vpop.f32.mrb[30].mxu0  ;;  %v5999_v46 = vpop.f32.mrb[30].mxu1  ;;  %v1310_v27 = vadd.f32 %v1309_v17, %v1308_v24  ;;  %v6846_v17 = vld [vmem:[#allocation18_spill] sm:$0xff] }
 0x829   :  { %v1722_v63 = vsub.f32 0.0, %v1576_v25  ;;  %v6002_v28 = vpop.f32.mrb[31].mxu0  ;;  %v6004_v29 = vpop.f32.mrb[31].mxu1  ;;  %v1723_v61 = vsub.f32 0.0, %v1649_v45  ;;  %v6020_v20 = vrot.slane %v5985_v48, %v6846_v17 }
 0x82a   :  { %4678 = vtanh.f32 %v1310_v27  ;;  %v4677_v23 = vpop.eup %4676 }
 0x82b   :  { %v1724_v10 = vmul.f32 1.442695, %v1722_v63  ;;  %v1726_v16 = vmul.f32 1.442695, %v1723_v61  ;;  %6847 = vst [vmem:[#allocation23_spill] sm:$0xff] %v6020_v20  ;;  %v1651_v25 = vadd.f32 %v1650_v26, %v6020_v20 }
 0x82d   :  { %4680 = vpow2.f32 %v1724_v10 }
 0x82e   :  { %v6006_v11 = vpop.f32.mrb[32].mxu0  ;;  %v6008_v12 = vpop.f32.mrb[32].mxu1  ;;  %4682 = vpow2.f32 %v1726_v16 }
 0x82f   :  { %v6010_v13 = vpop.f32.mrb[33].mxu0  ;;  %v6012_v15 = vpop.f32.mrb[33].mxu1  ;;  %4684 = vtanh.f32 %v1651_v25 }
 0x830   :  { %6843 = vst [vmem:[#allocation19_spill] sm:$0xff] %v6012_v15  ;;  %v6014_v56 = vpop.f32.mrb[34].mxu0  ;;  %v6016_v59 = vpop.f32.mrb[34].mxu1 }
 0x831   :  { %6844 = vst [vmem:[#allocation21_spill] sm:$0xff] %v6014_v56  ;;  %6845 = vst [vmem:[#allocation22_spill] sm:$0xff] %v6016_v59  ;;  %v6022_v21 = vpop.f32.mrb[35].mxu0  ;;  %v6024_v22 = vpop.f32.mrb[35].mxu1 }
 0x832   :  { %6848 = vst [vmem:[#allocation24_spill] sm:$0xff] %v6022_v21  ;;  %6849 = vst [vmem:[#allocation25_spill] sm:$0xff] %v6024_v22 }
 0x834   :  { %v4679_v24 = vpop.eup %4678 }
 0x835   :  { %v1312_v63 = vmul.f32 %v4679_v24, %v4677_v23 }
 0x836   :  { %v6027_v44 = vpop.f32.mrb[36].mxu0  ;;  %v6029_v27 = vpop.f32.mrb[36].mxu1 }
 0x837   :  { %6850 = vst [vmem:[#allocation26_spill] sm:$0xff] %v6027_v44  ;;  %6851 = vst [vmem:[#allocation27_spill] sm:$0xff] %v6029_v27  ;;  %v4681_v45 = vpop.eup %4680  ;;  %v6031_v10 = vpop.f32.mrb[37].mxu0  ;;  %v1326_v22 = vpack.c.bf16 %v1312_v63, %v5858_v9 }
 0x838   :  { %6852 = vst [vmem:[#allocation28_spill] sm:$0xff] %v6031_v10  ;;  %v6033_v61 = vpop.f32.mrb[37].mxu1  ;;  %v1728_v17 = vadd.f32 1.0, %v4681_v45  ;;  %v6035_v18 = vpop.f32.mrb[38].mxu0 }
 0x839   :  { %6853 = vst [vmem:[#allocation29_spill] sm:$0xff] %v6033_v61  ;;  %6854 = vst [vmem:[#allocation30_spill] sm:$0xff] %v6035_v18  ;;  %v6037_v14 = vpop.f32.mrb[38].mxu1  ;;  %v6040_v16 = vpop.f32.mrb[39].mxu0  ;;  %1604 = vmatmul.mubr.bf16.gmra.mrb[40].mxu0 %v1326_v22  ;;  %1677 = vmatmul.mubr.bf16.gmra.mrb[40].mxu1 %v1326_v22 }
 0x83a   :  { %6855 = vst [vmem:[#allocation31_spill] sm:$0xff] %v6037_v14  ;;  %6856 = vst [vmem:[#allocation32_spill] sm:$0xff] %v6040_v16  ;;  %v6042_v26 = vpop.f32.mrb[39].mxu1  ;;  %4686 = vrcp.f32 %v1728_v17  ;;  %1966 = vmatprep.mubr.bf16.mxu0 %v6836_v5  ;;  %2007 = vmatprep.mubr.bf16.mxu1 %v6836_v5  ;;  %v4683_v23 = vpop.eup %4682 }
 0x83b   :  { %6857 = vst [vmem:[#allocation33_spill] sm:$0xff] %v6042_v26  ;;  %v1729_v24 = vadd.f32 1.0, %v4683_v23  ;;  %v4685_v45 = vpop.eup %4684 }
 0x83d   :  { %4688 = vrcp.f32 %v1729_v24 }
 0x844   :  { %v4687_v18 = vpop.eup %4686 }
 0x845   :  { %v6046_v61 = vmul.f32 %v4687_v18, %v4685_v45 }
 0x847   :  { %4690 = vtanh.f32 %v6046_v61  ;;  %v4689_v9 = vpop.eup %4688 }
 0x851   :  { %v4691_v25 = vpop.eup %4690 }
 0x852   :  { %v6049_v63 = vmul.f32 %v4691_v25, %v4689_v9 }
 0x854   :  { %6858 = vst [vmem:[#allocation34_spill] sm:$0xff] %v6049_v63  ;;  %v1773_v17 = vpack.c.bf16 %v6049_v63, %v6049_v63  ;;  %v6867_v63 = vld [vmem:[#allocation20_spill] sm:$0xff] }
 0x855   :  { %v6105_v26 = vrot.slane %v5985_v48, %v6867_v63 }
 0x856   :  { %1967 = vmatmul.mubr.bf16.vlgmr.msra.gmra.mrb[44].mxu0 %v1773_v17  ;;  %2008 = vmatmul.mubr.bf16.vlgmr.msra.gmra.mrb[44].mxu1 %v1773_v17 }
 0x857   :  { %2048 = vmatpush1.bf16.msra.mxu0 %v5880_v38  ;;  %2089 = vmatpush1.bf16.msra.mxu1 %v5882_v51 }
 0x858   :  { %2049 = vmatprep.subr.bf16.mxu0 %v5888_v52  ;;  %2090 = vmatprep.subr.bf16.mxu1 %v5890_v57 }
 0x859   :  { %2079 = vmatprep.mubr.bf16.mxu0 %v6836_v5  ;;  %2120 = vmatprep.mubr.bf16.mxu1 %v6836_v5 }
 0x85b   :  { %2050 = vmatpush1.bf16.msra.mxu0 %v5892_v33  ;;  %2091 = vmatpush1.bf16.msra.mxu1 %v5894_v34 }
 0x85c   :  { %2051 = vmatprep.subr.bf16.mxu0 %v5900_v35  ;;  %2092 = vmatprep.subr.bf16.mxu1 %v5902_v36 }
 0x85f   :  { %2052 = vmatpush1.bf16.msra.mxu0 %v5904_v42  ;;  %2093 = vmatpush1.bf16.msra.mxu1 %v5906_v40 }
 0x860   :  { %2053 = vmatprep.subr.bf16.mxu0 %v5912_v8  ;;  %2094 = vmatprep.subr.bf16.mxu1 %v5914_v54 }
 0x863   :  { %2054 = vmatpush1.bf16.msra.mxu0 %v5916_v47  ;;  %2095 = vmatpush1.bf16.msra.mxu1 %v5918_v62 }
 0x864   :  { %2055 = vmatprep.subr.bf16.mxu0 %v5924_v37  ;;  %2096 = vmatprep.subr.bf16.mxu1 %v5926_v0 }
 0x867   :  { %2056 = vmatpush1.bf16.msra.mxu0 %v5928_v32  ;;  %2097 = vmatpush1.bf16.msra.mxu1 %v5930_v2 }
 0x868   :  { %2057 = vmatprep.subr.bf16.mxu0 %v5934_v55  ;;  %2098 = vmatprep.subr.bf16.mxu1 %v5936_v4 }
 0x86b   :  { %2058 = vmatpush1.bf16.msra.mxu0 %v5940_v6  ;;  %2099 = vmatpush1.bf16.msra.mxu1 %v5942_v50 }
 0x86c   :  { %2059 = vmatprep.subr.bf16.mxu0 %v5946_v1  ;;  %2100 = vmatprep.subr.bf16.mxu1 %v5948_v49 }
 0x86f   :  { %2060 = vmatpush1.bf16.msra.mxu0 %v5952_v7  ;;  %2101 = vmatpush1.bf16.msra.mxu1 %v5954_v53 }
 0x870   :  { %2061 = vmatprep.subr.bf16.mxu0 %v5958_v3  ;;  %2102 = vmatprep.subr.bf16.mxu1 %v5960_v43 }
 0x873   :  { %2062 = vmatpush1.bf16.msra.mxu0 %v5964_v39  ;;  %2103 = vmatpush1.bf16.msra.mxu1 %v5966_v41 }
 0x874   :  { %2160 = vmatprep.subr.bf16.mxu0 %v5876_v30  ;;  %2201 = vmatprep.subr.bf16.mxu1 %v5878_v31 }
 0x90c   :  { %v6087_v18 = vpop.f32.mrb[40].mxu0  ;;  %v6089_v22 = vpop.f32.mrb[40].mxu1 }
 0x90d   :  { %6859 = vst [vmem:[#allocation35_spill] sm:$0xff] %v6087_v18  ;;  %6860 = vst [vmem:[#allocation36_spill] sm:$0xff] %v6089_v22  ;;  %v6091_v23 = vpop.f32.mrb[41].mxu0  ;;  %v6093_v24 = vpop.f32.mrb[41].mxu1  ;;  %v1580_v18 = vadd.f32 %v5997_v60, %v5989_v58 }
 0x90e   :  { %6861 = vst [vmem:[#allocation37_spill] sm:$0xff] %v6091_v23  ;;  %6862 = vst [vmem:[#allocation38_spill] sm:$0xff] %v6093_v24  ;;  %v6095_v45 = vpop.f32.mrb[42].mxu0  ;;  %v6097_v9 = vpop.f32.mrb[42].mxu1  ;;  %v1653_v23 = vadd.f32 %v5999_v46, %v5993_v19  ;;  %v1582_v24 = vadd.f32 %v6002_v28, %v6105_v26 }
 0x90f   :  { %6863 = vst [vmem:[#allocation39_spill] sm:$0xff] %v6095_v45  ;;  %6864 = vst [vmem:[#allocation40_spill] sm:$0xff] %v6097_v9  ;;  %v6099_v25 = vpop.f32.mrb[43].mxu0  ;;  %v6101_v17 = vpop.f32.mrb[43].mxu1  ;;  %v1655_v9 = vadd.f32 %v6004_v29, %v6020_v20 }
 0x910   :  { %6865 = vst [vmem:[#allocation41_spill] sm:$0xff] %v6099_v25  ;;  %6866 = vst [vmem:[#allocation42_spill] sm:$0xff] %v6101_v17 }
 0x929   :  { %v1968_v45 = vpop.f32.mrb[44].mxu0  ;;  %v2009_v25 = vpop.f32.mrb[44].mxu1 }
 0x92a   :  { %v2016_v22 = vadd.f32 %v1968_v45, %v1580_v18  ;;  %v2018_v17 = vadd.f32 %v2009_v25, %v1653_v23  ;;  %v1970_v16 = vpop.f32.mrb[45].mxu0  ;;  %v2011_v14 = vpop.f32.mrb[45].mxu1  ;;  %v1588_v45 = vadd.f32 %v6010_v13, %v6105_v26  ;;  %v6869_v25 = vld [vmem:[#allocation19_spill] sm:$0xff] }
 0x92b   :  { %v2017_v48 = vadd.f32 %v1970_v16, %v1582_v24  ;;  %v2019_v63 = vadd.f32 %v2011_v14, %v1655_v9  ;;  %v1972_v10 = vpop.f32.mrb[46].mxu0  ;;  %v2013_v27 = vpop.f32.mrb[46].mxu1  ;;  %v1659_v24 = vadd.f32 %v6008_v12, %v5993_v19  ;;  %v6868_v9 = vld [vmem:[#allocation23_spill] sm:$0xff] }
 0x92c   :  { %v2020_v60 = vsub.f32 0.0, %v2016_v22  ;;  %v1973_v44 = vpop.f32.mrb[47].mxu0  ;;  %v2014_v21 = vpop.f32.mrb[47].mxu1  ;;  %v2022_v28 = vsub.f32 0.0, %v2018_v17  ;;  %v1661_v17 = vadd.f32 %v6869_v25, %v6868_v9 }
 0x92d   :  { %v2021_v46 = vsub.f32 0.0, %v2017_v48 }
 0x92e   :  { %v2023_v59 = vmul.f32 1.442695, %v2020_v60  ;;  %v2027_v29 = vmul.f32 1.442695, %v2022_v28 }
 0x92f   :  { %v2025_v56 = vmul.f32 1.442695, %v2021_v46 }
 0x930   :  { %4692 = vpow2.f32 %v2023_v59 }
 0x931   :  { %4694 = vpow2.f32 %v2025_v56 }
 0x932   :  { %4696 = vtanh.f32 %v2019_v63 }
 0x933   :  { %4698 = vpow2.f32 %v2027_v29 }
 0x93a   :  { %v4693_v15 = vpop.eup %4692 }
 0x93b   :  { %v2029_v20 = vadd.f32 1.0, %v4693_v15  ;;  %v4695_v18 = vpop.eup %4694 }
 0x93c   :  { %v2030_v16 = vadd.f32 1.0, %v4695_v18  ;;  %v4697_v14 = vpop.eup %4696 }
 0x93d   :  { %4700 = vrcp.f32 %v2029_v20  ;;  %v4699_v27 = vpop.eup %4698 }
 0x93e   :  { %4702 = vrcp.f32 %v2030_v16  ;;  %v2031_v22 = vadd.f32 1.0, %v4699_v27 }
 0x940   :  { %4704 = vrcp.f32 %v2031_v22 }
 0x947   :  { %v4701_v10 = vpop.eup %4700 }
 0x948   :  { %v2037_v44 = vmul.f32 %v4701_v10, %v4697_v14  ;;  %v4703_v21 = vpop.eup %4702 }
 0x949   :  { %v2036_v23 = vmul.f32 %v4703_v21, %v6046_v61  ;;  %v1586_v61 = vadd.f32 %v6006_v11, %v5989_v58 }
 0x94a   :  { %v4705_v15 = vpop.eup %4704 }
 0x94b   :  { %v6116_v59 = vadd.f32 %v2037_v44, %v2036_v23 }
 0x94d   :  { %4706 = vtanh.f32 %v6116_v59 }
 0x957   :  { %v4707_v56 = vpop.eup %4706 }
 0x958   :  { %v6119_v63 = vmul.f32 %v4707_v56, %v4705_v15 }
 0x95a   :  { %v2046_v20 = vpack.c.bf16 %v6119_v63, %v6119_v63 }
 0x95c   :  { %2080 = vmatmul.mubr.bf16.vlgmr.msra.gmra.mrb[48].mxu0 %v2046_v20  ;;  %2121 = vmatmul.mubr.bf16.vlgmr.msra.gmra.mrb[48].mxu1 %v2046_v20 }
 0x95d   :  { %2161 = vmatpush1.bf16.msra.mxu0 %v5880_v38  ;;  %2202 = vmatpush1.bf16.msra.mxu1 %v5882_v51 }
 0x95e   :  { %2162 = vmatprep.subr.bf16.mxu0 %v5888_v52  ;;  %2203 = vmatprep.subr.bf16.mxu1 %v5890_v57 }
 0x95f   :  { %2192 = vmatprep.mubr.bf16.mxu0 %v6836_v5  ;;  %2233 = vmatprep.mubr.bf16.mxu1 %v6836_v5 }
 0x961   :  { %2163 = vmatpush1.bf16.msra.mxu0 %v5892_v33  ;;  %2204 = vmatpush1.bf16.msra.mxu1 %v5894_v34 }
 0x962   :  { %2164 = vmatprep.subr.bf16.mxu0 %v5900_v35  ;;  %2205 = vmatprep.subr.bf16.mxu1 %v5902_v36 }
 0x965   :  { %2165 = vmatpush1.bf16.msra.mxu0 %v5904_v42  ;;  %2206 = vmatpush1.bf16.msra.mxu1 %v5906_v40 }
 0x966   :  { %2166 = vmatprep.subr.bf16.mxu0 %v5912_v8  ;;  %2207 = vmatprep.subr.bf16.mxu1 %v5914_v54 }
 0x969   :  { %2167 = vmatpush1.bf16.msra.mxu0 %v5916_v47  ;;  %2208 = vmatpush1.bf16.msra.mxu1 %v5918_v62 }
 0x96a   :  { %2168 = vmatprep.subr.bf16.mxu0 %v5924_v37  ;;  %2209 = vmatprep.subr.bf16.mxu1 %v5926_v0 }
 0x96d   :  { %2169 = vmatpush1.bf16.msra.mxu0 %v5928_v32  ;;  %2210 = vmatpush1.bf16.msra.mxu1 %v5930_v2 }
 0x96e   :  { %2170 = vmatprep.subr.bf16.mxu0 %v5934_v55  ;;  %2211 = vmatprep.subr.bf16.mxu1 %v5936_v4 }
 0x971   :  { %2171 = vmatpush1.bf16.msra.mxu0 %v5940_v6  ;;  %2212 = vmatpush1.bf16.msra.mxu1 %v5942_v50 }
 0x972   :  { %2172 = vmatprep.subr.bf16.mxu0 %v5946_v1  ;;  %2213 = vmatprep.subr.bf16.mxu1 %v5948_v49 }
 0x975   :  { %2173 = vmatpush1.bf16.msra.mxu0 %v5952_v7  ;;  %2214 = vmatpush1.bf16.msra.mxu1 %v5954_v53 }
 0x976   :  { %2174 = vmatprep.subr.bf16.mxu0 %v5958_v3  ;;  %2215 = vmatprep.subr.bf16.mxu1 %v5960_v43 }
 0x979   :  { %2175 = vmatpush1.bf16.msra.mxu0 %v5964_v39  ;;  %2216 = vmatpush1.bf16.msra.mxu1 %v5966_v41 }
 0x97a   :  { %2273 = vmatprep.subr.bf16.mxu0 %v5876_v30  ;;  %2314 = vmatprep.subr.bf16.mxu1 %v5878_v31 }
 0xa2f   :  { %v2081_v48 = vpop.f32.mrb[48].mxu0  ;;  %v2122_v60 = vpop.f32.mrb[48].mxu1 }
 0xa30   :  { %v2129_v46 = vadd.f32 %v2081_v48, %v1586_v61  ;;  %v2131_v28 = vadd.f32 %v2122_v60, %v1659_v24  ;;  %v2083_v29 = vpop.f32.mrb[49].mxu0  ;;  %v2124_v18 = vpop.f32.mrb[49].mxu1 }
 0xa31   :  { %v2130_v16 = vadd.f32 %v2083_v29, %v1588_v45  ;;  %v2132_v14 = vadd.f32 %v2124_v18, %v1661_v17  ;;  %v2085_v27 = vpop.f32.mrb[50].mxu0  ;;  %v2126_v10 = vpop.f32.mrb[50].mxu1 }
 0xa32   :  { %v2133_v11 = vsub.f32 0.0, %v2129_v46  ;;  %v2086_v44 = vpop.f32.mrb[51].mxu0  ;;  %v2127_v21 = vpop.f32.mrb[51].mxu1  ;;  %v2135_v13 = vsub.f32 0.0, %v2131_v28 }
 0xa33   :  { %v2134_v12 = vsub.f32 0.0, %v2130_v16  ;;  %v6872_v21 = vld [vmem:[#allocation24_spill] sm:$0xff] }
 0xa34   :  { %v2136_v22 = vmul.f32 1.442695, %v2133_v11  ;;  %v2140_v15 = vmul.f32 1.442695, %v2135_v13  ;;  %v6871_v11 = vld [vmem:[#allocation22_spill] sm:$0xff] }
 0xa35   :  { %v2138_v23 = vmul.f32 1.442695, %v2134_v12  ;;  %v1663_v44 = vadd.f32 %v6871_v11, %v5993_v19  ;;  %v1592_v12 = vadd.f32 %v6872_v21, %v6105_v26 }
 0xa36   :  { %4708 = vpow2.f32 %v2136_v22  ;;  %v6873_v22 = vld [vmem:[#allocation25_spill] sm:$0xff] }
 0xa37   :  { %4710 = vpow2.f32 %v2138_v23  ;;  %v1665_v23 = vadd.f32 %v6873_v22, %v6868_v9 }
 0xa38   :  { %4712 = vtanh.f32 %v2132_v14 }
 0xa39   :  { %4714 = vpow2.f32 %v2140_v15 }
 0xa40   :  { %v4709_v56 = vpop.eup %4708 }
 0xa41   :  { %v2142_v20 = vadd.f32 1.0, %v4709_v56  ;;  %v4711_v61 = vpop.eup %4710 }
 0xa42   :  { %v2143_v24 = vadd.f32 1.0, %v4711_v61  ;;  %v4713_v45 = vpop.eup %4712 }
 0xa43   :  { %4716 = vrcp.f32 %v2142_v20  ;;  %v4715_v25 = vpop.eup %4714 }
 0xa44   :  { %4718 = vrcp.f32 %v2143_v24  ;;  %v2144_v46 = vadd.f32 1.0, %v4715_v25 }
 0xa46   :  { %4720 = vrcp.f32 %v2144_v46 }
 0xa4d   :  { %v4717_v17 = vpop.eup %4716 }
 0xa4e   :  { %v2150_v48 = vmul.f32 %v4717_v17, %v4713_v45  ;;  %v4719_v60 = vpop.eup %4718 }
 0xa4f   :  { %v2149_v29 = vmul.f32 %v4719_v60, %v6116_v59  ;;  %v6870_v59 = vld [vmem:[#allocation21_spill] sm:$0xff] }
 0xa50   :  { %v4721_v28 = vpop.eup %4720  ;;  %v1590_v10 = vadd.f32 %v6870_v59, %v5989_v58 }
 0xa51   :  { %v6166_v18 = vadd.f32 %v2150_v48, %v2149_v29 }
 0xa53   :  { %4722 = vtanh.f32 %v6166_v18 }
 0xa5d   :  { %v4723_v16 = vpop.eup %4722 }
 0xa5e   :  { %v6169_v14 = vmul.f32 %v4723_v16, %v4721_v28 }
 0xa60   :  { %v2159_v27 = vpack.c.bf16 %v6169_v14, %v6169_v14 }
 0xa62   :  { %2193 = vmatmul.mubr.bf16.vlgmr.msra.gmra.mrb[52].mxu0 %v2159_v27  ;;  %2234 = vmatmul.mubr.bf16.vlgmr.msra.gmra.mrb[52].mxu1 %v2159_v27 }
 0xa63   :  { %2274 = vmatpush1.bf16.msra.mxu0 %v5880_v38  ;;  %2315 = vmatpush1.bf16.msra.mxu1 %v5882_v51 }
 0xa64   :  { %2275 = vmatprep.subr.bf16.mxu0 %v5888_v52  ;;  %2316 = vmatprep.subr.bf16.mxu1 %v5890_v57 }
 0xa65   :  { %2305 = vmatprep.mubr.bf16.mxu0 %v6836_v5  ;;  %2346 = vmatprep.mubr.bf16.mxu1 %v6836_v5 }
 0xa67   :  { %2276 = vmatpush1.bf16.msra.mxu0 %v5892_v33  ;;  %2317 = vmatpush1.bf16.msra.mxu1 %v5894_v34 }
 0xa68   :  { %2277 = vmatprep.subr.bf16.mxu0 %v5900_v35  ;;  %2318 = vmatprep.subr.bf16.mxu1 %v5902_v36 }
 0xa6b   :  { %2278 = vmatpush1.bf16.msra.mxu0 %v5904_v42  ;;  %2319 = vmatpush1.bf16.msra.mxu1 %v5906_v40 }
 0xa6c   :  { %2279 = vmatprep.subr.bf16.mxu0 %v5912_v8  ;;  %2320 = vmatprep.subr.bf16.mxu1 %v5914_v54 }
 0xa6f   :  { %2280 = vmatpush1.bf16.msra.mxu0 %v5916_v47  ;;  %2321 = vmatpush1.bf16.msra.mxu1 %v5918_v62 }
 0xa70   :  { %2281 = vmatprep.subr.bf16.mxu0 %v5924_v37  ;;  %2322 = vmatprep.subr.bf16.mxu1 %v5926_v0 }
 0xa73   :  { %2282 = vmatpush1.bf16.msra.mxu0 %v5928_v32  ;;  %2323 = vmatpush1.bf16.msra.mxu1 %v5930_v2 }
 0xa74   :  { %2283 = vmatprep.subr.bf16.mxu0 %v5934_v55  ;;  %2324 = vmatprep.subr.bf16.mxu1 %v5936_v4 }
 0xa77   :  { %2284 = vmatpush1.bf16.msra.mxu0 %v5940_v6  ;;  %2325 = vmatpush1.bf16.msra.mxu1 %v5942_v50 }
 0xa78   :  { %2285 = vmatprep.subr.bf16.mxu0 %v5946_v1  ;;  %2326 = vmatprep.subr.bf16.mxu1 %v5948_v49 }
 0xa7b   :  { %2286 = vmatpush1.bf16.msra.mxu0 %v5952_v7  ;;  %2327 = vmatpush1.bf16.msra.mxu1 %v5954_v53 }
 0xa7c   :  { %2287 = vmatprep.subr.bf16.mxu0 %v5958_v3  ;;  %2328 = vmatprep.subr.bf16.mxu1 %v5960_v43 }
 0xa7f   :  { %2288 = vmatpush1.bf16.msra.mxu0 %v5964_v39  ;;  %2329 = vmatpush1.bf16.msra.mxu1 %v5966_v41 }
 0xa80   :  { %2386 = vmatprep.subr.bf16.mxu0 %v5876_v30  ;;  %2427 = vmatprep.subr.bf16.mxu1 %v5878_v31 }
 0xb35   :  { %v2194_v13 = vpop.f32.mrb[52].mxu0  ;;  %v2235_v15 = vpop.f32.mrb[52].mxu1 }
 0xb36   :  { %v2242_v56 = vadd.f32 %v2194_v13, %v1590_v10  ;;  %v2244_v20 = vadd.f32 %v2235_v15, %v1663_v44  ;;  %v2196_v61 = vpop.f32.mrb[53].mxu0  ;;  %v2237_v24 = vpop.f32.mrb[53].mxu1 }
 0xb37   :  { %v2243_v45 = vadd.f32 %v2196_v61, %v1592_v12  ;;  %v2245_v25 = vadd.f32 %v2237_v24, %v1665_v23  ;;  %v2198_v17 = vpop.f32.mrb[54].mxu0  ;;  %v2239_v48 = vpop.f32.mrb[54].mxu1 }
 0xb38   :  { %v2246_v60 = vsub.f32 0.0, %v2242_v56  ;;  %v2199_v46 = vpop.f32.mrb[55].mxu0  ;;  %v2240_v29 = vpop.f32.mrb[55].mxu1  ;;  %v2248_v59 = vsub.f32 0.0, %v2244_v20 }
 0xb39   :  { %v2247_v28 = vsub.f32 0.0, %v2243_v45  ;;  %v6875_v46 = vld [vmem:[#allocation27_spill] sm:$0xff] }
 0xb3a   :  { %v2249_v16 = vmul.f32 1.442695, %v2246_v60  ;;  %v2253_v11 = vmul.f32 1.442695, %v2248_v59  ;;  %v1669_v29 = vadd.f32 %v6875_v46, %v5993_v19 }
 0xb3b   :  { %v2251_v27 = vmul.f32 1.442695, %v2247_v28  ;;  %v6876_v28 = vld [vmem:[#allocation28_spill] sm:$0xff] }
 0xb3c   :  { %4724 = vpow2.f32 %v2249_v16  ;;  %v1598_v16 = vadd.f32 %v6876_v28, %v6105_v26 }
 0xb3d   :  { %4726 = vpow2.f32 %v2251_v27  ;;  %v6877_v27 = vld [vmem:[#allocation29_spill] sm:$0xff] }
 0xb3e   :  { %4728 = vtanh.f32 %v2245_v25  ;;  %v1671_v59 = vadd.f32 %v6877_v27, %v6868_v9 }
 0xb3f   :  { %4730 = vpow2.f32 %v2253_v11 }
 0xb46   :  { %v4725_v21 = vpop.eup %4724 }
 0xb47   :  { %v2255_v22 = vadd.f32 1.0, %v4725_v21  ;;  %v4727_v10 = vpop.eup %4726 }
 0xb48   :  { %v2256_v44 = vadd.f32 1.0, %v4727_v10  ;;  %v4729_v12 = vpop.eup %4728 }
 0xb49   :  { %4732 = vrcp.f32 %v2255_v22  ;;  %v4731_v23 = vpop.eup %4730 }
 0xb4a   :  { %4734 = vrcp.f32 %v2256_v44  ;;  %v2257_v61 = vadd.f32 1.0, %v4731_v23 }
 0xb4c   :  { %4736 = vrcp.f32 %v2257_v61 }
 0xb53   :  { %v4733_v13 = vpop.eup %4732 }
 0xb54   :  { %v2263_v15 = vmul.f32 %v4733_v13, %v4729_v12  ;;  %v4735_v56 = vpop.eup %4734 }
 0xb55   :  { %v2262_v24 = vmul.f32 %v4735_v56, %v6166_v18  ;;  %v6874_v18 = vld [vmem:[#allocation26_spill] sm:$0xff] }
 0xb56   :  { %v4737_v20 = vpop.eup %4736  ;;  %v1596_v60 = vadd.f32 %v6874_v18, %v5989_v58 }
 0xb57   :  { %v6216_v45 = vadd.f32 %v2263_v15, %v2262_v24 }
 0xb59   :  { %4738 = vtanh.f32 %v6216_v45 }
 0xb63   :  { %v4739_v25 = vpop.eup %4738 }
 0xb64   :  { %v6219_v17 = vmul.f32 %v4739_v25, %v4737_v20 }
 0xb66   :  { %v2272_v48 = vpack.c.bf16 %v6219_v17, %v6219_v17 }
 0xb68   :  { %2306 = vmatmul.mubr.bf16.vlgmr.msra.gmra.mrb[56].mxu0 %v2272_v48  ;;  %2347 = vmatmul.mubr.bf16.vlgmr.msra.gmra.mrb[56].mxu1 %v2272_v48 }
 0xb69   :  { %2387 = vmatpush1.bf16.msra.mxu0 %v5880_v38  ;;  %2428 = vmatpush1.bf16.msra.mxu1 %v5882_v51 }
 0xb6a   :  { %2388 = vmatprep.subr.bf16.mxu0 %v5888_v52  ;;  %2429 = vmatprep.subr.bf16.mxu1 %v5890_v57 }
 0xb6b   :  { %2418 = vmatprep.mubr.bf16.mxu0 %v6836_v5  ;;  %2459 = vmatprep.mubr.bf16.mxu1 %v6836_v5 }
 0xb6d   :  { %2389 = vmatpush1.bf16.msra.mxu0 %v5892_v33  ;;  %2430 = vmatpush1.bf16.msra.mxu1 %v5894_v34 }
 0xb6e   :  { %2390 = vmatprep.subr.bf16.mxu0 %v5900_v35  ;;  %2431 = vmatprep.subr.bf16.mxu1 %v5902_v36 }
 0xb71   :  { %2391 = vmatpush1.bf16.msra.mxu0 %v5904_v42  ;;  %2432 = vmatpush1.bf16.msra.mxu1 %v5906_v40 }
 0xb72   :  { %2392 = vmatprep.subr.bf16.mxu0 %v5912_v8  ;;  %2433 = vmatprep.subr.bf16.mxu1 %v5914_v54 }
 0xb75   :  { %2393 = vmatpush1.bf16.msra.mxu0 %v5916_v47  ;;  %2434 = vmatpush1.bf16.msra.mxu1 %v5918_v62 }
 0xb76   :  { %2394 = vmatprep.subr.bf16.mxu0 %v5924_v37  ;;  %2435 = vmatprep.subr.bf16.mxu1 %v5926_v0 }
 0xb79   :  { %2395 = vmatpush1.bf16.msra.mxu0 %v5928_v32  ;;  %2436 = vmatpush1.bf16.msra.mxu1 %v5930_v2 }
 0xb7a   :  { %2396 = vmatprep.subr.bf16.mxu0 %v5934_v55  ;;  %2437 = vmatprep.subr.bf16.mxu1 %v5936_v4 }
 0xb7d   :  { %2397 = vmatpush1.bf16.msra.mxu0 %v5940_v6  ;;  %2438 = vmatpush1.bf16.msra.mxu1 %v5942_v50 }
 0xb7e   :  { %2398 = vmatprep.subr.bf16.mxu0 %v5946_v1  ;;  %2439 = vmatprep.subr.bf16.mxu1 %v5948_v49 }
 0xb81   :  { %2399 = vmatpush1.bf16.msra.mxu0 %v5952_v7  ;;  %2440 = vmatpush1.bf16.msra.mxu1 %v5954_v53 }
 0xb82   :  { %2400 = vmatprep.subr.bf16.mxu0 %v5958_v3  ;;  %2441 = vmatprep.subr.bf16.mxu1 %v5960_v43 }
 0xb85   :  { %2401 = vmatpush1.bf16.msra.mxu0 %v5964_v39  ;;  %2442 = vmatpush1.bf16.msra.mxu1 %v5966_v41 }
 0xb86   :  { %2499 = vmatprep.subr.bf16.mxu0 %v5876_v30  ;;  %2540 = vmatprep.subr.bf16.mxu1 %v5878_v31 }
 0xc3b   :  { %v2307_v11 = vpop.f32.mrb[56].mxu0  ;;  %v2348_v21 = vpop.f32.mrb[56].mxu1 }
 0xc3c   :  { %v2355_v22 = vadd.f32 %v2307_v11, %v1596_v60  ;;  %v2357_v10 = vadd.f32 %v2348_v21, %v1669_v29  ;;  %v2309_v44 = vpop.f32.mrb[57].mxu0  ;;  %v2350_v30 = vpop.f32.mrb[57].mxu1 }
 0xc3d   :  { %v2356_v12 = vadd.f32 %v2309_v44, %v1598_v16  ;;  %v2358_v31 = vadd.f32 %v2350_v30, %v1671_v59  ;;  %v2311_v23 = vpop.f32.mrb[58].mxu0  ;;  %v2352_v13 = vpop.f32.mrb[58].mxu1 }
 0xc3e   :  { %v2359_v15 = vsub.f32 0.0, %v2355_v22  ;;  %v2312_v56 = vpop.f32.mrb[59].mxu0  ;;  %v2353_v61 = vpop.f32.mrb[59].mxu1  ;;  %v2361_v48 = vsub.f32 0.0, %v2357_v10 }
 0xc3f   :  { %v2360_v24 = vsub.f32 0.0, %v2356_v12 }
 0xc40   :  { %v2362_v20 = vmul.f32 1.442695, %v2359_v15  ;;  %v2366_v18 = vmul.f32 1.442695, %v2361_v48 }
 0xc41   :  { %v2364_v25 = vmul.f32 1.442695, %v2360_v24 }
 0xc42   :  { %4740 = vpow2.f32 %v2362_v20 }
 0xc43   :  { %4742 = vpow2.f32 %v2364_v25 }
 0xc44   :  { %4744 = vtanh.f32 %v2358_v31 }
 0xc45   :  { %4746 = vpow2.f32 %v2366_v18 }
 0xc4c   :  { %v4741_v46 = vpop.eup %4740 }
 0xc4d   :  { %v2368_v28 = vadd.f32 1.0, %v4741_v46  ;;  %v4743_v60 = vpop.eup %4742 }
 0xc4e   :  { %v2369_v29 = vadd.f32 1.0, %v4743_v60  ;;  %v4745_v16 = vpop.eup %4744 }
 0xc4f   :  { %4748 = vrcp.f32 %v2368_v28  ;;  %v4747_v27 = vpop.eup %4746 }
 0xc50   :  { %4750 = vrcp.f32 %v2369_v29  ;;  %v2370_v22 = vadd.f32 1.0, %v4747_v27  ;;  %v4963_v27 = vld [vmem:[#allocation9 + $0x8] ss:$16 sps:$4 sm:$0xff]  }
 0xc52   :  { %4752 = vrcp.f32 %v2370_v22  ;;  %v4967_v22 = vld [vmem:[#allocation9 + $0x28] ss:$16 sps:$4 sm:$0xff]  }
 0xc59   :  { %v4749_v59 = vpop.eup %4748 }
 0xc5a   :  { %v2376_v11 = vmul.f32 %v4749_v59, %v4745_v16  ;;  %v4751_v21 = vpop.eup %4750  ;;  %v4962_v16 = vld [vmem:[#allocation9] ss:$16 sps:$4 sm:$0xff]   ;;  %v4964_v59 = vld [vmem:[#allocation9 + $0x24] ss:$16 sps:$4 sm:$0xff]  }
 0xc5b   :  { %v2375_v44 = vmul.f32 %v4751_v21, %v6216_v45  ;;  %v4966_v21 = vld [vmem:[#allocation9 + $0x20] ss:$16 sps:$4 sm:$0xff]  }
 0xc5c   :  { %v4753_v10 = vpop.eup %4752 }
 0xc5d   :  { %v6266_v30 = vadd.f32 %v2376_v11, %v2375_v44  ;;  %v4965_v11 = vld [vmem:[#allocation9 + $0x2c] ss:$16 sps:$4 sm:$0xff]   ;;  %v4968_v44 = vld [vmem:[#allocation9 + $0x44] ss:$16 sps:$4 sm:$0xff]  }
 0xc5f   :  { %4754 = vtanh.f32 %v6266_v30 }
 0xc69   :  { %v4755_v12 = vpop.eup %4754 }
 0xc6a   :  { %v6269_v31 = vmul.f32 %v4755_v12, %v4753_v10  ;;  %v4970_v10 = vld [vmem:[#allocation9 + $0x40] ss:$16 sps:$4 sm:$0xff]   ;;  %v4971_v12 = vld [vmem:[#allocation9 + $0x48] ss:$16 sps:$4 sm:$0xff]  }
 0xc6c   :  { %v2385_v23 = vpack.c.bf16 %v6269_v31, %v6269_v31 }
 0xc6e   :  { %2419 = vmatmul.mubr.bf16.vlgmr.msra.gmra.mrb[60].mxu0 %v2385_v23  ;;  %2460 = vmatmul.mubr.bf16.vlgmr.msra.gmra.mrb[60].mxu1 %v2385_v23  ;;  %v4972_v23 = vld [vmem:[#allocation9 + $0x64] ss:$16 sps:$4 sm:$0xff]  }
 0xc6f   :  { %2500 = vmatpush1.bf16.msra.mxu0 %v5880_v38  ;;  %2541 = vmatpush1.bf16.msra.mxu1 %v5882_v51  ;;  %v4960_v38 = vld [vmem:[#allocation9 + $0x4] ss:$16 sps:$4 sm:$0xff]   ;;  %v4961_v51 = vld [vmem:[#allocation9 + $0xc] ss:$16 sps:$4 sm:$0xff]  }
 0xc70   :  { %2501 = vmatprep.subr.bf16.mxu0 %v5888_v52  ;;  %2542 = vmatprep.subr.bf16.mxu1 %v5890_v57  ;;  %v6878_v52 = vld [vmem:[#allocation30_spill] sm:$0xff] }
 0xc71   :  { %2531 = vmatprep.mubr.bf16.mxu0 %v6836_v5  ;;  %2572 = vmatprep.mubr.bf16.mxu1 %v6836_v5  ;;  %v1600_v57 = vadd.f32 %v6878_v52, %v5989_v58  ;;  %v4975_v52 = vld [vmem:[#allocation9 + $0x68] ss:$16 sps:$4 sm:$0xff]  }
 0xc73   :  { %2502 = vmatpush1.bf16.msra.mxu0 %v5892_v33  ;;  %2543 = vmatpush1.bf16.msra.mxu1 %v5894_v34  ;;  %v6879_v33 = vld [vmem:[#allocation31_spill] sm:$0xff] }
 0xc74   :  { %2503 = vmatprep.subr.bf16.mxu0 %v5900_v35  ;;  %2544 = vmatprep.subr.bf16.mxu1 %v5902_v36  ;;  %v1673_v34 = vadd.f32 %v6879_v33, %v5993_v19  ;;  %v6880_v35 = vld [vmem:[#allocation32_spill] sm:$0xff]  ;;  %v4977_v33 = vld [vmem:[#allocation9 + $0x8c] ss:$16 sps:$4 sm:$0xff]  }
 0xc75   :  { %v1602_v36 = vadd.f32 %v6880_v35, %v6105_v26  ;;  %v4979_v35 = vld [vmem:[#allocation9 + $0x88] ss:$16 sps:$4 sm:$0xff]  }
 0xc77   :  { %2504 = vmatpush1.bf16.msra.mxu0 %v5904_v42  ;;  %2545 = vmatpush1.bf16.msra.mxu1 %v5906_v40  ;;  %v6881_v42 = vld [vmem:[#allocation33_spill] sm:$0xff] }
 0xc78   :  { %2505 = vmatprep.subr.bf16.mxu0 %v5912_v8  ;;  %2546 = vmatprep.subr.bf16.mxu1 %v5914_v54  ;;  %v1675_v40 = vadd.f32 %v6881_v42, %v6868_v9  ;;  %v4981_v42 = vld [vmem:[#allocation9 + $0xac] ss:$16 sps:$4 sm:$0xff]  }
 0xc7b   :  { %2506 = vmatpush1.bf16.msra.mxu0 %v5916_v47  ;;  %2547 = vmatpush1.bf16.msra.mxu1 %v5918_v62 }
 0xc7c   :  { %2507 = vmatprep.subr.bf16.mxu0 %v5924_v37  ;;  %2548 = vmatprep.subr.bf16.mxu1 %v5926_v0 }
 0xc7f   :  { %2508 = vmatpush1.bf16.msra.mxu0 %v5928_v32  ;;  %2549 = vmatpush1.bf16.msra.mxu1 %v5930_v2 }
 0xc80   :  { %2509 = vmatprep.subr.bf16.mxu0 %v5934_v55  ;;  %2550 = vmatprep.subr.bf16.mxu1 %v5936_v4 }
 0xc83   :  { %2510 = vmatpush1.bf16.msra.mxu0 %v5940_v6  ;;  %2551 = vmatpush1.bf16.msra.mxu1 %v5942_v50 }
 0xc84   :  { %2511 = vmatprep.subr.bf16.mxu0 %v5946_v1  ;;  %2552 = vmatprep.subr.bf16.mxu1 %v5948_v49 }
 0xc87   :  { %2512 = vmatpush1.bf16.msra.mxu0 %v5952_v7  ;;  %2553 = vmatpush1.bf16.msra.mxu1 %v5954_v53 }
 0xc88   :  { %2513 = vmatprep.subr.bf16.mxu0 %v5958_v3  ;;  %2554 = vmatprep.subr.bf16.mxu1 %v5960_v43 }
 0xc8b   :  { %2514 = vmatpush1.bf16.msra.mxu0 %v5964_v39  ;;  %2555 = vmatpush1.bf16.msra.mxu1 %v5966_v41 }
 0xc8c   :  { %2612 = vmatprep.subr.bf16.mxu0 %v4960_v38  ;;  %2653 = vmatprep.subr.bf16.mxu1 %v4961_v51  ;;  %v4973_v38 = vld [vmem:[#allocation9 + $0x6c] ss:$16 sps:$4 sm:$0xff]   ;;  %v4974_v51 = vld [vmem:[#allocation9 + $0x60] ss:$16 sps:$4 sm:$0xff]  }
 0xd41   :  { %v2420_v8 = vpop.f32.mrb[60].mxu0  ;;  %v2461_v54 = vpop.f32.mrb[60].mxu1 }
 0xd42   :  { %v2468_v47 = vadd.f32 %v2420_v8, %v1600_v57  ;;  %v2470_v62 = vadd.f32 %v2461_v54, %v1673_v34  ;;  %v2422_v37 = vpop.f32.mrb[61].mxu0  ;;  %v2463_v0 = vpop.f32.mrb[61].mxu1  ;;  %v4976_v57 = vld [vmem:[#allocation9 + $0x84] ss:$16 sps:$4 sm:$0xff]   ;;  %v4978_v34 = vld [vmem:[#allocation9 + $0x80] ss:$16 sps:$4 sm:$0xff]  }
 0xd43   :  { %v2469_v32 = vadd.f32 %v2422_v37, %v1602_v36  ;;  %v2471_v2 = vadd.f32 %v2463_v0, %v1675_v40  ;;  %v2424_v55 = vpop.f32.mrb[62].mxu0  ;;  %v2465_v4 = vpop.f32.mrb[62].mxu1  ;;  %v4980_v36 = vld [vmem:[#allocation9 + $0xa4] ss:$16 sps:$4 sm:$0xff]   ;;  %v4982_v40 = vld [vmem:[#allocation9 + $0xa0] ss:$16 sps:$4 sm:$0xff]  }
 0xd44   :  { %v2472_v6 = vsub.f32 0.0, %v2468_v47  ;;  %v2425_v50 = vpop.f32.mrb[63].mxu0  ;;  %v2466_v1 = vpop.f32.mrb[63].mxu1  ;;  %v2474_v3 = vsub.f32 0.0, %v2470_v62  ;;  %v4983_v8 = vld [vmem:[#allocation9 + $0xa8] ss:$16 sps:$4 sm:$0xff]  }
 0xd45   :  { %v2473_v49 = vsub.f32 0.0, %v2469_v32  ;;  %v4984_v54 = vld [vmem:[#allocation9 + $0xc4] ss:$16 sps:$4 sm:$0xff]   ;;  %v4985_v47 = vld [vmem:[#allocation9 + $0xcc] ss:$16 sps:$4 sm:$0xff]  }
 0xd46   :  { %v2475_v7 = vmul.f32 1.442695, %v2472_v6  ;;  %v2479_v43 = vmul.f32 1.442695, %v2474_v3  ;;  %v4986_v62 = vld [vmem:[#allocation9 + $0xc0] ss:$16 sps:$4 sm:$0xff]  }
 0xd47   :  { %v2477_v53 = vmul.f32 1.442695, %v2473_v49  ;;  %v4987_v37 = vld [vmem:[#allocation9 + $0xc8] ss:$16 sps:$4 sm:$0xff]   ;;  %v4988_v0 = vld [vmem:[#allocation9 + $0xe4] ss:$16 sps:$4 sm:$0xff]  }
 0xd48   :  { %4756 = vpow2.f32 %v2475_v7  ;;  %v4989_v32 = vld [vmem:[#allocation9 + $0xec] ss:$16 sps:$4 sm:$0xff]   ;;  %v4991_v55 = vld [vmem:[#allocation9 + $0xe8] ss:$16 sps:$4 sm:$0xff]   ;;  %v4462_v4 = vld [vmem:[#allocation10 + $0x4] ss:$16 sps:$4 sm:$0xff]  }
 0xd49   :  { %4758 = vpow2.f32 %v2477_v53  ;;  %v4465_v6 = vld [vmem:[#allocation10 + $0xc] ss:$16 sps:$4 sm:$0xff]   ;;  %v6883_v49 = vld [vmem:[#allocation36_spill] sm:$0xff] }
 0xd4a   :  { %4760 = vtanh.f32 %v2471_v2  ;;  %v4990_v2 = vld [vmem:[#allocation9 + $0xe0] ss:$16 sps:$4 sm:$0xff]   ;;  %v6882_v50 = vld [vmem:[#allocation35_spill] sm:$0xff]  ;;  %v1679_v7 = vadd.f32 %v6883_v49, %v5993_v19  ;;  %v6884_v53 = vld [vmem:[#allocation37_spill] sm:$0xff] }
 0xd4b   :  { %4762 = vpow2.f32 %v2479_v43  ;;  %v1606_v1 = vadd.f32 %v6882_v50, %v5989_v58  ;;  %v1608_v3 = vadd.f32 %v6884_v53, %v6105_v26  ;;  %v6885_v43 = vld [vmem:[#allocation38_spill] sm:$0xff] }
 0xd4c   :  { %v4478_v50 = vld [vmem:[#allocation10 + $0x60] ss:$16 sps:$4 sm:$0xff]   ;;  %v4486_v49 = vld [vmem:[#allocation10 + $0x84] ss:$16 sps:$4 sm:$0xff]  }
 0xd4d   :  { %v4484_v53 = vld [vmem:[#allocation10 + $0x80] ss:$16 sps:$4 sm:$0xff]  }
 0xd52   :  { %v4757_v39 = vpop.eup %4756 }
 0xd53   :  { %v2481_v41 = vadd.f32 1.0, %v4757_v39  ;;  %v4759_v45 = vpop.eup %4758  ;;  %v1681_v39 = vadd.f32 %v6885_v43, %v6868_v9  ;;  %v4492_v43 = vld [vmem:[#allocation10 + $0xa4] ss:$16 sps:$4 sm:$0xff]  }
 0xd54   :  { %v2482_v13 = vadd.f32 1.0, %v4759_v45  ;;  %v4761_v15 = vpop.eup %4760 }
 0xd55   :  { %4764 = vrcp.f32 %v2481_v41  ;;  %v4763_v56 = vpop.eup %4762 }
 0xd56   :  { %4766 = vrcp.f32 %v2482_v13  ;;  %v2483_v25 = vadd.f32 1.0, %v4763_v56 }
 0xd58   :  { %4768 = vrcp.f32 %v2483_v25 }
 0xd5f   :  { %v4765_v61 = vpop.eup %4764 }
 0xd60   :  { %v2489_v24 = vmul.f32 %v4765_v61, %v4761_v15  ;;  %v4767_v20 = vpop.eup %4766 }
 0xd61   :  { %v2488_v48 = vmul.f32 %v4767_v20, %v6266_v30  ;;  %v4969_v30 = vld [vmem:[#allocation9 + $0x4c] ss:$16 sps:$4 sm:$0xff]  }
 0xd62   :  { %v4769_v46 = vpop.eup %4768 }
 0xd63   :  { %v6314_v18 = vadd.f32 %v2489_v24, %v2488_v48 }
 0xd65   :  { %4770 = vtanh.f32 %v6314_v18 }
 0xd6f   :  { %v4771_v28 = vpop.eup %4770 }
 0xd70   :  { %v6317_v60 = vmul.f32 %v4771_v28, %v4769_v46 }
 0xd72   :  { %v2498_v29 = vpack.c.bf16 %v6317_v60, %v6317_v60 }
 0xd74   :  { %2532 = vmatmul.mubr.bf16.vlgmr.msra.gmra.mrb[64].mxu0 %v2498_v29  ;;  %2573 = vmatmul.mubr.bf16.vlgmr.msra.gmra.mrb[64].mxu1 %v2498_v29 }
 0xd75   :  { %2613 = vmatpush1.bf16.msra.mxu0 %v4962_v16  ;;  %2654 = vmatpush1.bf16.msra.mxu1 %v4963_v27 }
 0xd76   :  { %2614 = vmatprep.subr.bf16.mxu0 %v4964_v59  ;;  %2655 = vmatprep.subr.bf16.mxu1 %v4965_v11 }
 0xd77   :  { %2644 = vmatprep.mubr.bf16.mxu0 %v6836_v5  ;;  %2685 = vmatprep.mubr.bf16.mxu1 %v6836_v5 }
 0xd79   :  { %2615 = vmatpush1.bf16.msra.mxu0 %v4966_v21  ;;  %2656 = vmatpush1.bf16.msra.mxu1 %v4967_v22 }
 0xd7a   :  { %2616 = vmatprep.subr.bf16.mxu0 %v4968_v44  ;;  %2657 = vmatprep.subr.bf16.mxu1 %v4969_v30 }
 0xd7d   :  { %2617 = vmatpush1.bf16.msra.mxu0 %v4970_v10  ;;  %2658 = vmatpush1.bf16.msra.mxu1 %v4971_v12 }
 0xd7e   :  { %2618 = vmatprep.subr.bf16.mxu0 %v4972_v23  ;;  %2659 = vmatprep.subr.bf16.mxu1 %v4973_v38 }
 0xd81   :  { %2619 = vmatpush1.bf16.msra.mxu0 %v4974_v51  ;;  %2660 = vmatpush1.bf16.msra.mxu1 %v4975_v52 }
 0xd82   :  { %2620 = vmatprep.subr.bf16.mxu0 %v4976_v57  ;;  %2661 = vmatprep.subr.bf16.mxu1 %v4977_v33 }
 0xd85   :  { %2621 = vmatpush1.bf16.msra.mxu0 %v4978_v34  ;;  %2662 = vmatpush1.bf16.msra.mxu1 %v4979_v35 }
 0xd86   :  { %2622 = vmatprep.subr.bf16.mxu0 %v4980_v36  ;;  %2663 = vmatprep.subr.bf16.mxu1 %v4981_v42 }
 0xd89   :  { %2623 = vmatpush1.bf16.msra.mxu0 %v4982_v40  ;;  %2664 = vmatpush1.bf16.msra.mxu1 %v4983_v8  ;;  %v4460_v40 = vld [vmem:[#allocation10] ss:$16 sps:$4 sm:$0xff]   ;;  %v4463_v8 = vld [vmem:[#allocation10 + $0x8] ss:$16 sps:$4 sm:$0xff]  }
 0xd8a   :  { %2624 = vmatprep.subr.bf16.mxu0 %v4984_v54  ;;  %2665 = vmatprep.subr.bf16.mxu1 %v4985_v47  ;;  %v4468_v47 = vld [vmem:[#allocation10 + $0x24] ss:$16 sps:$4 sm:$0xff]  }
 0xd8d   :  { %2625 = vmatpush1.bf16.msra.mxu0 %v4986_v62  ;;  %2666 = vmatpush1.bf16.msra.mxu1 %v4987_v37  ;;  %v4471_v62 = vld [vmem:[#allocation10 + $0x2c] ss:$16 sps:$4 sm:$0xff]   ;;  %v4469_v37 = vld [vmem:[#allocation10 + $0x28] ss:$16 sps:$4 sm:$0xff]  }
 0xd8e   :  { %2626 = vmatprep.subr.bf16.mxu0 %v4988_v0  ;;  %2667 = vmatprep.subr.bf16.mxu1 %v4989_v32  ;;  %v4474_v0 = vld [vmem:[#allocation10 + $0x44] ss:$16 sps:$4 sm:$0xff]   ;;  %v4477_v32 = vld [vmem:[#allocation10 + $0x4c] ss:$16 sps:$4 sm:$0xff]  }
 0xd91   :  { %2627 = vmatpush1.bf16.msra.mxu0 %v4990_v2  ;;  %2668 = vmatpush1.bf16.msra.mxu1 %v4991_v55  ;;  %v4472_v2 = vld [vmem:[#allocation10 + $0x40] ss:$16 sps:$4 sm:$0xff]   ;;  %v4475_v55 = vld [vmem:[#allocation10 + $0x48] ss:$16 sps:$4 sm:$0xff]  }
 0xd92   :  { %2946 = vmatprep.subr.bf16.mxu0 %v4462_v4  ;;  %3019 = vmatprep.subr.bf16.mxu1 %v4465_v6  ;;  %v4480_v4 = vld [vmem:[#allocation10 + $0x64] ss:$16 sps:$4 sm:$0xff]   ;;  %v4483_v6 = vld [vmem:[#allocation10 + $0x6c] ss:$16 sps:$4 sm:$0xff]  }
 0xe47   :  { %v2533_v41 = vpop.f32.mrb[64].mxu0  ;;  %v2574_v45 = vpop.f32.mrb[64].mxu1 }
 0xe48   :  { %v2581_v13 = vadd.f32 %v2533_v41, %v1606_v1  ;;  %v2583_v15 = vadd.f32 %v2574_v45, %v1679_v7  ;;  %v2535_v56 = vpop.f32.mrb[65].mxu0  ;;  %v2576_v61 = vpop.f32.mrb[65].mxu1  ;;  %v4481_v1 = vld [vmem:[#allocation10 + $0x68] ss:$16 sps:$4 sm:$0xff]   ;;  %v4489_v7 = vld [vmem:[#allocation10 + $0x8c] ss:$16 sps:$4 sm:$0xff]  }
 0xe49   :  { %v2582_v24 = vadd.f32 %v2535_v56, %v1608_v3  ;;  %v2584_v20 = vadd.f32 %v2576_v61, %v1681_v39  ;;  %v2537_v25 = vpop.f32.mrb[66].mxu0  ;;  %v2578_v48 = vpop.f32.mrb[66].mxu1  ;;  %v4487_v3 = vld [vmem:[#allocation10 + $0x88] ss:$16 sps:$4 sm:$0xff]   ;;  %v4495_v39 = vld [vmem:[#allocation10 + $0xac] ss:$16 sps:$4 sm:$0xff]  }
 0xe4a   :  { %v2585_v46 = vsub.f32 0.0, %v2581_v13  ;;  %v2538_v28 = vpop.f32.mrb[67].mxu0  ;;  %v2579_v29 = vpop.f32.mrb[67].mxu1  ;;  %v2587_v11 = vsub.f32 0.0, %v2583_v15  ;;  %v4490_v41 = vld [vmem:[#allocation10 + $0xa0] ss:$16 sps:$4 sm:$0xff]  }
 0xe4b   :  { %v2586_v16 = vsub.f32 0.0, %v2582_v24  ;;  %v4493_v45 = vld [vmem:[#allocation10 + $0xa8] ss:$16 sps:$4 sm:$0xff]   ;;  %v4498_v13 = vld [vmem:[#allocation10 + $0xc4] ss:$16 sps:$4 sm:$0xff]   ;;  %v2729_v29 = vpack.c.bf16 %v6219_v17, %v6169_v14 }
 0xe4c   :  { %v2588_v27 = vmul.f32 1.442695, %v2585_v46  ;;  %v2592_v21 = vmul.f32 1.442695, %v2587_v11  ;;  %v4501_v15 = vld [vmem:[#allocation10 + $0xcc] ss:$16 sps:$4 sm:$0xff]  }
 0xe4d   :  { %v2590_v59 = vmul.f32 1.442695, %v2586_v16  ;;  %v4496_v56 = vld [vmem:[#allocation10 + $0xc0] ss:$16 sps:$4 sm:$0xff]   ;;  %v4499_v61 = vld [vmem:[#allocation10 + $0xc8] ss:$16 sps:$4 sm:$0xff]   ;;  %v2730_v16 = vpack.c.bf16 %v6317_v60, %v6269_v31 }
 0xe4e   :  { %4772 = vpow2.f32 %v2588_v27  ;;  %v4504_v24 = vld [vmem:[#allocation10 + $0xe4] ss:$16 sps:$4 sm:$0xff]   ;;  %v4502_v25 = vld [vmem:[#allocation10 + $0xe0] ss:$16 sps:$4 sm:$0xff]   ;;  %v4505_v48 = vld [vmem:[#allocation10 + $0xe8] ss:$16 sps:$4 sm:$0xff]  }
 0xe4f   :  { %4774 = vpow2.f32 %v2590_v59  ;;  %v6886_v46 = vld [vmem:[#allocation34_spill] sm:$0xff]  ;;  %v6355_v27 = vld [vmem:[#allocation12 + $0xc] ss:$16 sps:$4 sm:$0xff]   ;;  %v6359_v17 = vld [vmem:[#allocation12 + $0x8] ss:$16 sps:$4 sm:$0xff]  }
 0xe50   :  { %4776 = vtanh.f32 %v2584_v20  ;;  %v4507_v20 = vld [vmem:[#allocation10 + $0xec] ss:$16 sps:$4 sm:$0xff]   ;;  %v2728_v28 = vpack.c.bf16 %v6119_v63, %v6886_v46  ;;  %v6353_v63 = vld [vmem:[#allocation12 + $0x4] ss:$16 sps:$4 sm:$0xff]   ;;  %v6357_v14 = vld [vmem:[#allocation12] ss:$16 sps:$4 sm:$0xff]  }
 0xe51   :  { %4778 = vpow2.f32 %v2592_v21  ;;  %v6365_v31 = vld [vmem:[#allocation12 + $0x24] ss:$16 sps:$4 sm:$0xff]   ;;  %v6367_v60 = vld [vmem:[#allocation12 + $0x2c] ss:$16 sps:$4 sm:$0xff]   ;;  %v6369_v59 = vld [vmem:[#allocation12 + $0x20] ss:$16 sps:$4 sm:$0xff]  }
 0xe52   :  { %v6371_v11 = vld [vmem:[#allocation12 + $0x28] ss:$16 sps:$4 sm:$0xff]   ;;  %v6377_v21 = vld [vmem:[#allocation12 + $0x44] ss:$16 sps:$4 sm:$0xff]  }
 0xe58   :  { %v4773_v22 = vpop.eup %4772 }
 0xe59   :  { %v2594_v44 = vadd.f32 1.0, %v4773_v22  ;;  %v4775_v30 = vpop.eup %4774  ;;  %v6379_v22 = vld [vmem:[#allocation12 + $0x4c] ss:$16 sps:$4 sm:$0xff]  }
 0xe5a   :  { %v2595_v10 = vadd.f32 1.0, %v4775_v30  ;;  %v4777_v12 = vpop.eup %4776  ;;  %v6383_v30 = vld [vmem:[#allocation12 + $0x48] ss:$16 sps:$4 sm:$0xff]  }
 0xe5b   :  { %4780 = vrcp.f32 %v2594_v44  ;;  %v4779_v23 = vpop.eup %4778  ;;  %v6381_v44 = vld [vmem:[#allocation12 + $0x40] ss:$16 sps:$4 sm:$0xff]  }
 0xe5c   :  { %4782 = vrcp.f32 %v2595_v10  ;;  %v2596_v57 = vadd.f32 1.0, %v4779_v23  ;;  %v6389_v10 = vld [vmem:[#allocation12 + $0x64] ss:$16 sps:$4 sm:$0xff]   ;;  %v6393_v23 = vld [vmem:[#allocation12 + $0x60] ss:$16 sps:$4 sm:$0xff]  }
 0xe5e   :  { %4784 = vrcp.f32 %v2596_v57  ;;  %v6405_v57 = vld [vmem:[#allocation12 + $0x80] ss:$16 sps:$4 sm:$0xff]  }
 0xe65   :  { %v4781_v38 = vpop.eup %4780 }
 0xe66   :  { %v2602_v51 = vmul.f32 %v4781_v38, %v4777_v12  ;;  %v4783_v52 = vpop.eup %4782  ;;  %v6391_v12 = vld [vmem:[#allocation12 + $0x6c] ss:$16 sps:$4 sm:$0xff]   ;;  %v6395_v38 = vld [vmem:[#allocation12 + $0x68] ss:$16 sps:$4 sm:$0xff]  }
 0xe67   :  { %v2601_v33 = vmul.f32 %v4783_v52, %v6314_v18  ;;  %v4466_v18 = vld [vmem:[#allocation10 + $0x20] ss:$16 sps:$4 sm:$0xff]   ;;  %v6403_v52 = vld [vmem:[#allocation12 + $0x8c] ss:$16 sps:$4 sm:$0xff]  }
 0xe68   :  { %v4785_v35 = vpop.eup %4784 }
 0xe69   :  { %v6332_v34 = vadd.f32 %v2602_v51, %v2601_v33  ;;  %v6401_v51 = vld [vmem:[#allocation12 + $0x84] ss:$16 sps:$4 sm:$0xff]   ;;  %v6407_v33 = vld [vmem:[#allocation12 + $0x88] ss:$16 sps:$4 sm:$0xff]  }
 0xe6b   :  { %4786 = vtanh.f32 %v6332_v34 }
 0xe75   :  { %v4787_v36 = vpop.eup %4786 }
 0xe76   :  { %v6335_v42 = vmul.f32 %v4787_v36, %v4785_v35  ;;  %v6411_v35 = vld [vmem:[#allocation12 + $0xa4] ss:$16 sps:$4 sm:$0xff]   ;;  %v6413_v36 = vld [vmem:[#allocation12 + $0xac] ss:$16 sps:$4 sm:$0xff]  }
 0xe78   :  { %v2611_v54 = vpack.c.bf16 %v6335_v42, %v6335_v42 }
 0xe7a   :  { %2645 = vmatmul.mubr.bf16.vlgmr.msra.gmra.mrb[68].mxu0 %v2611_v54  ;;  %2686 = vmatmul.mubr.bf16.vlgmr.msra.gmra.mrb[68].mxu1 %v2611_v54  ;;  %v6423_v54 = vld [vmem:[#allocation12 + $0xc4] ss:$16 sps:$4 sm:$0xff]  }
 0xe7b   :  { %2947 = vmatpush1.bf16.msra.mxu0 %v4460_v40  ;;  %3020 = vmatpush1.bf16.msra.mxu1 %v4463_v8  ;;  %v6417_v40 = vld [vmem:[#allocation12 + $0xa0] ss:$16 sps:$4 sm:$0xff]   ;;  %v6419_v8 = vld [vmem:[#allocation12 + $0xa8] ss:$16 sps:$4 sm:$0xff]  }
 0xe7c   :  { %2948 = vmatprep.subr.bf16.mxu0 %v4468_v47  ;;  %3021 = vmatprep.subr.bf16.mxu1 %v4471_v62  ;;  %v6425_v47 = vld [vmem:[#allocation12 + $0xcc] ss:$16 sps:$4 sm:$0xff]   ;;  %v6429_v62 = vld [vmem:[#allocation12 + $0xc0] ss:$16 sps:$4 sm:$0xff]  }
 0xe7d   :  { %2978 = vmatprep.mubr.bf16.mxu0 %v6836_v5  ;;  %3051 = vmatprep.mubr.bf16.mxu1 %v6836_v5 }
 0xe7f   :  { %2949 = vmatpush1.bf16.msra.mxu0 %v4466_v18  ;;  %3022 = vmatpush1.bf16.msra.mxu1 %v4469_v37  ;;  %v6431_v18 = vld [vmem:[#allocation12 + $0xc8] ss:$16 sps:$4 sm:$0xff]   ;;  %v6435_v37 = vld [vmem:[#allocation12 + $0xe4] ss:$16 sps:$4 sm:$0xff]  }
 0xe80   :  { %2950 = vmatprep.subr.bf16.mxu0 %v4474_v0  ;;  %3023 = vmatprep.subr.bf16.mxu1 %v4477_v32  ;;  %v6437_v0 = vld [vmem:[#allocation12 + $0xec] ss:$16 sps:$4 sm:$0xff]   ;;  %v6441_v32 = vld [vmem:[#allocation12 + $0xe0] ss:$16 sps:$4 sm:$0xff]  }
 0xe83   :  { %2951 = vmatpush1.bf16.msra.mxu0 %v4472_v2  ;;  %3024 = vmatpush1.bf16.msra.mxu1 %v4475_v55  ;;  %v6443_v2 = vld [vmem:[#allocation12 + $0xe8] ss:$16 sps:$4 sm:$0xff]  }
 0xe84   :  { %2952 = vmatprep.subr.bf16.mxu0 %v4480_v4  ;;  %3025 = vmatprep.subr.bf16.mxu1 %v4483_v6  ;;  %v6887_v55 = vld [vmem:[#allocation39_spill] sm:$0xff]  ;;  %v6888_v6 = vld [vmem:[#allocation40_spill] sm:$0xff] }
 0xe85   :  { %v1610_v4 = vadd.f32 %v6887_v55, %v5989_v58 }
 0xe87   :  { %2953 = vmatpush1.bf16.msra.mxu0 %v4478_v50  ;;  %3026 = vmatpush1.bf16.msra.mxu1 %v4481_v1  ;;  %v1683_v50 = vadd.f32 %v6888_v6, %v5993_v19  ;;  %v6889_v1 = vld [vmem:[#allocation41_spill] sm:$0xff] }
 0xe88   :  { %2954 = vmatprep.subr.bf16.mxu0 %v4486_v49  ;;  %3027 = vmatprep.subr.bf16.mxu1 %v4489_v7  ;;  %v1612_v49 = vadd.f32 %v6889_v1, %v6105_v26  ;;  %v6890_v7 = vld [vmem:[#allocation42_spill] sm:$0xff]  ;;  %v6891_v1 = vld [vmem:[#allocation16_spill] sm:$0xff] }
 0xe8b   :  { %2955 = vmatpush1.bf16.msra.mxu0 %v4484_v53  ;;  %3028 = vmatpush1.bf16.msra.mxu1 %v4487_v3  ;;  %v1685_v53 = vadd.f32 %v6890_v7, %v6868_v9 }
 0xe8c   :  { %2956 = vmatprep.subr.bf16.mxu0 %v4492_v43  ;;  %3029 = vmatprep.subr.bf16.mxu1 %v4495_v39 }
 0xe8f   :  { %2957 = vmatpush1.bf16.msra.mxu0 %v4490_v41  ;;  %3030 = vmatpush1.bf16.msra.mxu1 %v4493_v45 }
 0xe90   :  { %2958 = vmatprep.subr.bf16.mxu0 %v4498_v13  ;;  %3031 = vmatprep.subr.bf16.mxu1 %v4501_v15 }
 0xe93   :  { %2959 = vmatpush1.bf16.msra.mxu0 %v4496_v56  ;;  %3032 = vmatpush1.bf16.msra.mxu1 %v4499_v61 }
 0xe94   :  { %2960 = vmatprep.subr.bf16.mxu0 %v4504_v24  ;;  %3033 = vmatprep.subr.bf16.mxu1 %v4507_v20 }
 0xe97   :  { %2961 = vmatpush1.bf16.msra.mxu0 %v4502_v25  ;;  %3034 = vmatpush1.bf16.msra.mxu1 %v4505_v48 }
 0xe98   :  { %3338 = vmatprep.subr.bf16.mxu0 %v6353_v63  ;;  %3379 = vmatprep.subr.bf16.mxu1 %v6355_v27 }
 0xe9a   :  { %2979 = vmatmul.mubr.bf16.vlgmr.msra.gmra.mrb[72].mxu0 %v2728_v28  ;;  %3052 = vmatmul.mubr.bf16.vlgmr.msra.gmra.mrb[72].mxu1 %v2728_v28 }
 0xe9b   :  { %2988 = vmatprep.mubr.bf16.mxu0 %v6836_v5  ;;  %3061 = vmatprep.mubr.bf16.mxu1 %v6836_v5 }
 0xe9c   :  { %3339 = vmatpush1.bf16.msra.mxu0 %v6357_v14  ;;  %3380 = vmatpush1.bf16.msra.mxu1 %v6359_v17 }
 0xe9d   :  { %3340 = vmatprep.subr.bf16.mxu0 %v6365_v31  ;;  %3381 = vmatprep.subr.bf16.mxu1 %v6367_v60 }
 0xea0   :  { %3341 = vmatpush1.bf16.msra.mxu0 %v6369_v59  ;;  %3382 = vmatpush1.bf16.msra.mxu1 %v6371_v11 }
 0xea1   :  { %3342 = vmatprep.subr.bf16.mxu0 %v6377_v21  ;;  %3383 = vmatprep.subr.bf16.mxu1 %v6379_v22 }
 0xea2   :  { %2989 = vmatmul.mubr.bf16.gmra.mrb[76].mxu0 %v2729_v29  ;;  %3062 = vmatmul.mubr.bf16.gmra.mrb[76].mxu1 %v2729_v29 }
 0xea3   :  { %2998 = vmatprep.mubr.bf16.mxu0 %v6836_v5  ;;  %3071 = vmatprep.mubr.bf16.mxu1 %v6836_v5 }
 0xea4   :  { %3343 = vmatpush1.bf16.msra.mxu0 %v6381_v44  ;;  %3384 = vmatpush1.bf16.msra.mxu1 %v6383_v30 }
 0xea5   :  { %3344 = vmatprep.subr.bf16.mxu0 %v6389_v10  ;;  %3385 = vmatprep.subr.bf16.mxu1 %v6391_v12 }
 0xea8   :  { %3345 = vmatpush1.bf16.msra.mxu0 %v6393_v23  ;;  %3386 = vmatpush1.bf16.msra.mxu1 %v6395_v38 }
 0xea9   :  { %3346 = vmatprep.subr.bf16.mxu0 %v6401_v51  ;;  %3387 = vmatprep.subr.bf16.mxu1 %v6403_v52 }
 0xeaa   :  { %2999 = vmatmul.mubr.bf16.gmra.mrb[80].mxu0 %v2730_v16  ;;  %3072 = vmatmul.mubr.bf16.gmra.mrb[80].mxu1 %v2730_v16 }
 0xeab   :  { %3008 = vmatprep.mubr.bf16.mxu0 %v6836_v5  ;;  %3081 = vmatprep.mubr.bf16.mxu1 %v6836_v5 }
 0xeac   :  { %3347 = vmatpush1.bf16.msra.mxu0 %v6405_v57  ;;  %3388 = vmatpush1.bf16.msra.mxu1 %v6407_v33 }
 0xead   :  { %3348 = vmatprep.subr.bf16.mxu0 %v6411_v35  ;;  %3389 = vmatprep.subr.bf16.mxu1 %v6413_v36 }
 0xeb0   :  { %3349 = vmatpush1.bf16.msra.mxu0 %v6417_v40  ;;  %3390 = vmatpush1.bf16.msra.mxu1 %v6419_v8 }
 0xeb1   :  { %3350 = vmatprep.subr.bf16.mxu0 %v6423_v54  ;;  %3391 = vmatprep.subr.bf16.mxu1 %v6425_v47 }
 0xeb4   :  { %3351 = vmatpush1.bf16.msra.mxu0 %v6429_v62  ;;  %3392 = vmatpush1.bf16.msra.mxu1 %v6431_v18 }
 0xeb5   :  { %3352 = vmatprep.subr.bf16.mxu0 %v6435_v37  ;;  %3393 = vmatprep.subr.bf16.mxu1 %v6437_v0 }
 0xeb8   :  { %3353 = vmatpush1.bf16.msra.mxu0 %v6441_v32  ;;  %3394 = vmatpush1.bf16.msra.mxu1 %v6443_v2 }
 0xeb9   :  { %3450 = vmatprep.subr.bf16.mxu0 %v6353_v63  ;;  %3491 = vmatprep.subr.bf16.mxu1 %v6355_v27 }
 0xf4d   :  { %v2646_v3 = vpop.f32.mrb[68].mxu0  ;;  %v2687_v43 = vpop.f32.mrb[68].mxu1 }
 0xf4e   :  { %v2694_v39 = vadd.f32 %v2646_v3, %v1610_v4  ;;  %v2696_v41 = vadd.f32 %v2687_v43, %v1683_v50  ;;  %v2648_v45 = vpop.f32.mrb[69].mxu0  ;;  %v2689_v13 = vpop.f32.mrb[69].mxu1  ;;  %v6462_v4 = vld [vmem:[%s6808_s9] sm:$0xf]  ;;  %v6892_v3 = vld [vmem:[#allocation17_spill] sm:$0xff] }
 0xf4f   :  { %v2695_v15 = vadd.f32 %v2648_v45, %v1612_v49  ;;  %v2697_v56 = vadd.f32 %v2689_v13, %v1685_v53  ;;  %v2650_v61 = vpop.f32.mrb[70].mxu0  ;;  %v2691_v24 = vpop.f32.mrb[70].mxu1  ;;  %v6466_v49 = vrot.slane %v6462_v4, %v6891_v1  ;;  %v6470_v43 = vrot.slane %v6462_v4, %v6892_v3 }
 0xf50   :  { %v2698_v58 = vsub.f32 0.0, %v2694_v39  ;;  %v2651_v20 = vpop.f32.mrb[71].mxu0  ;;  %v2692_v25 = vpop.f32.mrb[71].mxu1  ;;  %v2700_v26 = vsub.f32 0.0, %v2696_v41 }
 0xf51   :  { %v2699_v19 = vsub.f32 0.0, %v2695_v15 }
 0xf52   :  { %v2701_v48 = vmul.f32 1.442695, %v2698_v58  ;;  %v2705_v9 = vmul.f32 1.442695, %v2700_v26 }
 0xf53   :  { %v2703_v46 = vmul.f32 1.442695, %v2699_v19 }
 0xf54   :  { %4788 = vpow2.f32 %v2701_v48 }
 0xf55   :  { %4790 = vpow2.f32 %v2703_v46 }
 0xf56   :  { %4792 = vtanh.f32 %v2697_v56 }
 0xf57   :  { %4794 = vpow2.f32 %v2705_v9 }
 0xf5e   :  { %v4789_v28 = vpop.eup %4788 }
 0xf5f   :  { %v2707_v29 = vadd.f32 1.0, %v4789_v28  ;;  %v4791_v16 = vpop.eup %4790 }
 0xf60   :  { %v2708_v55 = vadd.f32 1.0, %v4791_v16  ;;  %v4793_v6 = vpop.eup %4792 }
 0xf61   :  { %4796 = vrcp.f32 %v2707_v29  ;;  %v4795_v50 = vpop.eup %4794 }
 0xf62   :  { %4798 = vrcp.f32 %v2708_v55  ;;  %v2709_v41 = vadd.f32 1.0, %v4795_v50 }
 0xf64   :  { %4800 = vrcp.f32 %v2709_v41 }
 0xf6b   :  { %v4797_v7 = vpop.eup %4796 }
 0xf6c   :  { %v2715_v53 = vmul.f32 %v4797_v7, %v4793_v6  ;;  %v4799_v39 = vpop.eup %4798  ;;  %v6896_v7 = vld [vmem:[#allocation18_spill] sm:$0xff] }
 0xf6d   :  { %v2980_v45 = vpop.f32.mrb[72].mxu0  ;;  %v3053_v13 = vpop.f32.mrb[72].mxu1  ;;  %v2714_v15 = vmul.f32 %v4799_v39, %v6332_v34 }
 0xf6e   :  { %v2981_v56 = vadd.f32 %v2980_v45, %v6466_v49  ;;  %v2982_v61 = vpop.f32.mrb[73].mxu0  ;;  %v3055_v24 = vpop.f32.mrb[73].mxu1  ;;  %v3054_v48 = vadd.f32 %v3053_v13, %v6470_v43 }
 0xf6f   :  { %v6474_v58 = vpop.f32.mrb[74].mxu0  ;;  %v6476_v20 = vpop.f32.mrb[74].mxu1  ;;  %v2716_v25 = vadd.f32 %v2715_v53, %v2714_v15  ;;  %v6497_v53 = vrot.slane %v6462_v4, %v6896_v7 }
 0xf70   :  { %v3127_v19 = vsub.f32 0.0, %v2981_v56  ;;  %v6479_v46 = vpop.f32.mrb[75].mxu0  ;;  %v6481_v26 = vpop.f32.mrb[75].mxu1  ;;  %v3128_v34 = vsub.f32 0.0, %v3054_v48 }
 0xf71   :  { %4802 = vtanh.f32 %v2716_v25  ;;  %6897 = vst [vmem:[#allocation22_spill] sm:$0xff] %v6497_v53  ;;  %v4801_v41 = vpop.eup %4800  ;;  %v3056_v13 = vadd.f32 %v3055_v24, %v6497_v53 }
 0xf72   :  { %v3129_v9 = vmul.f32 1.442695, %v3127_v19  ;;  %v3131_v1 = vmul.f32 1.442695, %v3128_v34 }
 0xf74   :  { %4804 = vpow2.f32 %v3129_v9 }
 0xf75   :  { %v6483_v28 = vpop.f32.mrb[76].mxu0  ;;  %v6485_v29 = vpop.f32.mrb[76].mxu1  ;;  %4806 = vpow2.f32 %v3131_v1 }
 0xf76   :  { %v6487_v16 = vpop.f32.mrb[77].mxu0  ;;  %v6489_v55 = vpop.f32.mrb[77].mxu1  ;;  %4808 = vtanh.f32 %v3056_v13 }
 0xf77   :  { %6893 = vst [vmem:[#allocation23_spill] sm:$0xff] %v6489_v55  ;;  %v6491_v6 = vpop.f32.mrb[78].mxu0  ;;  %v6493_v50 = vpop.f32.mrb[78].mxu1 }
 0xf78   :  { %6894 = vst [vmem:[#allocation19_spill] sm:$0xff] %v6491_v6  ;;  %6895 = vst [vmem:[#allocation21_spill] sm:$0xff] %v6493_v50  ;;  %v6499_v3 = vpop.f32.mrb[79].mxu0  ;;  %v6501_v39 = vpop.f32.mrb[79].mxu1 }
 0xf79   :  { %6898 = vst [vmem:[#allocation24_spill] sm:$0xff] %v6499_v3  ;;  %6899 = vst [vmem:[#allocation25_spill] sm:$0xff] %v6501_v39 }
 0xf7b   :  { %v4803_v45 = vpop.eup %4802 }
 0xf7c   :  { %v2718_v61 = vmul.f32 %v4803_v45, %v4801_v41 }
 0xf7d   :  { %v6504_v15 = vpop.f32.mrb[80].mxu0  ;;  %v6506_v56 = vpop.f32.mrb[80].mxu1 }
 0xf7e   :  { %6900 = vst [vmem:[#allocation26_spill] sm:$0xff] %v6504_v15  ;;  %6901 = vst [vmem:[#allocation27_spill] sm:$0xff] %v6506_v56  ;;  %v4805_v25 = vpop.eup %4804  ;;  %v6508_v19 = vpop.f32.mrb[81].mxu0  ;;  %v2731_v39 = vpack.c.bf16 %v2718_v61, %v6335_v42 }
 0xf7f   :  { %6902 = vst [vmem:[#allocation28_spill] sm:$0xff] %v6508_v19  ;;  %v6510_v48 = vpop.f32.mrb[81].mxu1  ;;  %v3133_v9 = vadd.f32 1.0, %v4805_v25  ;;  %v6512_v34 = vpop.f32.mrb[82].mxu0 }
 0xf80   :  { %6903 = vst [vmem:[#allocation29_spill] sm:$0xff] %v6510_v48  ;;  %6904 = vst [vmem:[#allocation30_spill] sm:$0xff] %v6512_v34  ;;  %v6514_v7 = vpop.f32.mrb[82].mxu1  ;;  %v6517_v1 = vpop.f32.mrb[83].mxu0  ;;  %3009 = vmatmul.mubr.bf16.gmra.mrb[84].mxu0 %v2731_v39  ;;  %3082 = vmatmul.mubr.bf16.gmra.mrb[84].mxu1 %v2731_v39 }
 0xf81   :  { %6905 = vst [vmem:[#allocation31_spill] sm:$0xff] %v6514_v7  ;;  %6906 = vst [vmem:[#allocation32_spill] sm:$0xff] %v6517_v1  ;;  %v6519_v24 = vpop.f32.mrb[83].mxu1  ;;  %4810 = vrcp.f32 %v3133_v9  ;;  %3370 = vmatprep.mubr.bf16.mxu0 %v6836_v5  ;;  %3411 = vmatprep.mubr.bf16.mxu1 %v6836_v5  ;;  %v4807_v41 = vpop.eup %4806 }
 0xf82   :  { %6907 = vst [vmem:[#allocation33_spill] sm:$0xff] %v6519_v24  ;;  %v3134_v45 = vadd.f32 1.0, %v4807_v41  ;;  %v4809_v25 = vpop.eup %4808 }
 0xf84   :  { %4812 = vrcp.f32 %v3134_v45 }
 0xf8b   :  { %v4811_v34 = vpop.eup %4810 }
 0xf8c   :  { %v6523_v48 = vmul.f32 %v4811_v34, %v4809_v25 }
 0xf8e   :  { %4814 = vtanh.f32 %v6523_v48  ;;  %v4813_v42 = vpop.eup %4812 }
 0xf98   :  { %v4815_v13 = vpop.eup %4814 }
 0xf99   :  { %v3140_v61 = vmul.f32 %v4815_v13, %v4813_v42  ;;  %v6916_v13 = vld [vmem:[#allocation20_spill] sm:$0xff] }
 0xf9b   :  { %v3177_v24 = vpack.c.bf16 %v3140_v61, %v3140_v61  ;;  %v6578_v61 = vrot.slane %v6462_v4, %v6916_v13 }
 0xf9d   :  { %3371 = vmatmul.mubr.bf16.vlgmr.msra.gmra.mrb[88].mxu0 %v3177_v24  ;;  %3412 = vmatmul.mubr.bf16.vlgmr.msra.gmra.mrb[88].mxu1 %v3177_v24 }
 0xf9e   :  { %3451 = vmatpush1.bf16.msra.mxu0 %v6357_v14  ;;  %3492 = vmatpush1.bf16.msra.mxu1 %v6359_v17 }
 0xf9f   :  { %3452 = vmatprep.subr.bf16.mxu0 %v6365_v31  ;;  %3493 = vmatprep.subr.bf16.mxu1 %v6367_v60 }
 0xfa0   :  { %3482 = vmatprep.mubr.bf16.mxu0 %v6836_v5  ;;  %3523 = vmatprep.mubr.bf16.mxu1 %v6836_v5 }
 0xfa2   :  { %3453 = vmatpush1.bf16.msra.mxu0 %v6369_v59  ;;  %3494 = vmatpush1.bf16.msra.mxu1 %v6371_v11 }
 0xfa3   :  { %3454 = vmatprep.subr.bf16.mxu0 %v6377_v21  ;;  %3495 = vmatprep.subr.bf16.mxu1 %v6379_v22 }
 0xfa6   :  { %3455 = vmatpush1.bf16.msra.mxu0 %v6381_v44  ;;  %3496 = vmatpush1.bf16.msra.mxu1 %v6383_v30 }
 0xfa7   :  { %3456 = vmatprep.subr.bf16.mxu0 %v6389_v10  ;;  %3497 = vmatprep.subr.bf16.mxu1 %v6391_v12 }
 0xfaa   :  { %3457 = vmatpush1.bf16.msra.mxu0 %v6393_v23  ;;  %3498 = vmatpush1.bf16.msra.mxu1 %v6395_v38 }
 0xfab   :  { %3458 = vmatprep.subr.bf16.mxu0 %v6401_v51  ;;  %3499 = vmatprep.subr.bf16.mxu1 %v6403_v52 }
 0xfae   :  { %3459 = vmatpush1.bf16.msra.mxu0 %v6405_v57  ;;  %3500 = vmatpush1.bf16.msra.mxu1 %v6407_v33 }
 0xfaf   :  { %3460 = vmatprep.subr.bf16.mxu0 %v6411_v35  ;;  %3501 = vmatprep.subr.bf16.mxu1 %v6413_v36 }
 0xfb2   :  { %3461 = vmatpush1.bf16.msra.mxu0 %v6417_v40  ;;  %3502 = vmatpush1.bf16.msra.mxu1 %v6419_v8 }
 0xfb3   :  { %3462 = vmatprep.subr.bf16.mxu0 %v6423_v54  ;;  %3503 = vmatprep.subr.bf16.mxu1 %v6425_v47 }
 0xfb6   :  { %3463 = vmatpush1.bf16.msra.mxu0 %v6429_v62  ;;  %3504 = vmatpush1.bf16.msra.mxu1 %v6431_v18 }
 0xfb7   :  { %3464 = vmatprep.subr.bf16.mxu0 %v6435_v37  ;;  %3505 = vmatprep.subr.bf16.mxu1 %v6437_v0 }
 0xfba   :  { %3465 = vmatpush1.bf16.msra.mxu0 %v6441_v32  ;;  %3506 = vmatpush1.bf16.msra.mxu1 %v6443_v2 }
 0xfbb   :  { %3562 = vmatprep.subr.bf16.mxu0 %v6353_v63  ;;  %3603 = vmatprep.subr.bf16.mxu1 %v6355_v27 }
0x1053   :  { %v6560_v39 = vpop.f32.mrb[84].mxu0  ;;  %v6562_v9 = vpop.f32.mrb[84].mxu1 }
0x1054   :  { %6908 = vst [vmem:[#allocation35_spill] sm:$0xff] %v6560_v39  ;;  %6909 = vst [vmem:[#allocation36_spill] sm:$0xff] %v6562_v9  ;;  %v6564_v34 = vpop.f32.mrb[85].mxu0  ;;  %v6566_v24 = vpop.f32.mrb[85].mxu1  ;;  %v2985_v39 = vadd.f32 %v6474_v58, %v6466_v49 }
0x1055   :  { %6910 = vst [vmem:[#allocation37_spill] sm:$0xff] %v6564_v34  ;;  %6911 = vst [vmem:[#allocation38_spill] sm:$0xff] %v6566_v24  ;;  %v6568_v41 = vpop.f32.mrb[86].mxu0  ;;  %v6570_v45 = vpop.f32.mrb[86].mxu1  ;;  %v3058_v34 = vadd.f32 %v6476_v20, %v6470_v43  ;;  %v2987_v24 = vadd.f32 %v6479_v46, %v6578_v61 }
0x1056   :  { %6912 = vst [vmem:[#allocation34_spill] sm:$0xff] %v6568_v41  ;;  %6913 = vst [vmem:[#allocation39_spill] sm:$0xff] %v6570_v45  ;;  %v6572_v25 = vpop.f32.mrb[87].mxu0  ;;  %v6574_v42 = vpop.f32.mrb[87].mxu1  ;;  %v3060_v45 = vadd.f32 %v6481_v26, %v6497_v53 }
0x1057   :  { %6914 = vst [vmem:[#allocation40_spill] sm:$0xff] %v6572_v25  ;;  %6915 = vst [vmem:[#allocation41_spill] sm:$0xff] %v6574_v42 }
0x1070   :  { %v3372_v41 = vpop.f32.mrb[88].mxu0  ;;  %v3413_v25 = vpop.f32.mrb[88].mxu1 }
0x1071   :  { %v3420_v9 = vadd.f32 %v3372_v41, %v2985_v39  ;;  %v3422_v42 = vadd.f32 %v3413_v25, %v3058_v34  ;;  %v3374_v1 = vpop.f32.mrb[89].mxu0  ;;  %v3415_v7 = vpop.f32.mrb[89].mxu1  ;;  %v6917_v25 = vld [vmem:[#allocation22_spill] sm:$0xff] }
0x1072   :  { %v3421_v4 = vadd.f32 %v3374_v1, %v2987_v24  ;;  %v3423_v13 = vadd.f32 %v3415_v7, %v3060_v45  ;;  %v3376_v19 = vpop.f32.mrb[90].mxu0  ;;  %v3417_v56 = vpop.f32.mrb[90].mxu1  ;;  %v2993_v45 = vadd.f32 %v6487_v16, %v6578_v61 }
0x1073   :  { %v3424_v58 = vsub.f32 0.0, %v3420_v9  ;;  %v3377_v15 = vpop.f32.mrb[91].mxu0  ;;  %v3418_v3 = vpop.f32.mrb[91].mxu1  ;;  %v3426_v46 = vsub.f32 0.0, %v3422_v42  ;;  %v6918_v42 = vld [vmem:[#allocation23_spill] sm:$0xff] }
0x1074   :  { %v3425_v20 = vsub.f32 0.0, %v3421_v4  ;;  %v3066_v4 = vadd.f32 %v6918_v42, %v6917_v25 }
0x1075   :  { %v3427_v50 = vmul.f32 1.442695, %v3424_v58  ;;  %v3431_v26 = vmul.f32 1.442695, %v3426_v46 }
0x1076   :  { %v3429_v6 = vmul.f32 1.442695, %v3425_v20 }
0x1077   :  { %4816 = vpow2.f32 %v3427_v50 }
0x1078   :  { %4818 = vpow2.f32 %v3429_v6 }
0x1079   :  { %4820 = vtanh.f32 %v3423_v13 }
0x107a   :  { %4822 = vpow2.f32 %v3431_v26 }
0x1081   :  { %v4817_v55 = vpop.eup %4816 }
0x1082   :  { %v3433_v53 = vadd.f32 1.0, %v4817_v55  ;;  %v4819_v39 = vpop.eup %4818 }
0x1083   :  { %v3434_v1 = vadd.f32 1.0, %v4819_v39  ;;  %v4821_v19 = vpop.eup %4820 }
0x1084   :  { %4824 = vrcp.f32 %v3433_v53  ;;  %v4823_v56 = vpop.eup %4822  ;;  %v2991_v53 = vadd.f32 %v6483_v28, %v6466_v49 }
0x1085   :  { %4826 = vrcp.f32 %v3434_v1  ;;  %v3435_v9 = vadd.f32 1.0, %v4823_v56 }
0x1087   :  { %4828 = vrcp.f32 %v3435_v9 }
0x108e   :  { %v4825_v7 = vpop.eup %4824 }
0x108f   :  { %v3441_v15 = vmul.f32 %v4825_v7, %v4821_v19  ;;  %v4827_v3 = vpop.eup %4826 }
0x1090   :  { %v3440_v34 = vmul.f32 %v4827_v3, %v6523_v48  ;;  %v3064_v48 = vadd.f32 %v6485_v29, %v6470_v43 }
0x1091   :  { %v4829_v55 = vpop.eup %4828 }
0x1092   :  { %v6589_v50 = vadd.f32 %v3441_v15, %v3440_v34 }
0x1094   :  { %4830 = vtanh.f32 %v6589_v50 }
0x109e   :  { %v4831_v6 = vpop.eup %4830 }
0x109f   :  { %v3444_v24 = vmul.f32 %v4831_v6, %v4829_v55 }
0x10a1   :  { %v3449_v41 = vpack.c.bf16 %v3444_v24, %v3444_v24 }
0x10a3   :  { %3483 = vmatmul.mubr.bf16.vlgmr.msra.gmra.mrb[92].mxu0 %v3449_v41  ;;  %3524 = vmatmul.mubr.bf16.vlgmr.msra.gmra.mrb[92].mxu1 %v3449_v41 }
0x10a4   :  { %3563 = vmatpush1.bf16.msra.mxu0 %v6357_v14  ;;  %3604 = vmatpush1.bf16.msra.mxu1 %v6359_v17 }
0x10a5   :  { %3564 = vmatprep.subr.bf16.mxu0 %v6365_v31  ;;  %3605 = vmatprep.subr.bf16.mxu1 %v6367_v60 }
0x10a6   :  { %3594 = vmatprep.mubr.bf16.mxu0 %v6836_v5  ;;  %3635 = vmatprep.mubr.bf16.mxu1 %v6836_v5 }
0x10a8   :  { %3565 = vmatpush1.bf16.msra.mxu0 %v6369_v59  ;;  %3606 = vmatpush1.bf16.msra.mxu1 %v6371_v11 }
0x10a9   :  { %3566 = vmatprep.subr.bf16.mxu0 %v6377_v21  ;;  %3607 = vmatprep.subr.bf16.mxu1 %v6379_v22 }
0x10ac   :  { %3567 = vmatpush1.bf16.msra.mxu0 %v6381_v44  ;;  %3608 = vmatpush1.bf16.msra.mxu1 %v6383_v30 }
0x10ad   :  { %3568 = vmatprep.subr.bf16.mxu0 %v6389_v10  ;;  %3609 = vmatprep.subr.bf16.mxu1 %v6391_v12 }
0x10b0   :  { %3569 = vmatpush1.bf16.msra.mxu0 %v6393_v23  ;;  %3610 = vmatpush1.bf16.msra.mxu1 %v6395_v38 }
0x10b1   :  { %3570 = vmatprep.subr.bf16.mxu0 %v6401_v51  ;;  %3611 = vmatprep.subr.bf16.mxu1 %v6403_v52 }
0x10b4   :  { %3571 = vmatpush1.bf16.msra.mxu0 %v6405_v57  ;;  %3612 = vmatpush1.bf16.msra.mxu1 %v6407_v33 }
0x10b5   :  { %3572 = vmatprep.subr.bf16.mxu0 %v6411_v35  ;;  %3613 = vmatprep.subr.bf16.mxu1 %v6413_v36 }
0x10b8   :  { %3573 = vmatpush1.bf16.msra.mxu0 %v6417_v40  ;;  %3614 = vmatpush1.bf16.msra.mxu1 %v6419_v8 }
0x10b9   :  { %3574 = vmatprep.subr.bf16.mxu0 %v6423_v54  ;;  %3615 = vmatprep.subr.bf16.mxu1 %v6425_v47 }
0x10bc   :  { %3575 = vmatpush1.bf16.msra.mxu0 %v6429_v62  ;;  %3616 = vmatpush1.bf16.msra.mxu1 %v6431_v18 }
0x10bd   :  { %3576 = vmatprep.subr.bf16.mxu0 %v6435_v37  ;;  %3617 = vmatprep.subr.bf16.mxu1 %v6437_v0 }
0x10c0   :  { %3577 = vmatpush1.bf16.msra.mxu0 %v6441_v32  ;;  %3618 = vmatpush1.bf16.msra.mxu1 %v6443_v2 }
0x10c1   :  { %3674 = vmatprep.subr.bf16.mxu0 %v6353_v63  ;;  %3715 = vmatprep.subr.bf16.mxu1 %v6355_v27 }
0x1176   :  { %v3484_v13 = vpop.f32.mrb[92].mxu0  ;;  %v3525_v58 = vpop.f32.mrb[92].mxu1 }
0x1177   :  { %v3532_v20 = vadd.f32 %v3484_v13, %v2991_v53  ;;  %v3534_v46 = vadd.f32 %v3525_v58, %v3064_v48  ;;  %v3486_v26 = vpop.f32.mrb[93].mxu0  ;;  %v3527_v39 = vpop.f32.mrb[93].mxu1 }
0x1178   :  { %v3533_v1 = vadd.f32 %v3486_v26, %v2993_v45  ;;  %v3535_v19 = vadd.f32 %v3527_v39, %v3066_v4  ;;  %v3488_v56 = vpop.f32.mrb[94].mxu0  ;;  %v3529_v7 = vpop.f32.mrb[94].mxu1 }
0x1179   :  { %v3536_v28 = vsub.f32 0.0, %v3532_v20  ;;  %v3489_v15 = vpop.f32.mrb[95].mxu0  ;;  %v3530_v3 = vpop.f32.mrb[95].mxu1  ;;  %v3538_v16 = vsub.f32 0.0, %v3534_v46  ;;  %v6920_v7 = vld [vmem:[#allocation21_spill] sm:$0xff] }
0x117a   :  { %v3537_v29 = vsub.f32 0.0, %v3533_v1  ;;  %v6921_v15 = vld [vmem:[#allocation24_spill] sm:$0xff] }
0x117b   :  { %v3539_v9 = vmul.f32 1.442695, %v3536_v28  ;;  %v3543_v55 = vmul.f32 1.442695, %v3538_v16  ;;  %v3068_v28 = vadd.f32 %v6920_v7, %v6470_v43  ;;  %v2997_v3 = vadd.f32 %v6921_v15, %v6578_v61 }
0x117c   :  { %v3541_v34 = vmul.f32 1.442695, %v3537_v29  ;;  %v6922_v29 = vld [vmem:[#allocation25_spill] sm:$0xff] }
0x117d   :  { %4832 = vpow2.f32 %v3539_v9  ;;  %v3070_v9 = vadd.f32 %v6922_v29, %v6917_v25 }
0x117e   :  { %4834 = vpow2.f32 %v3541_v34 }
0x117f   :  { %4836 = vtanh.f32 %v3535_v19 }
0x1180   :  { %4838 = vpow2.f32 %v3543_v55 }
0x1187   :  { %v4833_v6 = vpop.eup %4832 }
0x1188   :  { %v3545_v24 = vadd.f32 1.0, %v4833_v6  ;;  %v4835_v41 = vpop.eup %4834 }
0x1189   :  { %v3546_v53 = vadd.f32 1.0, %v4835_v41  ;;  %v4837_v48 = vpop.eup %4836 }
0x118a   :  { %4840 = vrcp.f32 %v3545_v24  ;;  %v4839_v45 = vpop.eup %4838 }
0x118b   :  { %4842 = vrcp.f32 %v3546_v53  ;;  %v3547_v58 = vadd.f32 1.0, %v4839_v45 }
0x118d   :  { %4844 = vrcp.f32 %v3547_v58 }
0x1194   :  { %v4841_v42 = vpop.eup %4840 }
0x1195   :  { %v3553_v4 = vmul.f32 %v4841_v42, %v4837_v48  ;;  %v4843_v13 = vpop.eup %4842 }
0x1196   :  { %v3552_v20 = vmul.f32 %v4843_v13, %v6589_v50  ;;  %v6919_v50 = vld [vmem:[#allocation19_spill] sm:$0xff] }
0x1197   :  { %v4845_v46 = vpop.eup %4844  ;;  %v2995_v56 = vadd.f32 %v6919_v50, %v6466_v49 }
0x1198   :  { %v6635_v26 = vadd.f32 %v3553_v4, %v3552_v20 }
0x119a   :  { %4846 = vtanh.f32 %v6635_v26 }
0x11a4   :  { %v4847_v39 = vpop.eup %4846 }
0x11a5   :  { %v3556_v1 = vmul.f32 %v4847_v39, %v4845_v46 }
0x11a7   :  { %v3561_v19 = vpack.c.bf16 %v3556_v1, %v3556_v1 }
0x11a9   :  { %3595 = vmatmul.mubr.bf16.vlgmr.msra.gmra.mrb[96].mxu0 %v3561_v19  ;;  %3636 = vmatmul.mubr.bf16.vlgmr.msra.gmra.mrb[96].mxu1 %v3561_v19 }
0x11aa   :  { %3675 = vmatpush1.bf16.msra.mxu0 %v6357_v14  ;;  %3716 = vmatpush1.bf16.msra.mxu1 %v6359_v17 }
0x11ab   :  { %3676 = vmatprep.subr.bf16.mxu0 %v6365_v31  ;;  %3717 = vmatprep.subr.bf16.mxu1 %v6367_v60 }
0x11ac   :  { %3706 = vmatprep.mubr.bf16.mxu0 %v6836_v5  ;;  %3747 = vmatprep.mubr.bf16.mxu1 %v6836_v5 }
0x11ae   :  { %3677 = vmatpush1.bf16.msra.mxu0 %v6369_v59  ;;  %3718 = vmatpush1.bf16.msra.mxu1 %v6371_v11 }
0x11af   :  { %3678 = vmatprep.subr.bf16.mxu0 %v6377_v21  ;;  %3719 = vmatprep.subr.bf16.mxu1 %v6379_v22 }
0x11b2   :  { %3679 = vmatpush1.bf16.msra.mxu0 %v6381_v44  ;;  %3720 = vmatpush1.bf16.msra.mxu1 %v6383_v30 }
0x11b3   :  { %3680 = vmatprep.subr.bf16.mxu0 %v6389_v10  ;;  %3721 = vmatprep.subr.bf16.mxu1 %v6391_v12 }
0x11b6   :  { %3681 = vmatpush1.bf16.msra.mxu0 %v6393_v23  ;;  %3722 = vmatpush1.bf16.msra.mxu1 %v6395_v38 }
0x11b7   :  { %3682 = vmatprep.subr.bf16.mxu0 %v6401_v51  ;;  %3723 = vmatprep.subr.bf16.mxu1 %v6403_v52 }
0x11ba   :  { %3683 = vmatpush1.bf16.msra.mxu0 %v6405_v57  ;;  %3724 = vmatpush1.bf16.msra.mxu1 %v6407_v33 }
0x11bb   :  { %3684 = vmatprep.subr.bf16.mxu0 %v6411_v35  ;;  %3725 = vmatprep.subr.bf16.mxu1 %v6413_v36 }
0x11be   :  { %3685 = vmatpush1.bf16.msra.mxu0 %v6417_v40  ;;  %3726 = vmatpush1.bf16.msra.mxu1 %v6419_v8 }
0x11bf   :  { %3686 = vmatprep.subr.bf16.mxu0 %v6423_v54  ;;  %3727 = vmatprep.subr.bf16.mxu1 %v6425_v47 }
0x11c2   :  { %3687 = vmatpush1.bf16.msra.mxu0 %v6429_v62  ;;  %3728 = vmatpush1.bf16.msra.mxu1 %v6431_v18 }
0x11c3   :  { %3688 = vmatprep.subr.bf16.mxu0 %v6435_v37  ;;  %3729 = vmatprep.subr.bf16.mxu1 %v6437_v0 }
0x11c6   :  { %3689 = vmatpush1.bf16.msra.mxu0 %v6441_v32  ;;  %3730 = vmatpush1.bf16.msra.mxu1 %v6443_v2 }
0x11c7   :  { %3786 = vmatprep.subr.bf16.mxu0 %v6353_v63  ;;  %3827 = vmatprep.subr.bf16.mxu1 %v6355_v27 }
0x127c   :  { %v3596_v34 = vpop.f32.mrb[96].mxu0  ;;  %v3637_v16 = vpop.f32.mrb[96].mxu1 }
0x127d   :  { %v3644_v55 = vadd.f32 %v3596_v34, %v2995_v56  ;;  %v3646_v6 = vadd.f32 %v3637_v16, %v3068_v28  ;;  %v3598_v24 = vpop.f32.mrb[97].mxu0  ;;  %v3639_v41 = vpop.f32.mrb[97].mxu1 }
0x127e   :  { %v3645_v53 = vadd.f32 %v3598_v24, %v2997_v3  ;;  %v3647_v48 = vadd.f32 %v3639_v41, %v3070_v9  ;;  %v3600_v45 = vpop.f32.mrb[98].mxu0  ;;  %v3641_v42 = vpop.f32.mrb[98].mxu1 }
0x127f   :  { %v3648_v4 = vsub.f32 0.0, %v3644_v55  ;;  %v3601_v13 = vpop.f32.mrb[99].mxu0  ;;  %v3642_v58 = vpop.f32.mrb[99].mxu1  ;;  %v3650_v1 = vsub.f32 0.0, %v3646_v6  ;;  %v6924_v42 = vld [vmem:[#allocation27_spill] sm:$0xff] }
0x1280   :  { %v3649_v20 = vsub.f32 0.0, %v3645_v53  ;;  %v6925_v13 = vld [vmem:[#allocation28_spill] sm:$0xff] }
0x1281   :  { %v3651_v46 = vmul.f32 1.442695, %v3648_v4  ;;  %v3655_v19 = vmul.f32 1.442695, %v3650_v1  ;;  %v3074_v4 = vadd.f32 %v6924_v42, %v6470_v43  ;;  %v3003_v58 = vadd.f32 %v6925_v13, %v6578_v61 }
0x1282   :  { %v3653_v39 = vmul.f32 1.442695, %v3649_v20  ;;  %v6926_v20 = vld [vmem:[#allocation29_spill] sm:$0xff] }
0x1283   :  { %4848 = vpow2.f32 %v3651_v46  ;;  %v3076_v46 = vadd.f32 %v6926_v20, %v6917_v25 }
0x1284   :  { %4850 = vpow2.f32 %v3653_v39 }
0x1285   :  { %4852 = vtanh.f32 %v3647_v48 }
0x1286   :  { %4854 = vpow2.f32 %v3655_v19 }
0x128d   :  { %v4849_v50 = vpop.eup %4848 }
0x128e   :  { %v3657_v7 = vadd.f32 1.0, %v4849_v50  ;;  %v4851_v56 = vpop.eup %4850 }
0x128f   :  { %v3658_v28 = vadd.f32 1.0, %v4851_v56  ;;  %v4853_v15 = vpop.eup %4852 }
0x1290   :  { %4856 = vrcp.f32 %v3657_v7  ;;  %v4855_v3 = vpop.eup %4854 }
0x1291   :  { %4858 = vrcp.f32 %v3658_v28  ;;  %v3659_v16 = vadd.f32 1.0, %v4855_v3 }
0x1293   :  { %4860 = vrcp.f32 %v3659_v16 }
0x129a   :  { %v4857_v29 = vpop.eup %4856 }
0x129b   :  { %v3665_v9 = vmul.f32 %v4857_v29, %v4853_v15  ;;  %v4859_v34 = vpop.eup %4858 }
0x129c   :  { %v3664_v55 = vmul.f32 %v4859_v34, %v6635_v26  ;;  %v6923_v26 = vld [vmem:[#allocation26_spill] sm:$0xff] }
0x129d   :  { %v4861_v6 = vpop.eup %4860  ;;  %v3001_v45 = vadd.f32 %v6923_v26, %v6466_v49 }
0x129e   :  { %v6681_v24 = vadd.f32 %v3665_v9, %v3664_v55 }
0x12a0   :  { %4862 = vtanh.f32 %v6681_v24 }
0x12aa   :  { %v4863_v41 = vpop.eup %4862 }
0x12ab   :  { %v3668_v53 = vmul.f32 %v4863_v41, %v4861_v6 }
0x12ad   :  { %v3673_v48 = vpack.c.bf16 %v3668_v53, %v3668_v53 }
0x12af   :  { %3707 = vmatmul.mubr.bf16.vlgmr.msra.gmra.mrb[100].mxu0 %v3673_v48  ;;  %3748 = vmatmul.mubr.bf16.vlgmr.msra.gmra.mrb[100].mxu1 %v3673_v48 }
0x12b0   :  { %3787 = vmatpush1.bf16.msra.mxu0 %v6357_v14  ;;  %3828 = vmatpush1.bf16.msra.mxu1 %v6359_v17 }
0x12b1   :  { %3788 = vmatprep.subr.bf16.mxu0 %v6365_v31  ;;  %3829 = vmatprep.subr.bf16.mxu1 %v6367_v60 }
0x12b2   :  { %3818 = vmatprep.mubr.bf16.mxu0 %v6836_v5  ;;  %3859 = vmatprep.mubr.bf16.mxu1 %v6836_v5 }
0x12b4   :  { %3789 = vmatpush1.bf16.msra.mxu0 %v6369_v59  ;;  %3830 = vmatpush1.bf16.msra.mxu1 %v6371_v11 }
0x12b5   :  { %3790 = vmatprep.subr.bf16.mxu0 %v6377_v21  ;;  %3831 = vmatprep.subr.bf16.mxu1 %v6379_v22 }
0x12b8   :  { %3791 = vmatpush1.bf16.msra.mxu0 %v6381_v44  ;;  %3832 = vmatpush1.bf16.msra.mxu1 %v6383_v30 }
0x12b9   :  { %3792 = vmatprep.subr.bf16.mxu0 %v6389_v10  ;;  %3833 = vmatprep.subr.bf16.mxu1 %v6391_v12 }
0x12bc   :  { %3793 = vmatpush1.bf16.msra.mxu0 %v6393_v23  ;;  %3834 = vmatpush1.bf16.msra.mxu1 %v6395_v38 }
0x12bd   :  { %3794 = vmatprep.subr.bf16.mxu0 %v6401_v51  ;;  %3835 = vmatprep.subr.bf16.mxu1 %v6403_v52 }
0x12c0   :  { %3795 = vmatpush1.bf16.msra.mxu0 %v6405_v57  ;;  %3836 = vmatpush1.bf16.msra.mxu1 %v6407_v33 }
0x12c1   :  { %3796 = vmatprep.subr.bf16.mxu0 %v6411_v35  ;;  %3837 = vmatprep.subr.bf16.mxu1 %v6413_v36 }
0x12c4   :  { %3797 = vmatpush1.bf16.msra.mxu0 %v6417_v40  ;;  %3838 = vmatpush1.bf16.msra.mxu1 %v6419_v8 }
0x12c5   :  { %3798 = vmatprep.subr.bf16.mxu0 %v6423_v54  ;;  %3839 = vmatprep.subr.bf16.mxu1 %v6425_v47 }
0x12c8   :  { %3799 = vmatpush1.bf16.msra.mxu0 %v6429_v62  ;;  %3840 = vmatpush1.bf16.msra.mxu1 %v6431_v18 }
0x12c9   :  { %3800 = vmatprep.subr.bf16.mxu0 %v6435_v37  ;;  %3841 = vmatprep.subr.bf16.mxu1 %v6437_v0 }
0x12cc   :  { %3801 = vmatpush1.bf16.msra.mxu0 %v6441_v32  ;;  %3842 = vmatpush1.bf16.msra.mxu1 %v6443_v2 }
0x12cd   :  { %3898 = vmatprep.subr.bf16.mxu0 %v6353_v63  ;;  %3939 = vmatprep.subr.bf16.mxu1 %v6355_v27 }
0x1382   :  { %v3708_v39 = vpop.f32.mrb[100].mxu0  ;;  %v3749_v1 = vpop.f32.mrb[100].mxu1 }
0x1383   :  { %v3756_v19 = vadd.f32 %v3708_v39, %v3001_v45  ;;  %v3758_v50 = vadd.f32 %v3749_v1, %v3074_v4  ;;  %v3710_v7 = vpop.f32.mrb[101].mxu0  ;;  %v3751_v63 = vpop.f32.mrb[101].mxu1 }
0x1384   :  { %v3757_v56 = vadd.f32 %v3710_v7, %v3003_v58  ;;  %v3759_v27 = vadd.f32 %v3751_v63, %v3076_v46  ;;  %v3712_v28 = vpop.f32.mrb[102].mxu0  ;;  %v3753_v15 = vpop.f32.mrb[102].mxu1 }
0x1385   :  { %v3760_v3 = vsub.f32 0.0, %v3756_v19  ;;  %v3713_v29 = vpop.f32.mrb[103].mxu0  ;;  %v3754_v9 = vpop.f32.mrb[103].mxu1  ;;  %v3762_v6 = vsub.f32 0.0, %v3758_v50 }
0x1386   :  { %v3761_v34 = vsub.f32 0.0, %v3757_v56 }
0x1387   :  { %v3763_v16 = vmul.f32 1.442695, %v3760_v3  ;;  %v3767_v41 = vmul.f32 1.442695, %v3762_v6 }
0x1388   :  { %v3765_v55 = vmul.f32 1.442695, %v3761_v34 }
0x1389   :  { %4864 = vpow2.f32 %v3763_v16 }
0x138a   :  { %4866 = vpow2.f32 %v3765_v55 }
0x138b   :  { %4868 = vtanh.f32 %v3759_v27 }
0x138c   :  { %4870 = vpow2.f32 %v3767_v41 }
0x1393   :  { %v4865_v53 = vpop.eup %4864 }
0x1394   :  { %v3769_v48 = vadd.f32 1.0, %v4865_v53  ;;  %v4867_v26 = vpop.eup %4866 }
0x1395   :  { %v3770_v45 = vadd.f32 1.0, %v4867_v26  ;;  %v4869_v42 = vpop.eup %4868  ;;  %v4995_v26 = vld [vmem:[#allocation12 + $0x8] ss:$16 sps:$4 sm:$0xff]  }
0x1396   :  { %4872 = vrcp.f32 %v3769_v48  ;;  %v4871_v4 = vpop.eup %4870  ;;  %v4994_v48 = vld [vmem:[#allocation12] ss:$16 sps:$4 sm:$0xff]  }
0x1397   :  { %4874 = vrcp.f32 %v3770_v45  ;;  %v3771_v46 = vadd.f32 1.0, %v4871_v4  ;;  %v4996_v45 = vld [vmem:[#allocation12 + $0x24] ss:$16 sps:$4 sm:$0xff]   ;;  %v4998_v4 = vld [vmem:[#allocation12 + $0x20] ss:$16 sps:$4 sm:$0xff]  }
0x1399   :  { %4876 = vrcp.f32 %v3771_v46  ;;  %v5002_v46 = vld [vmem:[#allocation12 + $0x40] ss:$16 sps:$4 sm:$0xff]  }
0x13a0   :  { %v4873_v13 = vpop.eup %4872 }
0x13a1   :  { %v3777_v58 = vmul.f32 %v4873_v13, %v4869_v42  ;;  %v4875_v20 = vpop.eup %4874  ;;  %v4997_v42 = vld [vmem:[#allocation12 + $0x2c] ss:$16 sps:$4 sm:$0xff]   ;;  %v4999_v13 = vld [vmem:[#allocation12 + $0x28] ss:$16 sps:$4 sm:$0xff]  }
0x13a2   :  { %v3776_v39 = vmul.f32 %v4875_v20, %v6681_v24  ;;  %v5001_v20 = vld [vmem:[#allocation12 + $0x4c] ss:$16 sps:$4 sm:$0xff]  }
0x13a3   :  { %v4877_v19 = vpop.eup %4876 }
0x13a4   :  { %v6727_v1 = vadd.f32 %v3777_v58, %v3776_v39  ;;  %v5000_v58 = vld [vmem:[#allocation12 + $0x44] ss:$16 sps:$4 sm:$0xff]   ;;  %v5003_v39 = vld [vmem:[#allocation12 + $0x48] ss:$16 sps:$4 sm:$0xff]  }
0x13a6   :  { %4878 = vtanh.f32 %v6727_v1 }
0x13b0   :  { %v4879_v50 = vpop.eup %4878 }
0x13b1   :  { %v3780_v7 = vmul.f32 %v4879_v50, %v4877_v19  ;;  %v5005_v19 = vld [vmem:[#allocation12 + $0x6c] ss:$16 sps:$4 sm:$0xff]   ;;  %v5006_v50 = vld [vmem:[#allocation12 + $0x60] ss:$16 sps:$4 sm:$0xff]  }
0x13b3   :  { %v3785_v63 = vpack.c.bf16 %v3780_v7, %v3780_v7  ;;  %v5007_v7 = vld [vmem:[#allocation12 + $0x68] ss:$16 sps:$4 sm:$0xff]  }
0x13b5   :  { %3819 = vmatmul.mubr.bf16.vlgmr.msra.gmra.mrb[104].mxu0 %v3785_v63  ;;  %3860 = vmatmul.mubr.bf16.vlgmr.msra.gmra.mrb[104].mxu1 %v3785_v63  ;;  %v5009_v63 = vld [vmem:[#allocation12 + $0x8c] ss:$16 sps:$4 sm:$0xff]  }
0x13b6   :  { %3899 = vmatpush1.bf16.msra.mxu0 %v6357_v14  ;;  %3940 = vmatpush1.bf16.msra.mxu1 %v6359_v17  ;;  %v4992_v14 = vld [vmem:[#allocation12 + $0x4] ss:$16 sps:$4 sm:$0xff]   ;;  %v4993_v17 = vld [vmem:[#allocation12 + $0xc] ss:$16 sps:$4 sm:$0xff]  }
0x13b7   :  { %3900 = vmatprep.subr.bf16.mxu0 %v6365_v31  ;;  %3941 = vmatprep.subr.bf16.mxu1 %v6367_v60  ;;  %v6927_v31 = vld [vmem:[#allocation30_spill] sm:$0xff] }
0x13b8   :  { %3930 = vmatprep.mubr.bf16.mxu0 %v6836_v5  ;;  %3971 = vmatprep.mubr.bf16.mxu1 %v6836_v5  ;;  %v3005_v60 = vadd.f32 %v6927_v31, %v6466_v49  ;;  %v5012_v31 = vld [vmem:[#allocation12 + $0xa4] ss:$16 sps:$4 sm:$0xff]  }
0x13ba   :  { %3901 = vmatpush1.bf16.msra.mxu0 %v6369_v59  ;;  %3942 = vmatpush1.bf16.msra.mxu1 %v6371_v11  ;;  %v6928_v59 = vld [vmem:[#allocation31_spill] sm:$0xff] }
0x13bb   :  { %3902 = vmatprep.subr.bf16.mxu0 %v6377_v21  ;;  %3943 = vmatprep.subr.bf16.mxu1 %v6379_v22  ;;  %v3078_v11 = vadd.f32 %v6928_v59, %v6470_v43  ;;  %v6929_v21 = vld [vmem:[#allocation32_spill] sm:$0xff] }
0x13bc   :  { %v3007_v22 = vadd.f32 %v6929_v21, %v6578_v61  ;;  %v5014_v59 = vld [vmem:[#allocation12 + $0xa0] ss:$16 sps:$4 sm:$0xff]   ;;  %v5016_v21 = vld [vmem:[#allocation12 + $0xc4] ss:$16 sps:$4 sm:$0xff]  }
0x13be   :  { %3903 = vmatpush1.bf16.msra.mxu0 %v6381_v44  ;;  %3944 = vmatpush1.bf16.msra.mxu1 %v6383_v30  ;;  %v6930_v44 = vld [vmem:[#allocation33_spill] sm:$0xff] }
0x13bf   :  { %3904 = vmatprep.subr.bf16.mxu0 %v6389_v10  ;;  %3945 = vmatprep.subr.bf16.mxu1 %v6391_v12  ;;  %v3080_v30 = vadd.f32 %v6930_v44, %v6917_v25  ;;  %v5018_v44 = vld [vmem:[#allocation12 + $0xc0] ss:$16 sps:$4 sm:$0xff]  }
0x13c2   :  { %3905 = vmatpush1.bf16.msra.mxu0 %v6393_v23  ;;  %3946 = vmatpush1.bf16.msra.mxu1 %v6395_v38 }
0x13c3   :  { %3906 = vmatprep.subr.bf16.mxu0 %v6401_v51  ;;  %3947 = vmatprep.subr.bf16.mxu1 %v6403_v52 }
0x13c6   :  { %3907 = vmatpush1.bf16.msra.mxu0 %v6405_v57  ;;  %3948 = vmatpush1.bf16.msra.mxu1 %v6407_v33 }
0x13c7   :  { %3908 = vmatprep.subr.bf16.mxu0 %v6411_v35  ;;  %3949 = vmatprep.subr.bf16.mxu1 %v6413_v36 }
0x13ca   :  { %3909 = vmatpush1.bf16.msra.mxu0 %v6417_v40  ;;  %3950 = vmatpush1.bf16.msra.mxu1 %v6419_v8 }
0x13cb   :  { %3910 = vmatprep.subr.bf16.mxu0 %v6423_v54  ;;  %3951 = vmatprep.subr.bf16.mxu1 %v6425_v47 }
0x13ce   :  { %3911 = vmatpush1.bf16.msra.mxu0 %v6429_v62  ;;  %3952 = vmatpush1.bf16.msra.mxu1 %v6431_v18 }
0x13cf   :  { %3912 = vmatprep.subr.bf16.mxu0 %v6435_v37  ;;  %3953 = vmatprep.subr.bf16.mxu1 %v6437_v0 }
0x13d2   :  { %3913 = vmatpush1.bf16.msra.mxu0 %v6441_v32  ;;  %3954 = vmatpush1.bf16.msra.mxu1 %v6443_v2 }
0x13d3   :  { %4010 = vmatprep.subr.bf16.mxu0 %v4992_v14  ;;  %4051 = vmatprep.subr.bf16.mxu1 %v4993_v17  ;;  %v5010_v14 = vld [vmem:[#allocation12 + $0x80] ss:$16 sps:$4 sm:$0xff]   ;;  %v5011_v17 = vld [vmem:[#allocation12 + $0x88] ss:$16 sps:$4 sm:$0xff]  }
0x1488   :  { %v3820_v10 = vpop.f32.mrb[104].mxu0  ;;  %v3861_v12 = vpop.f32.mrb[104].mxu1 }
0x1489   :  { %v3868_v23 = vadd.f32 %v3820_v10, %v3005_v60  ;;  %v3870_v38 = vadd.f32 %v3861_v12, %v3078_v11  ;;  %v3822_v51 = vpop.f32.mrb[105].mxu0  ;;  %v3863_v52 = vpop.f32.mrb[105].mxu1  ;;  %v5013_v60 = vld [vmem:[#allocation12 + $0xac] ss:$16 sps:$4 sm:$0xff]   ;;  %v5015_v11 = vld [vmem:[#allocation12 + $0xa8] ss:$16 sps:$4 sm:$0xff]  }
0x148a   :  { %v3869_v57 = vadd.f32 %v3822_v51, %v3007_v22  ;;  %v3871_v33 = vadd.f32 %v3863_v52, %v3080_v30  ;;  %v3824_v35 = vpop.f32.mrb[106].mxu0  ;;  %v3865_v36 = vpop.f32.mrb[106].mxu1  ;;  %v5017_v22 = vld [vmem:[#allocation12 + $0xcc] ss:$16 sps:$4 sm:$0xff]   ;;  %v5019_v30 = vld [vmem:[#allocation12 + $0xc8] ss:$16 sps:$4 sm:$0xff]  }
0x148b   :  { %v3872_v40 = vsub.f32 0.0, %v3868_v23  ;;  %v3825_v8 = vpop.f32.mrb[107].mxu0  ;;  %v3866_v54 = vpop.f32.mrb[107].mxu1  ;;  %v3874_v37 = vsub.f32 0.0, %v3870_v38  ;;  %v5020_v10 = vld [vmem:[#allocation12 + $0xe4] ss:$16 sps:$4 sm:$0xff]  }
0x148c   :  { %v3873_v47 = vsub.f32 0.0, %v3869_v57  ;;  %v5021_v12 = vld [vmem:[#allocation12 + $0xec] ss:$16 sps:$4 sm:$0xff]   ;;  %v5022_v23 = vld [vmem:[#allocation12 + $0xe0] ss:$16 sps:$4 sm:$0xff]  }
0x148d   :  { %v3875_v62 = vmul.f32 1.442695, %v3872_v40  ;;  %v3879_v0 = vmul.f32 1.442695, %v3874_v37  ;;  %v5023_v38 = vld [vmem:[#allocation12 + $0xe8] ss:$16 sps:$4 sm:$0xff]  }
0x148e   :  { %v3877_v18 = vmul.f32 1.442695, %v3873_v47  ;;  %v6931_v51 = vld [vmem:[#allocation35_spill] sm:$0xff]  ;;  %v6932_v57 = vld [vmem:[#allocation36_spill] sm:$0xff]  ;;  %v6933_v35 = vld [vmem:[#allocation37_spill] sm:$0xff] }
0x148f   :  { %4880 = vpow2.f32 %v3875_v62  ;;  %v3011_v52 = vadd.f32 %v6931_v51, %v6466_v49  ;;  %v3013_v36 = vadd.f32 %v6933_v35, %v6578_v61  ;;  %v6934_v40 = vld [vmem:[#allocation38_spill] sm:$0xff] }
0x1490   :  { %4882 = vpow2.f32 %v3877_v18  ;;  %v3086_v8 = vadd.f32 %v6934_v40, %v6917_v25 }
0x1491   :  { %4884 = vtanh.f32 %v3871_v33  ;;  %v3084_v33 = vadd.f32 %v6932_v57, %v6470_v43 }
0x1492   :  { %4886 = vpow2.f32 %v3879_v0 }
0x1499   :  { %v4881_v32 = vpop.eup %4880 }
0x149a   :  { %v3881_v2 = vadd.f32 1.0, %v4881_v32  ;;  %v4883_v24 = vpop.eup %4882 }
0x149b   :  { %v3882_v56 = vadd.f32 1.0, %v4883_v24  ;;  %v4885_v27 = vpop.eup %4884 }
0x149c   :  { %4888 = vrcp.f32 %v3881_v2  ;;  %v4887_v28 = vpop.eup %4886 }
0x149d   :  { %4890 = vrcp.f32 %v3882_v56  ;;  %v3883_v9 = vadd.f32 1.0, %v4887_v28 }
0x149f   :  { %4892 = vrcp.f32 %v3883_v9 }
0x14a6   :  { %v4889_v15 = vpop.eup %4888 }
0x14a7   :  { %v3889_v3 = vmul.f32 %v4889_v15, %v4885_v27  ;;  %v4891_v29 = vpop.eup %4890 }
0x14a8   :  { %v3888_v34 = vmul.f32 %v4891_v29, %v6727_v1  ;;  %v5004_v1 = vld [vmem:[#allocation12 + $0x64] ss:$16 sps:$4 sm:$0xff]  }
0x14a9   :  { %v4893_v55 = vpop.eup %4892 }
0x14aa   :  { %v6771_v16 = vadd.f32 %v3889_v3, %v3888_v34 }
0x14ac   :  { %4894 = vtanh.f32 %v6771_v16 }
0x14b6   :  { %v4895_v6 = vpop.eup %4894 }
0x14b7   :  { %v3892_v41 = vmul.f32 %v4895_v6, %v4893_v55 }
0x14b9   :  { %v3897_v53 = vpack.c.bf16 %v3892_v41, %v3892_v41 }
0x14bb   :  { %3931 = vmatmul.mubr.bf16.vlgmr.msra.gmra.mrb[108].mxu0 %v3897_v53  ;;  %3972 = vmatmul.mubr.bf16.vlgmr.msra.gmra.mrb[108].mxu1 %v3897_v53 }
0x14bc   :  { %4011 = vmatpush1.bf16.msra.mxu0 %v4994_v48  ;;  %4052 = vmatpush1.bf16.msra.mxu1 %v4995_v26 }
0x14bd   :  { %4012 = vmatprep.subr.bf16.mxu0 %v4996_v45  ;;  %4053 = vmatprep.subr.bf16.mxu1 %v4997_v42 }
0x14be   :  { %4042 = vmatprep.mubr.bf16.mxu0 %v6836_v5  ;;  %4083 = vmatprep.mubr.bf16.mxu1 %v6836_v5  ;;  %v5008_v5 = vld [vmem:[#allocation12 + $0x84] ss:$16 sps:$4 sm:$0xff]  }
0x14c0   :  { %4013 = vmatpush1.bf16.msra.mxu0 %v4998_v4  ;;  %4054 = vmatpush1.bf16.msra.mxu1 %v4999_v13 }
0x14c1   :  { %4014 = vmatprep.subr.bf16.mxu0 %v5000_v58  ;;  %4055 = vmatprep.subr.bf16.mxu1 %v5001_v20 }
0x14c4   :  { %4015 = vmatpush1.bf16.msra.mxu0 %v5002_v46  ;;  %4056 = vmatpush1.bf16.msra.mxu1 %v5003_v39 }
0x14c5   :  { %4016 = vmatprep.subr.bf16.mxu0 %v5004_v1  ;;  %4057 = vmatprep.subr.bf16.mxu1 %v5005_v19 }
0x14c8   :  { %4017 = vmatpush1.bf16.msra.mxu0 %v5006_v50  ;;  %4058 = vmatpush1.bf16.msra.mxu1 %v5007_v7  ;;  %v6935_v7 = vld [vmem:[#allocation34_spill] sm:$0xff] }
0x14c9   :  { %4018 = vmatprep.subr.bf16.mxu0 %v5008_v5  ;;  %4059 = vmatprep.subr.bf16.mxu1 %v5009_v63  ;;  %v3015_v5 = vadd.f32 %v6935_v7, %v6466_v49  ;;  %v6936_v63 = vld [vmem:[#allocation39_spill] sm:$0xff] }
0x14cc   :  { %4019 = vmatpush1.bf16.msra.mxu0 %v5010_v14  ;;  %4060 = vmatpush1.bf16.msra.mxu1 %v5011_v17  ;;  %v3088_v14 = vadd.f32 %v6936_v63, %v6470_v43  ;;  %v6937_v17 = vld [vmem:[#allocation40_spill] sm:$0xff] }
0x14cd   :  { %4020 = vmatprep.subr.bf16.mxu0 %v5012_v31  ;;  %4061 = vmatprep.subr.bf16.mxu1 %v5013_v60  ;;  %v3017_v31 = vadd.f32 %v6937_v17, %v6578_v61 }
0x14d0   :  { %4021 = vmatpush1.bf16.msra.mxu0 %v5014_v59  ;;  %4062 = vmatpush1.bf16.msra.mxu1 %v5015_v11 }
0x14d1   :  { %4022 = vmatprep.subr.bf16.mxu0 %v5016_v21  ;;  %4063 = vmatprep.subr.bf16.mxu1 %v5017_v22 }
0x14d4   :  { %4023 = vmatpush1.bf16.msra.mxu0 %v5018_v44  ;;  %4064 = vmatpush1.bf16.msra.mxu1 %v5019_v30 }
0x14d5   :  { %4024 = vmatprep.subr.bf16.mxu0 %v5020_v10  ;;  %4065 = vmatprep.subr.bf16.mxu1 %v5021_v12 }
0x14d8   :  { %4025 = vmatpush1.bf16.msra.mxu0 %v5022_v23  ;;  %4066 = vmatpush1.bf16.msra.mxu1 %v5023_v38 }
0x158e   :  { %v3932_v54 = vpop.f32.mrb[108].mxu0  ;;  %v3973_v47 = vpop.f32.mrb[108].mxu1 }
0x158f   :  { %v3980_v62 = vadd.f32 %v3932_v54, %v3011_v52  ;;  %v3982_v18 = vadd.f32 %v3973_v47, %v3084_v33  ;;  %v3934_v37 = vpop.f32.mrb[109].mxu0  ;;  %v3975_v0 = vpop.f32.mrb[109].mxu1 }
0x1590   :  { %v3981_v32 = vadd.f32 %v3934_v37, %v3013_v36  ;;  %v3983_v2 = vadd.f32 %v3975_v0, %v3086_v8  ;;  %v3936_v24 = vpop.f32.mrb[110].mxu0  ;;  %v3977_v56 = vpop.f32.mrb[110].mxu1 }
0x1591   :  { %v3984_v27 = vsub.f32 0.0, %v3980_v62  ;;  %v3937_v28 = vpop.f32.mrb[111].mxu0  ;;  %v3978_v15 = vpop.f32.mrb[111].mxu1  ;;  %v3986_v34 = vsub.f32 0.0, %v3982_v18 }
0x1592   :  { %v3985_v3 = vsub.f32 0.0, %v3981_v32 }
0x1593   :  { %v3987_v29 = vmul.f32 1.442695, %v3984_v27  ;;  %v3991_v55 = vmul.f32 1.442695, %v3986_v34  ;;  %v4304_v27 = vld [vmem:[%s6809_s10] ss:$0 sm:$0xff] }
0x1594   :  { %v3989_v9 = vmul.f32 1.442695, %v3985_v3  ;;  %v4305_v3 = vld [vmem:[#allocation4] ss:$0 sm:$0xff] }
0x1595   :  { %4896 = vpow2.f32 %v3987_v29 }
0x1596   :  { %4898 = vpow2.f32 %v3989_v9 }
0x1597   :  { %4900 = vtanh.f32 %v3983_v2 }
0x1598   :  { %4902 = vpow2.f32 %v3991_v55 }
0x159f   :  { %v4897_v6 = vpop.eup %4896 }
0x15a0   :  { %v3993_v41 = vadd.f32 1.0, %v4897_v6  ;;  %v4899_v53 = vpop.eup %4898 }
0x15a1   :  { %v3994_v48 = vadd.f32 1.0, %v4899_v53  ;;  %v4901_v26 = vpop.eup %4900 }
0x15a2   :  { %4904 = vrcp.f32 %v3993_v41  ;;  %v4903_v45 = vpop.eup %4902 }
0x15a3   :  { %4906 = vrcp.f32 %v3994_v48  ;;  %v3995_v58 = vadd.f32 1.0, %v4903_v45 }
0x15a5   :  { %4908 = vrcp.f32 %v3995_v58 }
0x15ac   :  { %v4905_v42 = vpop.eup %4904 }
0x15ad   :  { %v4001_v4 = vmul.f32 %v4905_v42, %v4901_v26  ;;  %v4907_v13 = vpop.eup %4906 }
0x15ae   :  { %v4000_v20 = vmul.f32 %v4907_v13, %v6771_v16  ;;  %v6938_v16 = vld [vmem:[#allocation41_spill] sm:$0xff] }
0x15af   :  { %v4909_v39 = vpop.eup %4908  ;;  %v3090_v60 = vadd.f32 %v6938_v16, %v6917_v25 }
0x15b0   :  { %v4002_v46 = vadd.f32 %v4001_v4, %v4000_v20 }
0x15b2   :  { %4910 = vtanh.f32 %v4002_v46 }
0x15bc   :  { %v4911_v1 = vpop.eup %4910 }
0x15bd   :  { %v4004_v19 = vmul.f32 %v4911_v1, %v4909_v39 }
0x15bf   :  { %v4009_v50 = vpack.c.bf16 %v4004_v19, %v4004_v19 }
0x15c1   :  { %4043 = vmatmul.mubr.bf16.vlgmr.msra.gmra.mrb[112].mxu0 %v4009_v50  ;;  %4084 = vmatmul.mubr.bf16.vlgmr.msra.gmra.mrb[112].mxu1 %v4009_v50 }
0x1694   :  { %v4044_v59 = vpop.f32.mrb[112].mxu0  ;;  %v4085_v11 = vpop.f32.mrb[112].mxu1 }
0x1695   :  { %v4092_v21 = vadd.f32 %v4044_v59, %v3015_v5  ;;  %v4094_v22 = vadd.f32 %v4085_v11, %v3088_v14  ;;  %v4046_v44 = vpop.f32.mrb[113].mxu0  ;;  %v4087_v30 = vpop.f32.mrb[113].mxu1 }
0x1696   :  { %v4093_v10 = vadd.f32 %v4046_v44, %v3017_v31  ;;  %v4095_v12 = vadd.f32 %v4087_v30, %v3090_v60  ;;  %v4048_v23 = vpop.f32.mrb[114].mxu0  ;;  %v4089_v38 = vpop.f32.mrb[114].mxu1 }
0x1697   :  { %v4096_v49 = vsub.f32 0.0, %v4092_v21  ;;  %v4049_v51 = vpop.f32.mrb[115].mxu0  ;;  %v4090_v52 = vpop.f32.mrb[115].mxu1  ;;  %v4098_v61 = vsub.f32 0.0, %v4094_v22 }
0x1698   :  { %v4097_v43 = vsub.f32 0.0, %v4093_v10 }
0x1699   :  { %v4099_v57 = vmul.f32 1.442695, %v4096_v49  ;;  %v4103_v25 = vmul.f32 1.442695, %v4098_v61 }
0x169a   :  { %v4101_v33 = vmul.f32 1.442695, %v4097_v43 }
0x169b   :  { %4912 = vpow2.f32 %v4099_v57 }
0x169c   :  { %4914 = vpow2.f32 %v4101_v33 }
0x169d   :  { %4916 = vtanh.f32 %v4095_v12 }
0x169e   :  { %4918 = vpow2.f32 %v4103_v25 }
0x16a5   :  { %v4913_v35 = vpop.eup %4912 }
0x16a6   :  { %v4105_v36 = vadd.f32 1.0, %v4913_v35  ;;  %v4915_v40 = vpop.eup %4914 }
0x16a7   :  { %v4106_v8 = vadd.f32 1.0, %v4915_v40  ;;  %v4917_v54 = vpop.eup %4916 }
0x16a8   :  { %4920 = vrcp.f32 %v4105_v36  ;;  %v4919_v47 = vpop.eup %4918 }
0x16a9   :  { %4922 = vrcp.f32 %v4106_v8  ;;  %v4107_v0 = vadd.f32 1.0, %v4919_v47 }
0x16ab   :  { %4924 = vrcp.f32 %v4107_v0 }
0x16b2   :  { %v4921_v62 = vpop.eup %4920 }
0x16b3   :  { %v4113_v18 = vmul.f32 %v4921_v62, %v4917_v54  ;;  %v4923_v37 = vpop.eup %4922 }
0x16b4   :  { %v4112_v32 = vmul.f32 %v4923_v37, %v4002_v46 }
0x16b5   :  { %v4925_v24 = vpop.eup %4924 }
0x16b6   :  { %v4114_v2 = vadd.f32 %v4113_v18, %v4112_v32 }
0x16b8   :  { %4926 = vtanh.f32 %v4114_v2 }
0x16c2   :  { %v4927_v56 = vpop.eup %4926 }
0x16c3   :  { %v4116_v28 = vmul.f32 %v4927_v56, %v4925_v24 }
0x16c5   :  { %v4124_v15 = vmul.f32 %v4304_v27, %v4116_v28 }
0x16c7   :  { %4125 = vadd.xlane.f32.xlu0 %v4124_v15 }
0x1754   :  { %v4126_v29 = vpop.xlane.xlu0 %4125 }
0x1755   :  { %v4134_v9 = vadd.f32 %v4305_v3, %v4126_v29 }
0x1757   :  { %4136 = vst.msk [vmem:[%s6811_s12] sm:$0xff] %vm4135_vm0, %v4134_v9 }
0x1758   :  { %4141 = vsyncpa [#allocation6], 1 }
0x1759   :  { %4142 = vsyncpa [#allocation8], 1 }
0x175a   :  { %4143 = vsyncpa [#allocation11], 1 }

</bundles_post_ra>
